<compile_context>
chip_gen: v5e
topology: v5e:2x2
jax: 0.10.0
libtpu: 0.0.40
codegen_flags: <defaults>
</compile_context>

<pallas_src>
import functools

import numpy as np
import jax
import jax.numpy as jnp
from jax import lax
from jax.experimental import pallas as pl
from jax.experimental.pallas import tpu as pltpu

Z_SIZE = 32
LEAKY_SLOPE = 0.01   # torch.nn.LeakyReLU default
BN_EPS = 1e-5        # torch.nn.BatchNorm2d default

# (H, W, Cin, Cout, pooled) for the four conv blocks (input is 1 x 16 x 16).
BLOCK_DIMS = (
    (16, 16, 1, 8, True),
    (8, 8, 8, 32, True),
    (4, 4, 32, 64, True),
    (2, 2, 64, 64, False),
)


# ---------------------------------------------------------------------------
# Constant operator construction (numpy, trace-time only).
# ---------------------------------------------------------------------------
def _conv_row_shift(B, H):
    """R[di] @ A shifts rows by (di-1) inside each image, zero fill (conv pad)."""
    R = np.zeros((3, B * H, B * H), np.float32)
    for di in range(3):
        for b in range(B):
            for i in range(H):
                src = i + di - 1
                if 0 <= src < H:
                    R[di, b * H + i, b * H + src] = 1.0
    return R


def _conv_tap_matrix(W):
    """J[jin, j, dj] = 1 iff jin == j + dj - 1 (horizontal conv taps, pad=1)."""
    J = np.zeros((W, W, 3), np.float32)
    for j in range(W):
        for dj in range(3):
            jin = j + dj - 1
            if 0 <= jin < W:
                J[jin, j, dj] = 1.0
    return J


def _bn_matrices(W, C, count):
    """red: (W*C, C) lane->channel reduction (scaled 1/count); exp: 0/1 inverse."""
    red = np.zeros((W * C, C), np.float32)
    exp = np.zeros((C, W * C), np.float32)
    for j in range(W):
        for c in range(C):
            red[j * C + c, c] = 1.0 / count
            exp[c, j * C + c] = 1.0
    return red, exp


def _pool_row_select(B, H):
    """RS[dr] @ Y picks input row clamp(2*oh + dr - 1) for output row oh."""
    Ho = H // 2
    RS = np.zeros((4, B * Ho, B * H), np.float32)
    for dr in range(4):
        for b in range(B):
            for oh in range(Ho):
                src = min(max(2 * oh + dr - 1, 0), H - 1)
                RS[dr, b * Ho + oh, b * H + src] = 1.0
    return RS


def _pool_col_select(W, C):
    """Y @ CS[dw] picks lane clamp(2*ow + dw - 1)*C + c for output lane ow*C + c."""
    Wo = W // 2
    CS = np.zeros((4, W * C, Wo * C), np.float32)
    for dw in range(4):
        for ow in range(Wo):
            src = min(max(2 * ow + dw - 1, 0), W - 1)
            for c in range(C):
                CS[dw, src * C + c, ow * C + c] = 1.0
    return CS


def _head_selects(B, H, W, C):
    rowsel = np.zeros((H, B, B * H), np.float32)
    for i in range(H):
        for b in range(B):
            rowsel[i, b, b * H + i] = 1.0
    colsel = np.zeros((W, W * C, C), np.float32)
    for j in range(W):
        for c in range(C):
            colsel[j, j * C + c, c] = 1.0
    return rowsel, colsel


def build_operands(params, B):
    """All kernel operands (constant selection matrices + weight-derived conv
    operators).  Depends only on params and batch size, so in a real setting it
    would be computed once and cached."""
    ops = []
    for bi, (H, W, Cin, Cout, pooled) in enumerate(BLOCK_DIMS):
        w, _bias, gamma, beta = params[f"block{bi + 1}"]  # bias cancels under BN
        J = _conv_tap_matrix(W)
        # M[di][jin*Cin+ci, j*Cout+co] = w[di, jin-j+1, ci, co] (0 outside taps)
        M = jnp.einsum("pqd,vdio->vpiqo", J, w).reshape(3, W * Cin, W * Cout)
        red, exp = _bn_matrices(W, Cout, B * H * W)
        ops += [
            jnp.asarray(_conv_row_shift(B, H)), M,
            jnp.asarray(red), jnp.asarray(exp),
            gamma.reshape(1, Cout), beta.reshape(1, Cout),
        ]
        if pooled:
            ops += [jnp.asarray(_pool_row_select(B, H)),
                    jnp.asarray(_pool_col_select(W, Cout))]
    H4, W4, _, C4, _ = BLOCK_DIMS[-1]
    rowsel, colsel = _head_selects(B, H4, W4, C4)
    ops += [jnp.asarray(rowsel), jnp.asarray(colsel),
            params["mlp_w"], params["mlp_b"].reshape(1, -1)]
    return ops


# ---------------------------------------------------------------------------
# The single fused kernel: entire ModelE forward, VMEM resident.
# ---------------------------------------------------------------------------
def _fused_forward_kernel(*refs):
    o_ref = refs[-1]
    dot = functools.partial(jnp.dot, preferred_element_type=jnp.float32)

    idx = 0
    a = refs[idx][...]            # (B*H, W*Cin) activation slab
    idx += 1

    for (H, W, Cin, Cout, pooled) in BLOCK_DIMS:
        R_ref, M_ref, red_ref, exp_ref, g_ref, b_ref = refs[idx:idx + 6]
        idx += 6
        if pooled:
            RS_ref, CS_ref = refs[idx:idx + 2]
            idx += 2

        # --- Conv2d(3x3, pad=1): 3 x (row-shift @ A) @ col-mix --------------
        y = dot(dot(R_ref[0], a), M_ref[0])
        y = y + dot(dot(R_ref[1], a), M_ref[1])
        y = y + dot(dot(R_ref[2], a), M_ref[2])
        # (conv bias omitted: cancels exactly under batch-statistics BN)

        # --- BatchNorm2d (training-mode batch stats), single pass -----------
        col_sum = jnp.sum(y, axis=0, keepdims=True)          # (1, W*Cout)
        col_sq = jnp.sum(y * y, axis=0, keepdims=True)
        ch_mean = dot(col_sum, red_ref[...])                  # (1, Cout)
        ch_var = dot(col_sq, red_ref[...]) - ch_mean * ch_mean
        ch_scale = g_ref[...] * lax.rsqrt(ch_var + BN_EPS)
        ch_shift = b_ref[...] - ch_mean * ch_scale
        y = y * dot(ch_scale, exp_ref[...]) + dot(ch_shift, exp_ref[...])

        # --- LeakyReLU -------------------------------------------------------
        y = jnp.where(y >= 0, y, LEAKY_SLOPE * y)

        # --- MaxPool2d(kernel=4, stride=2, pad=1), separable -----------------
        if pooled:
            rp = dot(RS_ref[0], y)
            for dr in range(1, 4):
                rp = jnp.maximum(rp, dot(RS_ref[dr], y))      # (B*Ho, W*Cout)
            a = dot(rp, CS_ref[0])
            for dw in range(1, 4):
                a = jnp.maximum(a, dot(rp, CS_ref[dw]))       # (B*Ho, Wo*Cout)
        else:
            a = y

    # --- AdaptiveMaxPool2d((1,1)) + squeeze + Linear + Tanh ------------------
    rowsel_ref, colsel_ref, wmlp_ref, bmlp_ref = refs[idx:idx + 4]
    H4, W4 = BLOCK_DIMS[-1][0], BLOCK_DIMS[-1][1]
    rmax = dot(rowsel_ref[0], a)
    for i in range(1, H4):
        rmax = jnp.maximum(rmax, dot(rowsel_ref[i], a))       # (B, W4*C4)
    pooled_feat = dot(rmax, colsel_ref[0])
    for j in range(1, W4):
        pooled_feat = jnp.maximum(pooled_feat, dot(rmax, colsel_ref[j]))  # (B, C4)
    out = dot(pooled_feat, wmlp_ref[...]) + bmlp_ref[...]
    o_ref[...] = jnp.tanh(out)


def model_e_forward(x_nchw, params):
    B, Cin, H1, W1 = x_nchw.shape
    assert (H1, W1, Cin) == (BLOCK_DIMS[0][0], BLOCK_DIMS[0][1], BLOCK_DIMS[0][2])
    operands = build_operands(params, B)
    # Cin == 1, so NCHW flattening equals the (B*H, W*Cin) slab layout directly.
    x2d = x_nchw.reshape(B * H1, W1 * Cin)
    return pl.pallas_call(
        _fused_forward_kernel,
        out_shape=jax.ShapeDtypeStruct((B, Z_SIZE), jnp.float32),
        in_specs=[pl.BlockSpec(memory_space=pltpu.MemorySpace.VMEM)]
        * (1 + len(operands)),
        out_specs=pl.BlockSpec(memory_space=pltpu.MemorySpace.VMEM),
    )(x2d, *operands)


# ---------------------------------------------------------------------------
# Deterministic parameter initialization (synthetic — no checkpoint load).
# Conv weights stored in (kh, kw, Cin, Cout) = HWIO layout.
# ---------------------------------------------------------------------------
def init_params(key):
    def conv_p(k, cin, cout):
        k1, k2 = jax.random.split(k)
        w = jax.random.normal(k1, (3, 3, cin, cout), jnp.float32) / np.sqrt(9 * cin)
        b = jax.random.normal(k2, (cout,), jnp.float32) * 0.01
        g = jnp.ones((cout,), jnp.float32)      # BatchNorm weight
        beta = jnp.zeros((cout,), jnp.float32)  # BatchNorm bias
        return (w, b, g, beta)

    ks = jax.random.split(key, 6)
    return {
        "block1": conv_p(ks[0], 1, 8),
        "block2": conv_p(ks[1], 8, 32),
        "block3": conv_p(ks[2], 32, 64),
        "block4": conv_p(ks[3], 64, 64),
        "mlp_w": jax.random.normal(ks[4], (64, Z_SIZE), jnp.float32) / 8.0,
        "mlp_b": jax.random.normal(ks[5], (Z_SIZE,), jnp.float32) * 0.01,
    }


# ---------------------------------------------------------------------------
# Pure-JAX reference (for self-check only).
# ---------------------------------------------------------------------------
def reference_forward(x_nchw, params):
    x = jnp.transpose(x_nchw, (0, 2, 3, 1))

    def block(x, p, pool=True):
        w, b, g, beta = p
        y = lax.conv_general_dilated(
            x, w, (1, 1), ((1, 1), (1, 1)),
            dimension_numbers=("NHWC", "HWIO", "NHWC")) + b
        mean = jnp.mean(y, axis=(0, 1, 2), keepdims=True)
        var = jnp.mean(jnp.square(y - mean), axis=(0, 1, 2), keepdims=True)
        y = (y - mean) * lax.rsqrt(var + BN_EPS) * g + beta
        y = jnp.where(y >= 0, y, LEAKY_SLOPE * y)
        if pool:
            y = lax.reduce_window(y, -jnp.inf, lax.max, (1, 4, 4, 1),
                                  (1, 2, 2, 1),
                                  [(0, 0), (1, 1), (1, 1), (0, 0)])
        return y

    y = block(x, params["block1"])
    y = block(y, params["block2"])
    y = block(y, params["block3"])
    y = block(y, params["block4"], pool=False)
    y = jnp.max(y, axis=(1, 2))
    return jnp.tanh(y @ params["mlp_w"] + params["mlp_b"])


if __name__ == "__main__":
    key = jax.random.PRNGKey(0)
    k_x, k_p = jax.random.split(key)
    x = jax.random.normal(k_x, (2, 1, 16, 16), jnp.float32)  # NCHW, like PyTorch
    params = init_params(k_p)

    fwd = jax.jit(model_e_forward)
    out = jax.block_until_ready(fwd(x, params))
    ref = jax.block_until_ready(reference_forward(x, params))

    assert out.shape == (2, Z_SIZE), out.shape
    np.testing.assert_allclose(np.asarray(out), np.asarray(ref),
                               rtol=1e-4, atol=1e-4)
    print("KERNEL_OK")
</pallas_src>

<mosaic_0001>
module attributes {stable_mosaic.version = 11 : i64} {
  func.func @_fused_forward_kernel(%arg0: memref<32x16xf32, #tpu.memory_space<vmem>>, %arg1: memref<3x32x32xf32, #tpu.memory_space<vmem>>, %arg2: memref<3x16x128xf32, #tpu.memory_space<vmem>>, %arg3: memref<128x8xf32, #tpu.memory_space<vmem>>, %arg4: memref<8x128xf32, #tpu.memory_space<vmem>>, %arg5: memref<1x8xf32, #tpu.memory_space<vmem>>, %arg6: memref<1x8xf32, #tpu.memory_space<vmem>>, %arg7: memref<4x16x32xf32, #tpu.memory_space<vmem>>, %arg8: memref<4x128x64xf32, #tpu.memory_space<vmem>>, %arg9: memref<3x16x16xf32, #tpu.memory_space<vmem>>, %arg10: memref<3x64x256xf32, #tpu.memory_space<vmem>>, %arg11: memref<256x32xf32, #tpu.memory_space<vmem>>, %arg12: memref<32x256xf32, #tpu.memory_space<vmem>>, %arg13: memref<1x32xf32, #tpu.memory_space<vmem>>, %arg14: memref<1x32xf32, #tpu.memory_space<vmem>>, %arg15: memref<4x8x16xf32, #tpu.memory_space<vmem>>, %arg16: memref<4x256x128xf32, #tpu.memory_space<vmem>>, %arg17: memref<3x8x8xf32, #tpu.memory_space<vmem>>, %arg18: memref<3x128x256xf32, #tpu.memory_space<vmem>>, %arg19: memref<256x64xf32, #tpu.memory_space<vmem>>, %arg20: memref<64x256xf32, #tpu.memory_space<vmem>>, %arg21: memref<1x64xf32, #tpu.memory_space<vmem>>, %arg22: memref<1x64xf32, #tpu.memory_space<vmem>>, %arg23: memref<4x4x8xf32, #tpu.memory_space<vmem>>, %arg24: memref<4x256x128xf32, #tpu.memory_space<vmem>>, %arg25: memref<3x4x4xf32, #tpu.memory_space<vmem>>, %arg26: memref<3x128x128xf32, #tpu.memory_space<vmem>>, %arg27: memref<128x64xf32, #tpu.memory_space<vmem>>, %arg28: memref<64x128xf32, #tpu.memory_space<vmem>>, %arg29: memref<1x64xf32, #tpu.memory_space<vmem>>, %arg30: memref<1x64xf32, #tpu.memory_space<vmem>>, %arg31: memref<2x2x4xf32, #tpu.memory_space<vmem>>, %arg32: memref<2x128x64xf32, #tpu.memory_space<vmem>>, %arg33: memref<64x32xf32, #tpu.memory_space<vmem>>, %arg34: memref<1x32xf32, #tpu.memory_space<vmem>>, %arg35: memref<2x32xf32, #tpu.memory_space<vmem>>) attributes {dimension_semantics = [], scalar_prefetch = 0 : i64, scratch_operands = 0 : i64, tpu.core_type = #tpu.core_type<tc>} {
    %c0 = arith.constant 0 : index
    %c0_0 = arith.constant 0 : index
    %0 = vector.load %arg0[%c0, %c0_0] : memref<32x16xf32, #tpu.memory_space<vmem>>, vector<32x16xf32>
    %c0_1 = arith.constant 0 : index
    %c0_2 = arith.constant 0 : index
    %c0_3 = arith.constant 0 : index
    %1 = vector.load %arg1[%c0_1, %c0_2, %c0_3] : memref<3x32x32xf32, #tpu.memory_space<vmem>>, vector<1x32x32xf32>
    %2 = vector.shape_cast %1 : vector<1x32x32xf32> to vector<32x32xf32>
    %cst = arith.constant dense<0.000000e+00> : vector<32x16xf32>
    %3 = tpu.matmul %2, %0, %cst {dimension_numbers = #tpu.dot_dimension_numbers<[1], [0], [0], [1], [0, 0, 1, 1], [], []>} : vector<32x32xf32>, vector<32x16xf32>, vector<32x16xf32> -> vector<32x16xf32>
    %c0_4 = arith.constant 0 : index
    %c0_5 = arith.constant 0 : index
    %c0_6 = arith.constant 0 : index
    %4 = vector.load %arg2[%c0_4, %c0_5, %c0_6] : memref<3x16x128xf32, #tpu.memory_space<vmem>>, vector<1x16x128xf32>
    %5 = vector.shape_cast %4 : vector<1x16x128xf32> to vector<16x128xf32>
    %cst_7 = arith.constant dense<0.000000e+00> : vector<32x128xf32>
    %6 = tpu.matmul %3, %5, %cst_7 {dimension_numbers = #tpu.dot_dimension_numbers<[1], [0], [0], [1], [0, 0, 1, 1], [], []>} : vector<32x16xf32>, vector<16x128xf32>, vector<32x128xf32> -> vector<32x128xf32>
    %c1 = arith.constant 1 : index
    %c0_8 = arith.constant 0 : index
    %c0_9 = arith.constant 0 : index
    %7 = vector.load %arg1[%c1, %c0_8, %c0_9] : memref<3x32x32xf32, #tpu.memory_space<vmem>>, vector<1x32x32xf32>
    %8 = vector.shape_cast %7 : vector<1x32x32xf32> to vector<32x32xf32>
    %cst_10 = arith.constant dense<0.000000e+00> : vector<32x16xf32>
    %9 = tpu.matmul %8, %0, %cst_10 {dimension_numbers = #tpu.dot_dimension_numbers<[1], [0], [0], [1], [0, 0, 1, 1], [], []>} : vector<32x32xf32>, vector<32x16xf32>, vector<32x16xf32> -> vector<32x16xf32>
    %c1_11 = arith.constant 1 : index
    %c0_12 = arith.constant 0 : index
    %c0_13 = arith.constant 0 : index
    %10 = vector.load %arg2[%c1_11, %c0_12, %c0_13] : memref<3x16x128xf32, #tpu.memory_space<vmem>>, vector<1x16x128xf32>
    %11 = vector.shape_cast %10 : vector<1x16x128xf32> to vector<16x128xf32>
    %cst_14 = arith.constant dense<0.000000e+00> : vector<32x128xf32>
    %12 = tpu.matmul %9, %11, %cst_14 {dimension_numbers = #tpu.dot_dimension_numbers<[1], [0], [0], [1], [0, 0, 1, 1], [], []>} : vector<32x16xf32>, vector<16x128xf32>, vector<32x128xf32> -> vector<32x128xf32>
    %13 = arith.addf %6, %12 : vector<32x128xf32>
    %c2 = arith.constant 2 : index
    %c0_15 = arith.constant 0 : index
    %c0_16 = arith.constant 0 : index
    %14 = vector.load %arg1[%c2, %c0_15, %c0_16] : memref<3x32x32xf32, #tpu.memory_space<vmem>>, vector<1x32x32xf32>
    %15 = vector.shape_cast %14 : vector<1x32x32xf32> to vector<32x32xf32>
    %cst_17 = arith.constant dense<0.000000e+00> : vector<32x16xf32>
    %16 = tpu.matmul %15, %0, %cst_17 {dimension_numbers = #tpu.dot_dimension_numbers<[1], [0], [0], [1], [0, 0, 1, 1], [], []>} : vector<32x32xf32>, vector<32x16xf32>, vector<32x16xf32> -> vector<32x16xf32>
    %c2_18 = arith.constant 2 : index
    %c0_19 = arith.constant 0 : index
    %c0_20 = arith.constant 0 : index
    %17 = vector.load %arg2[%c2_18, %c0_19, %c0_20] : memref<3x16x128xf32, #tpu.memory_space<vmem>>, vector<1x16x128xf32>
    %18 = vector.shape_cast %17 : vector<1x16x128xf32> to vector<16x128xf32>
    %cst_21 = arith.constant dense<0.000000e+00> : vector<32x128xf32>
    %19 = tpu.matmul %16, %18, %cst_21 {dimension_numbers = #tpu.dot_dimension_numbers<[1], [0], [0], [1], [0, 0, 1, 1], [], []>} : vector<32x16xf32>, vector<16x128xf32>, vector<32x128xf32> -> vector<32x128xf32>
    %20 = arith.addf %13, %19 : vector<32x128xf32>
    %cst_22 = arith.constant dense<0.000000e+00> : vector<128xf32>
    %21 = vector.multi_reduction <add>, %20, %cst_22 [0] : vector<32x128xf32> to vector<128xf32>
    %22 = vector.shape_cast %21 : vector<128xf32> to vector<1x128xf32>
    %23 = arith.mulf %20, %20 : vector<32x128xf32>
    %cst_23 = arith.constant dense<0.000000e+00> : vector<128xf32>
    %24 = vector.multi_reduction <add>, %23, %cst_23 [0] : vector<32x128xf32> to vector<128xf32>
    %25 = vector.shape_cast %24 : vector<128xf32> to vector<1x128xf32>
    %c0_24 = arith.constant 0 : index
    %c0_25 = arith.constant 0 : index
    %26 = vector.load %arg3[%c0_24, %c0_25] : memref<128x8xf32, #tpu.memory_space<vmem>>, vector<128x8xf32>
    %cst_26 = arith.constant dense<0.000000e+00> : vector<1x8xf32>
    %27 = tpu.matmul %22, %26, %cst_26 {dimension_numbers = #tpu.dot_dimension_numbers<[1], [0], [0], [1], [0, 0, 1, 1], [], []>} : vector<1x128xf32>, vector<128x8xf32>, vector<1x8xf32> -> vector<1x8xf32>
    %c0_27 = arith.constant 0 : index
    %c0_28 = arith.constant 0 : index
    %28 = vector.load %arg3[%c0_27, %c0_28] : memref<128x8xf32, #tpu.memory_space<vmem>>, vector<128x8xf32>
    %cst_29 = arith.constant dense<0.000000e+00> : vector<1x8xf32>
    %29 = tpu.matmul %25, %28, %cst_29 {dimension_numbers = #tpu.dot_dimension_numbers<[1], [0], [0], [1], [0, 0, 1, 1], [], []>} : vector<1x128xf32>, vector<128x8xf32>, vector<1x8xf32> -> vector<1x8xf32>
    %30 = arith.mulf %27, %27 : vector<1x8xf32>
    %31 = arith.subf %29, %30 : vector<1x8xf32>
    %c0_30 = arith.constant 0 : index
    %c0_31 = arith.constant 0 : index
    %32 = vector.load %arg5[%c0_30, %c0_31] : memref<1x8xf32, #tpu.memory_space<vmem>>, vector<1x8xf32>
    %cst_32 = arith.constant 9.99999974E-6 : f32
    %33 = vector.broadcast %cst_32 : f32 to vector<1x8xf32>
    %34 = arith.addf %31, %33 : vector<1x8xf32>
    %35 = math.rsqrt %34 : vector<1x8xf32>
    %36 = arith.mulf %32, %35 : vector<1x8xf32>
    %c0_33 = arith.constant 0 : index
    %c0_34 = arith.constant 0 : index
    %37 = vector.load %arg6[%c0_33, %c0_34] : memref<1x8xf32, #tpu.memory_space<vmem>>, vector<1x8xf32>
    %38 = arith.mulf %27, %36 : vector<1x8xf32>
    %39 = arith.subf %37, %38 : vector<1x8xf32>
    %c0_35 = arith.constant 0 : index
    %c0_36 = arith.constant 0 : index
    %40 = vector.load %arg4[%c0_35, %c0_36] : memref<8x128xf32, #tpu.memory_space<vmem>>, vector<8x128xf32>
    %cst_37 = arith.constant dense<0.000000e+00> : vector<1x128xf32>
    %41 = tpu.matmul %36, %40, %cst_37 {dimension_numbers = #tpu.dot_dimension_numbers<[1], [0], [0], [1], [0, 0, 1, 1], [], []>} : vector<1x8xf32>, vector<8x128xf32>, vector<1x128xf32> -> vector<1x128xf32>
    %42 = vector.broadcast %41 : vector<1x128xf32> to vector<32x128xf32>
    %43 = arith.mulf %20, %42 : vector<32x128xf32>
    %c0_38 = arith.constant 0 : index
    %c0_39 = arith.constant 0 : index
    %44 = vector.load %arg4[%c0_38, %c0_39] : memref<8x128xf32, #tpu.memory_space<vmem>>, vector<8x128xf32>
    %cst_40 = arith.constant dense<0.000000e+00> : vector<1x128xf32>
    %45 = tpu.matmul %39, %44, %cst_40 {dimension_numbers = #tpu.dot_dimension_numbers<[1], [0], [0], [1], [0, 0, 1, 1], [], []>} : vector<1x8xf32>, vector<8x128xf32>, vector<1x128xf32> -> vector<1x128xf32>
    %46 = vector.broadcast %45 : vector<1x128xf32> to vector<32x128xf32>
    %47 = arith.addf %43, %46 : vector<32x128xf32>
    %cst_41 = arith.constant 0.000000e+00 : f32
    %48 = vector.broadcast %cst_41 : f32 to vector<32x128xf32>
    %49 = arith.cmpf oge, %47, %48 : vector<32x128xf32>
    %cst_42 = arith.constant 0.00999999977 : f32
    %50 = vector.broadcast %cst_42 : f32 to vector<32x128xf32>
    %51 = arith.mulf %50, %47 : vector<32x128xf32>
    %52 = arith.select %49, %47, %51 : vector<32x128xi1>, vector<32x128xf32>
    %c0_43 = arith.constant 0 : index
    %c0_44 = arith.constant 0 : index
    %c0_45 = arith.constant 0 : index
    %53 = vector.load %arg7[%c0_43, %c0_44, %c0_45] : memref<4x16x32xf32, #tpu.memory_space<vmem>>, vector<1x16x32xf32>
    %54 = vector.shape_cast %53 : vector<1x16x32xf32> to vector<16x32xf32>
    %cst_46 = arith.constant dense<0.000000e+00> : vector<16x128xf32>
    %55 = tpu.matmul %54, %52, %cst_46 {dimension_numbers = #tpu.dot_dimension_numbers<[1], [0], [0], [1], [0, 0, 1, 1], [], []>} : vector<16x32xf32>, vector<32x128xf32>, vector<16x128xf32> -> vector<16x128xf32>
    %c1_47 = arith.constant 1 : index
    %c0_48 = arith.constant 0 : index
    %c0_49 = arith.constant 0 : index
    %56 = vector.load %arg7[%c1_47, %c0_48, %c0_49] : memref<4x16x32xf32, #tpu.memory_space<vmem>>, vector<1x16x32xf32>
    %57 = vector.shape_cast %56 : vector<1x16x32xf32> to vector<16x32xf32>
    %cst_50 = arith.constant dense<0.000000e+00> : vector<16x128xf32>
    %58 = tpu.matmul %57, %52, %cst_50 {dimension_numbers = #tpu.dot_dimension_numbers<[1], [0], [0], [1], [0, 0, 1, 1], [], []>} : vector<16x32xf32>, vector<32x128xf32>, vector<16x128xf32> -> vector<16x128xf32>
    %59 = arith.maximumf %55, %58 : vector<16x128xf32>
    %c2_51 = arith.constant 2 : index
    %c0_52 = arith.constant 0 : index
    %c0_53 = arith.constant 0 : index
    %60 = vector.load %arg7[%c2_51, %c0_52, %c0_53] : memref<4x16x32xf32, #tpu.memory_space<vmem>>, vector<1x16x32xf32>
    %61 = vector.shape_cast %60 : vector<1x16x32xf32> to vector<16x32xf32>
    %cst_54 = arith.constant dense<0.000000e+00> : vector<16x128xf32>
    %62 = tpu.matmul %61, %52, %cst_54 {dimension_numbers = #tpu.dot_dimension_numbers<[1], [0], [0], [1], [0, 0, 1, 1], [], []>} : vector<16x32xf32>, vector<32x128xf32>, vector<16x128xf32> -> vector<16x128xf32>
    %63 = arith.maximumf %59, %62 : vector<16x128xf32>
    %c3 = arith.constant 3 : index
    %c0_55 = arith.constant 0 : index
    %c0_56 = arith.constant 0 : index
    %64 = vector.load %arg7[%c3, %c0_55, %c0_56] : memref<4x16x32xf32, #tpu.memory_space<vmem>>, vector<1x16x32xf32>
    %65 = vector.shape_cast %64 : vector<1x16x32xf32> to vector<16x32xf32>
    %cst_57 = arith.constant dense<0.000000e+00> : vector<16x128xf32>
    %66 = tpu.matmul %65, %52, %cst_57 {dimension_numbers = #tpu.dot_dimension_numbers<[1], [0], [0], [1], [0, 0, 1, 1], [], []>} : vector<16x32xf32>, vector<32x128xf32>, vector<16x128xf32> -> vector<16x128xf32>
    %67 = arith.maximumf %63, %66 : vector<16x128xf32>
    %c0_58 = arith.constant 0 : index
    %c0_59 = arith.constant 0 : index
    %c0_60 = arith.constant 0 : index
    %68 = vector.load %arg8[%c0_58, %c0_59, %c0_60] : memref<4x128x64xf32, #tpu.memory_space<vmem>>, vector<1x128x64xf32>
    %69 = vector.shape_cast %68 : vector<1x128x64xf32> to vector<128x64xf32>
    %cst_61 = arith.constant dense<0.000000e+00> : vector<16x64xf32>
    %70 = tpu.matmul %67, %69, %cst_61 {dimension_numbers = #tpu.dot_dimension_numbers<[1], [0], [0], [1], [0, 0, 1, 1], [], []>} : vector<16x128xf32>, vector<128x64xf32>, vector<16x64xf32> -> vector<16x64xf32>
    %c1_62 = arith.constant 1 : index
    %c0_63 = arith.constant 0 : index
    %c0_64 = arith.constant 0 : index
    %71 = vector.load %arg8[%c1_62, %c0_63, %c0_64] : memref<4x128x64xf32, #tpu.memory_space<vmem>>, vector<1x128x64xf32>
    %72 = vector.shape_cast %71 : vector<1x128x64xf32> to vector<128x64xf32>
    %cst_65 = arith.constant dense<0.000000e+00> : vector<16x64xf32>
    %73 = tpu.matmul %67, %72, %cst_65 {dimension_numbers = #tpu.dot_dimension_numbers<[1], [0], [0], [1], [0, 0, 1, 1], [], []>} : vector<16x128xf32>, vector<128x64xf32>, vector<16x64xf32> -> vector<16x64xf32>
    %74 = arith.maximumf %70, %73 : vector<16x64xf32>
    %c2_66 = arith.constant 2 : index
    %c0_67 = arith.constant 0 : index
    %c0_68 = arith.constant 0 : index
    %75 = vector.load %arg8[%c2_66, %c0_67, %c0_68] : memref<4x128x64xf32, #tpu.memory_space<vmem>>, vector<1x128x64xf32>
    %76 = vector.shape_cast %75 : vector<1x128x64xf32> to vector<128x64xf32>
    %cst_69 = arith.constant dense<0.000000e+00> : vector<16x64xf32>
    %77 = tpu.matmul %67, %76, %cst_69 {dimension_numbers = #tpu.dot_dimension_numbers<[1], [0], [0], [1], [0, 0, 1, 1], [], []>} : vector<16x128xf32>, vector<128x64xf32>, vector<16x64xf32> -> vector<16x64xf32>
    %78 = arith.maximumf %74, %77 : vector<16x64xf32>
    %c3_70 = arith.constant 3 : index
    %c0_71 = arith.constant 0 : index
    %c0_72 = arith.constant 0 : index
    %79 = vector.load %arg8[%c3_70, %c0_71, %c0_72] : memref<4x128x64xf32, #tpu.memory_space<vmem>>, vector<1x128x64xf32>
    %80 = vector.shape_cast %79 : vector<1x128x64xf32> to vector<128x64xf32>
    %cst_73 = arith.constant dense<0.000000e+00> : vector<16x64xf32>
    %81 = tpu.matmul %67, %80, %cst_73 {dimension_numbers = #tpu.dot_dimension_numbers<[1], [0], [0], [1], [0, 0, 1, 1], [], []>} : vector<16x128xf32>, vector<128x64xf32>, vector<16x64xf32> -> vector<16x64xf32>
    %82 = arith.maximumf %78, %81 : vector<16x64xf32>
    %c0_74 = arith.constant 0 : index
    %c0_75 = arith.constant 0 : index
    %c0_76 = arith.constant 0 : index
    %83 = vector.load %arg9[%c0_74, %c0_75, %c0_76] : memref<3x16x16xf32, #tpu.memory_space<vmem>>, vector<1x16x16xf32>
    %84 = vector.shape_cast %83 : vector<1x16x16xf32> to vector<16x16xf32>
    %cst_77 = arith.constant dense<0.000000e+00> : vector<16x64xf32>
    %85 = tpu.matmul %84, %82, %cst_77 {dimension_numbers = #tpu.dot_dimension_numbers<[1], [0], [0], [1], [0, 0, 1, 1], [], []>} : vector<16x16xf32>, vector<16x64xf32>, vector<16x64xf32> -> vector<16x64xf32>
    %c0_78 = arith.constant 0 : index
    %c0_79 = arith.constant 0 : index
    %c0_80 = arith.constant 0 : index
    %86 = vector.load %arg10[%c0_78, %c0_79, %c0_80] : memref<3x64x256xf32, #tpu.memory_space<vmem>>, vector<1x64x256xf32>
    %87 = vector.shape_cast %86 : vector<1x64x256xf32> to vector<64x256xf32>
    %cst_81 = arith.constant dense<0.000000e+00> : vector<16x256xf32>
    %88 = tpu.matmul %85, %87, %cst_81 {dimension_numbers = #tpu.dot_dimension_numbers<[1], [0], [0], [1], [0, 0, 1, 1], [], []>} : vector<16x64xf32>, vector<64x256xf32>, vector<16x256xf32> -> vector<16x256xf32>
    %c1_82 = arith.constant 1 : index
    %c0_83 = arith.constant 0 : index
    %c0_84 = arith.constant 0 : index
    %89 = vector.load %arg9[%c1_82, %c0_83, %c0_84] : memref<3x16x16xf32, #tpu.memory_space<vmem>>, vector<1x16x16xf32>
    %90 = vector.shape_cast %89 : vector<1x16x16xf32> to vector<16x16xf32>
    %cst_85 = arith.constant dense<0.000000e+00> : vector<16x64xf32>
    %91 = tpu.matmul %90, %82, %cst_85 {dimension_numbers = #tpu.dot_dimension_numbers<[1], [0], [0], [1], [0, 0, 1, 1], [], []>} : vector<16x16xf32>, vector<16x64xf32>, vector<16x64xf32> -> vector<16x64xf32>
    %c1_86 = arith.constant 1 : index
    %c0_87 = arith.constant 0 : index
    %c0_88 = arith.constant 0 : index
    %92 = vector.load %arg10[%c1_86, %c0_87, %c0_88] : memref<3x64x256xf32, #tpu.memory_space<vmem>>, vector<1x64x256xf32>
    %93 = vector.shape_cast %92 : vector<1x64x256xf32> to vector<64x256xf32>
    %cst_89 = arith.constant dense<0.000000e+00> : vector<16x256xf32>
    %94 = tpu.matmul %91, %93, %cst_89 {dimension_numbers = #tpu.dot_dimension_numbers<[1], [0], [0], [1], [0, 0, 1, 1], [], []>} : vector<16x64xf32>, vector<64x256xf32>, vector<16x256xf32> -> vector<16x256xf32>
    %95 = arith.addf %88, %94 : vector<16x256xf32>
    %c2_90 = arith.constant 2 : index
    %c0_91 = arith.constant 0 : index
    %c0_92 = arith.constant 0 : index
    %96 = vector.load %arg9[%c2_90, %c0_91, %c0_92] : memref<3x16x16xf32, #tpu.memory_space<vmem>>, vector<1x16x16xf32>
    %97 = vector.shape_cast %96 : vector<1x16x16xf32> to vector<16x16xf32>
    %cst_93 = arith.constant dense<0.000000e+00> : vector<16x64xf32>
    %98 = tpu.matmul %97, %82, %cst_93 {dimension_numbers = #tpu.dot_dimension_numbers<[1], [0], [0], [1], [0, 0, 1, 1], [], []>} : vector<16x16xf32>, vector<16x64xf32>, vector<16x64xf32> -> vector<16x64xf32>
    %c2_94 = arith.constant 2 : index
    %c0_95 = arith.constant 0 : index
    %c0_96 = arith.constant 0 : index
    %99 = vector.load %arg10[%c2_94, %c0_95, %c0_96] : memref<3x64x256xf32, #tpu.memory_space<vmem>>, vector<1x64x256xf32>
    %100 = vector.shape_cast %99 : vector<1x64x256xf32> to vector<64x256xf32>
    %cst_97 = arith.constant dense<0.000000e+00> : vector<16x256xf32>
    %101 = tpu.matmul %98, %100, %cst_97 {dimension_numbers = #tpu.dot_dimension_numbers<[1], [0], [0], [1], [0, 0, 1, 1], [], []>} : vector<16x64xf32>, vector<64x256xf32>, vector<16x256xf32> -> vector<16x256xf32>
    %102 = arith.addf %95, %101 : vector<16x256xf32>
    %cst_98 = arith.constant dense<0.000000e+00> : vector<256xf32>
    %103 = vector.multi_reduction <add>, %102, %cst_98 [0] : vector<16x256xf32> to vector<256xf32>
    %104 = vector.shape_cast %103 : vector<256xf32> to vector<1x256xf32>
    %105 = arith.mulf %102, %102 : vector<16x256xf32>
    %cst_99 = arith.constant dense<0.000000e+00> : vector<256xf32>
    %106 = vector.multi_reduction <add>, %105, %cst_99 [0] : vector<16x256xf32> to vector<256xf32>
    %107 = vector.shape_cast %106 : vector<256xf32> to vector<1x256xf32>
    %c0_100 = arith.constant 0 : index
    %c0_101 = arith.constant 0 : index
    %108 = vector.load %arg11[%c0_100, %c0_101] : memref<256x32xf32, #tpu.memory_space<vmem>>, vector<256x32xf32>
    %cst_102 = arith.constant dense<0.000000e+00> : vector<1x32xf32>
    %109 = tpu.matmul %104, %108, %cst_102 {dimension_numbers = #tpu.dot_dimension_numbers<[1], [0], [0], [1], [0, 0, 1, 1], [], []>} : vector<1x256xf32>, vector<256x32xf32>, vector<1x32xf32> -> vector<1x32xf32>
    %c0_103 = arith.constant 0 : index
    %c0_104 = arith.constant 0 : index
    %110 = vector.load %arg11[%c0_103, %c0_104] : memref<256x32xf32, #tpu.memory_space<vmem>>, vector<256x32xf32>
    %cst_105 = arith.constant dense<0.000000e+00> : vector<1x32xf32>
    %111 = tpu.matmul %107, %110, %cst_105 {dimension_numbers = #tpu.dot_dimension_numbers<[1], [0], [0], [1], [0, 0, 1, 1], [], []>} : vector<1x256xf32>, vector<256x32xf32>, vector<1x32xf32> -> vector<1x32xf32>
    %112 = arith.mulf %109, %109 : vector<1x32xf32>
    %113 = arith.subf %111, %112 : vector<1x32xf32>
    %c0_106 = arith.constant 0 : index
    %c0_107 = arith.constant 0 : index
    %114 = vector.load %arg13[%c0_106, %c0_107] : memref<1x32xf32, #tpu.memory_space<vmem>>, vector<1x32xf32>
    %cst_108 = arith.constant 9.99999974E-6 : f32
    %115 = vector.broadcast %cst_108 : f32 to vector<1x32xf32>
    %116 = arith.addf %113, %115 : vector<1x32xf32>
    %117 = math.rsqrt %116 : vector<1x32xf32>
    %118 = arith.mulf %114, %117 : vector<1x32xf32>
    %c0_109 = arith.constant 0 : index
    %c0_110 = arith.constant 0 : index
    %119 = vector.load %arg14[%c0_109, %c0_110] : memref<1x32xf32, #tpu.memory_space<vmem>>, vector<1x32xf32>
    %120 = arith.mulf %109, %118 : vector<1x32xf32>
    %121 = arith.subf %119, %120 : vector<1x32xf32>
    %c0_111 = arith.constant 0 : index
    %c0_112 = arith.constant 0 : index
    %122 = vector.load %arg12[%c0_111, %c0_112] : memref<32x256xf32, #tpu.memory_space<vmem>>, vector<32x256xf32>
    %cst_113 = arith.constant dense<0.000000e+00> : vector<1x256xf32>
    %123 = tpu.matmul %118, %122, %cst_113 {dimension_numbers = #tpu.dot_dimension_numbers<[1], [0], [0], [1], [0, 0, 1, 1], [], []>} : vector<1x32xf32>, vector<32x256xf32>, vector<1x256xf32> -> vector<1x256xf32>
    %124 = vector.broadcast %123 : vector<1x256xf32> to vector<16x256xf32>
    %125 = arith.mulf %102, %124 : vector<16x256xf32>
    %c0_114 = arith.constant 0 : index
    %c0_115 = arith.constant 0 : index
    %126 = vector.load %arg12[%c0_114, %c0_115] : memref<32x256xf32, #tpu.memory_space<vmem>>, vector<32x256xf32>
    %cst_116 = arith.constant dense<0.000000e+00> : vector<1x256xf32>
    %127 = tpu.matmul %121, %126, %cst_116 {dimension_numbers = #tpu.dot_dimension_numbers<[1], [0], [0], [1], [0, 0, 1, 1], [], []>} : vector<1x32xf32>, vector<32x256xf32>, vector<1x256xf32> -> vector<1x256xf32>
    %128 = vector.broadcast %127 : vector<1x256xf32> to vector<16x256xf32>
    %129 = arith.addf %125, %128 : vector<16x256xf32>
    %cst_117 = arith.constant 0.000000e+00 : f32
    %130 = vector.broadcast %cst_117 : f32 to vector<16x256xf32>
    %131 = arith.cmpf oge, %129, %130 : vector<16x256xf32>
    %cst_118 = arith.constant 0.00999999977 : f32
    %132 = vector.broadcast %cst_118 : f32 to vector<16x256xf32>
    %133 = arith.mulf %132, %129 : vector<16x256xf32>
    %134 = arith.select %131, %129, %133 : vector<16x256xi1>, vector<16x256xf32>
    %c0_119 = arith.constant 0 : index
    %c0_120 = arith.constant 0 : index
    %c0_121 = arith.constant 0 : index
    %135 = vector.load %arg15[%c0_119, %c0_120, %c0_121] : memref<4x8x16xf32, #tpu.memory_space<vmem>>, vector<1x8x16xf32>
    %136 = vector.shape_cast %135 : vector<1x8x16xf32> to vector<8x16xf32>
    %cst_122 = arith.constant dense<0.000000e+00> : vector<8x256xf32>
    %137 = tpu.matmul %136, %134, %cst_122 {dimension_numbers = #tpu.dot_dimension_numbers<[1], [0], [0], [1], [0, 0, 1, 1], [], []>} : vector<8x16xf32>, vector<16x256xf32>, vector<8x256xf32> -> vector<8x256xf32>
    %c1_123 = arith.constant 1 : index
    %c0_124 = arith.constant 0 : index
    %c0_125 = arith.constant 0 : index
    %138 = vector.load %arg15[%c1_123, %c0_124, %c0_125] : memref<4x8x16xf32, #tpu.memory_space<vmem>>, vector<1x8x16xf32>
    %139 = vector.shape_cast %138 : vector<1x8x16xf32> to vector<8x16xf32>
    %cst_126 = arith.constant dense<0.000000e+00> : vector<8x256xf32>
    %140 = tpu.matmul %139, %134, %cst_126 {dimension_numbers = #tpu.dot_dimension_numbers<[1], [0], [0], [1], [0, 0, 1, 1], [], []>} : vector<8x16xf32>, vector<16x256xf32>, vector<8x256xf32> -> vector<8x256xf32>
    %141 = arith.maximumf %137, %140 : vector<8x256xf32>
    %c2_127 = arith.constant 2 : index
    %c0_128 = arith.constant 0 : index
    %c0_129 = arith.constant 0 : index
    %142 = vector.load %arg15[%c2_127, %c0_128, %c0_129] : memref<4x8x16xf32, #tpu.memory_space<vmem>>, vector<1x8x16xf32>
    %143 = vector.shape_cast %142 : vector<1x8x16xf32> to vector<8x16xf32>
    %cst_130 = arith.constant dense<0.000000e+00> : vector<8x256xf32>
    %144 = tpu.matmul %143, %134, %cst_130 {dimension_numbers = #tpu.dot_dimension_numbers<[1], [0], [0], [1], [0, 0, 1, 1], [], []>} : vector<8x16xf32>, vector<16x256xf32>, vector<8x256xf32> -> vector<8x256xf32>
    %145 = arith.maximumf %141, %144 : vector<8x256xf32>
    %c3_131 = arith.constant 3 : index
    %c0_132 = arith.constant 0 : index
    %c0_133 = arith.constant 0 : index
    %146 = vector.load %arg15[%c3_131, %c0_132, %c0_133] : memref<4x8x16xf32, #tpu.memory_space<vmem>>, vector<1x8x16xf32>
    %147 = vector.shape_cast %146 : vector<1x8x16xf32> to vector<8x16xf32>
    %cst_134 = arith.constant dense<0.000000e+00> : vector<8x256xf32>
    %148 = tpu.matmul %147, %134, %cst_134 {dimension_numbers = #tpu.dot_dimension_numbers<[1], [0], [0], [1], [0, 0, 1, 1], [], []>} : vector<8x16xf32>, vector<16x256xf32>, vector<8x256xf32> -> vector<8x256xf32>
    %149 = arith.maximumf %145, %148 : vector<8x256xf32>
    %c0_135 = arith.constant 0 : index
    %c0_136 = arith.constant 0 : index
    %c0_137 = arith.constant 0 : index
    %150 = vector.load %arg16[%c0_135, %c0_136, %c0_137] : memref<4x256x128xf32, #tpu.memory_space<vmem>>, vector<1x256x128xf32>
    %151 = vector.shape_cast %150 : vector<1x256x128xf32> to vector<256x128xf32>
    %cst_138 = arith.constant dense<0.000000e+00> : vector<8x128xf32>
    %152 = tpu.matmul %149, %151, %cst_138 {dimension_numbers = #tpu.dot_dimension_numbers<[1], [0], [0], [1], [0, 0, 1, 1], [], []>} : vector<8x256xf32>, vector<256x128xf32>, vector<8x128xf32> -> vector<8x128xf32>
    %c1_139 = arith.constant 1 : index
    %c0_140 = arith.constant 0 : index
    %c0_141 = arith.constant 0 : index
    %153 = vector.load %arg16[%c1_139, %c0_140, %c0_141] : memref<4x256x128xf32, #tpu.memory_space<vmem>>, vector<1x256x128xf32>
    %154 = vector.shape_cast %153 : vector<1x256x128xf32> to vector<256x128xf32>
    %cst_142 = arith.constant dense<0.000000e+00> : vector<8x128xf32>
    %155 = tpu.matmul %149, %154, %cst_142 {dimension_numbers = #tpu.dot_dimension_numbers<[1], [0], [0], [1], [0, 0, 1, 1], [], []>} : vector<8x256xf32>, vector<256x128xf32>, vector<8x128xf32> -> vector<8x128xf32>
    %156 = arith.maximumf %152, %155 : vector<8x128xf32>
    %c2_143 = arith.constant 2 : index
    %c0_144 = arith.constant 0 : index
    %c0_145 = arith.constant 0 : index
    %157 = vector.load %arg16[%c2_143, %c0_144, %c0_145] : memref<4x256x128xf32, #tpu.memory_space<vmem>>, vector<1x256x128xf32>
    %158 = vector.shape_cast %157 : vector<1x256x128xf32> to vector<256x128xf32>
    %cst_146 = arith.constant dense<0.000000e+00> : vector<8x128xf32>
    %159 = tpu.matmul %149, %158, %cst_146 {dimension_numbers = #tpu.dot_dimension_numbers<[1], [0], [0], [1], [0, 0, 1, 1], [], []>} : vector<8x256xf32>, vector<256x128xf32>, vector<8x128xf32> -> vector<8x128xf32>
    %160 = arith.maximumf %156, %159 : vector<8x128xf32>
    %c3_147 = arith.constant 3 : index
    %c0_148 = arith.constant 0 : index
    %c0_149 = arith.constant 0 : index
    %161 = vector.load %arg16[%c3_147, %c0_148, %c0_149] : memref<4x256x128xf32, #tpu.memory_space<vmem>>, vector<1x256x128xf32>
    %162 = vector.shape_cast %161 : vector<1x256x128xf32> to vector<256x128xf32>
    %cst_150 = arith.constant dense<0.000000e+00> : vector<8x128xf32>
    %163 = tpu.matmul %149, %162, %cst_150 {dimension_numbers = #tpu.dot_dimension_numbers<[1], [0], [0], [1], [0, 0, 1, 1], [], []>} : vector<8x256xf32>, vector<256x128xf32>, vector<8x128xf32> -> vector<8x128xf32>
    %164 = arith.maximumf %160, %163 : vector<8x128xf32>
    %c0_151 = arith.constant 0 : index
    %c0_152 = arith.constant 0 : index
    %c0_153 = arith.constant 0 : index
    %165 = vector.load %arg17[%c0_151, %c0_152, %c0_153] : memref<3x8x8xf32, #tpu.memory_space<vmem>>, vector<1x8x8xf32>
    %166 = vector.shape_cast %165 : vector<1x8x8xf32> to vector<8x8xf32>
    %cst_154 = arith.constant dense<0.000000e+00> : vector<8x128xf32>
    %167 = tpu.matmul %166, %164, %cst_154 {dimension_numbers = #tpu.dot_dimension_numbers<[1], [0], [0], [1], [0, 0, 1, 1], [], []>} : vector<8x8xf32>, vector<8x128xf32>, vector<8x128xf32> -> vector<8x128xf32>
    %c0_155 = arith.constant 0 : index
    %c0_156 = arith.constant 0 : index
    %c0_157 = arith.constant 0 : index
    %168 = vector.load %arg18[%c0_155, %c0_156, %c0_157] : memref<3x128x256xf32, #tpu.memory_space<vmem>>, vector<1x128x256xf32>
    %169 = vector.shape_cast %168 : vector<1x128x256xf32> to vector<128x256xf32>
    %cst_158 = arith.constant dense<0.000000e+00> : vector<8x256xf32>
    %170 = tpu.matmul %167, %169, %cst_158 {dimension_numbers = #tpu.dot_dimension_numbers<[1], [0], [0], [1], [0, 0, 1, 1], [], []>} : vector<8x128xf32>, vector<128x256xf32>, vector<8x256xf32> -> vector<8x256xf32>
    %c1_159 = arith.constant 1 : index
    %c0_160 = arith.constant 0 : index
    %c0_161 = arith.constant 0 : index
    %171 = vector.load %arg17[%c1_159, %c0_160, %c0_161] : memref<3x8x8xf32, #tpu.memory_space<vmem>>, vector<1x8x8xf32>
    %172 = vector.shape_cast %171 : vector<1x8x8xf32> to vector<8x8xf32>
    %cst_162 = arith.constant dense<0.000000e+00> : vector<8x128xf32>
    %173 = tpu.matmul %172, %164, %cst_162 {dimension_numbers = #tpu.dot_dimension_numbers<[1], [0], [0], [1], [0, 0, 1, 1], [], []>} : vector<8x8xf32>, vector<8x128xf32>, vector<8x128xf32> -> vector<8x128xf32>
    %c1_163 = arith.constant 1 : index
    %c0_164 = arith.constant 0 : index
    %c0_165 = arith.constant 0 : index
    %174 = vector.load %arg18[%c1_163, %c0_164, %c0_165] : memref<3x128x256xf32, #tpu.memory_space<vmem>>, vector<1x128x256xf32>
    %175 = vector.shape_cast %174 : vector<1x128x256xf32> to vector<128x256xf32>
    %cst_166 = arith.constant dense<0.000000e+00> : vector<8x256xf32>
    %176 = tpu.matmul %173, %175, %cst_166 {dimension_numbers = #tpu.dot_dimension_numbers<[1], [0], [0], [1], [0, 0, 1, 1], [], []>} : vector<8x128xf32>, vector<128x256xf32>, vector<8x256xf32> -> vector<8x256xf32>
    %177 = arith.addf %170, %176 : vector<8x256xf32>
    %c2_167 = arith.constant 2 : index
    %c0_168 = arith.constant 0 : index
    %c0_169 = arith.constant 0 : index
    %178 = vector.load %arg17[%c2_167, %c0_168, %c0_169] : memref<3x8x8xf32, #tpu.memory_space<vmem>>, vector<1x8x8xf32>
    %179 = vector.shape_cast %178 : vector<1x8x8xf32> to vector<8x8xf32>
    %cst_170 = arith.constant dense<0.000000e+00> : vector<8x128xf32>
    %180 = tpu.matmul %179, %164, %cst_170 {dimension_numbers = #tpu.dot_dimension_numbers<[1], [0], [0], [1], [0, 0, 1, 1], [], []>} : vector<8x8xf32>, vector<8x128xf32>, vector<8x128xf32> -> vector<8x128xf32>
    %c2_171 = arith.constant 2 : index
    %c0_172 = arith.constant 0 : index
    %c0_173 = arith.constant 0 : index
    %181 = vector.load %arg18[%c2_171, %c0_172, %c0_173] : memref<3x128x256xf32, #tpu.memory_space<vmem>>, vector<1x128x256xf32>
    %182 = vector.shape_cast %181 : vector<1x128x256xf32> to vector<128x256xf32>
    %cst_174 = arith.constant dense<0.000000e+00> : vector<8x256xf32>
    %183 = tpu.matmul %180, %182, %cst_174 {dimension_numbers = #tpu.dot_dimension_numbers<[1], [0], [0], [1], [0, 0, 1, 1], [], []>} : vector<8x128xf32>, vector<128x256xf32>, vector<8x256xf32> -> vector<8x256xf32>
    %184 = arith.addf %177, %183 : vector<8x256xf32>
    %cst_175 = arith.constant dense<0.000000e+00> : vector<256xf32>
    %185 = vector.multi_reduction <add>, %184, %cst_175 [0] : vector<8x256xf32> to vector<256xf32>
    %186 = vector.shape_cast %185 : vector<256xf32> to vector<1x256xf32>
    %187 = arith.mulf %184, %184 : vector<8x256xf32>
    %cst_176 = arith.constant dense<0.000000e+00> : vector<256xf32>
    %188 = vector.multi_reduction <add>, %187, %cst_176 [0] : vector<8x256xf32> to vector<256xf32>
    %189 = vector.shape_cast %188 : vector<256xf32> to vector<1x256xf32>
    %c0_177 = arith.constant 0 : index
    %c0_178 = arith.constant 0 : index
    %190 = vector.load %arg19[%c0_177, %c0_178] : memref<256x64xf32, #tpu.memory_space<vmem>>, vector<256x64xf32>
    %cst_179 = arith.constant dense<0.000000e+00> : vector<1x64xf32>
    %191 = tpu.matmul %186, %190, %cst_179 {dimension_numbers = #tpu.dot_dimension_numbers<[1], [0], [0], [1], [0, 0, 1, 1], [], []>} : vector<1x256xf32>, vector<256x64xf32>, vector<1x64xf32> -> vector<1x64xf32>
    %c0_180 = arith.constant 0 : index
    %c0_181 = arith.constant 0 : index
    %192 = vector.load %arg19[%c0_180, %c0_181] : memref<256x64xf32, #tpu.memory_space<vmem>>, vector<256x64xf32>
    %cst_182 = arith.constant dense<0.000000e+00> : vector<1x64xf32>
    %193 = tpu.matmul %189, %192, %cst_182 {dimension_numbers = #tpu.dot_dimension_numbers<[1], [0], [0], [1], [0, 0, 1, 1], [], []>} : vector<1x256xf32>, vector<256x64xf32>, vector<1x64xf32> -> vector<1x64xf32>
    %194 = arith.mulf %191, %191 : vector<1x64xf32>
    %195 = arith.subf %193, %194 : vector<1x64xf32>
    %c0_183 = arith.constant 0 : index
    %c0_184 = arith.constant 0 : index
    %196 = vector.load %arg21[%c0_183, %c0_184] : memref<1x64xf32, #tpu.memory_space<vmem>>, vector<1x64xf32>
    %cst_185 = arith.constant 9.99999974E-6 : f32
    %197 = vector.broadcast %cst_185 : f32 to vector<1x64xf32>
    %198 = arith.addf %195, %197 : vector<1x64xf32>
    %199 = math.rsqrt %198 : vector<1x64xf32>
    %200 = arith.mulf %196, %199 : vector<1x64xf32>
    %c0_186 = arith.constant 0 : index
    %c0_187 = arith.constant 0 : index
    %201 = vector.load %arg22[%c0_186, %c0_187] : memref<1x64xf32, #tpu.memory_space<vmem>>, vector<1x64xf32>
    %202 = arith.mulf %191, %200 : vector<1x64xf32>
    %203 = arith.subf %201, %202 : vector<1x64xf32>
    %c0_188 = arith.constant 0 : index
    %c0_189 = arith.constant 0 : index
    %204 = vector.load %arg20[%c0_188, %c0_189] : memref<64x256xf32, #tpu.memory_space<vmem>>, vector<64x256xf32>
    %cst_190 = arith.constant dense<0.000000e+00> : vector<1x256xf32>
    %205 = tpu.matmul %200, %204, %cst_190 {dimension_numbers = #tpu.dot_dimension_numbers<[1], [0], [0], [1], [0, 0, 1, 1], [], []>} : vector<1x64xf32>, vector<64x256xf32>, vector<1x256xf32> -> vector<1x256xf32>
    %206 = vector.broadcast %205 : vector<1x256xf32> to vector<8x256xf32>
    %207 = arith.mulf %184, %206 : vector<8x256xf32>
    %c0_191 = arith.constant 0 : index
    %c0_192 = arith.constant 0 : index
    %208 = vector.load %arg20[%c0_191, %c0_192] : memref<64x256xf32, #tpu.memory_space<vmem>>, vector<64x256xf32>
    %cst_193 = arith.constant dense<0.000000e+00> : vector<1x256xf32>
    %209 = tpu.matmul %203, %208, %cst_193 {dimension_numbers = #tpu.dot_dimension_numbers<[1], [0], [0], [1], [0, 0, 1, 1], [], []>} : vector<1x64xf32>, vector<64x256xf32>, vector<1x256xf32> -> vector<1x256xf32>
    %210 = vector.broadcast %209 : vector<1x256xf32> to vector<8x256xf32>
    %211 = arith.addf %207, %210 : vector<8x256xf32>
    %cst_194 = arith.constant 0.000000e+00 : f32
    %212 = vector.broadcast %cst_194 : f32 to vector<8x256xf32>
    %213 = arith.cmpf oge, %211, %212 : vector<8x256xf32>
    %cst_195 = arith.constant 0.00999999977 : f32
    %214 = vector.broadcast %cst_195 : f32 to vector<8x256xf32>
    %215 = arith.mulf %214, %211 : vector<8x256xf32>
    %216 = arith.select %213, %211, %215 : vector<8x256xi1>, vector<8x256xf32>
    %c0_196 = arith.constant 0 : index
    %c0_197 = arith.constant 0 : index
    %c0_198 = arith.constant 0 : index
    %217 = vector.load %arg23[%c0_196, %c0_197, %c0_198] : memref<4x4x8xf32, #tpu.memory_space<vmem>>, vector<1x4x8xf32>
    %218 = vector.shape_cast %217 : vector<1x4x8xf32> to vector<4x8xf32>
    %cst_199 = arith.constant dense<0.000000e+00> : vector<4x256xf32>
    %219 = tpu.matmul %218, %216, %cst_199 {dimension_numbers = #tpu.dot_dimension_numbers<[1], [0], [0], [1], [0, 0, 1, 1], [], []>} : vector<4x8xf32>, vector<8x256xf32>, vector<4x256xf32> -> vector<4x256xf32>
    %c1_200 = arith.constant 1 : index
    %c0_201 = arith.constant 0 : index
    %c0_202 = arith.constant 0 : index
    %220 = vector.load %arg23[%c1_200, %c0_201, %c0_202] : memref<4x4x8xf32, #tpu.memory_space<vmem>>, vector<1x4x8xf32>
    %221 = vector.shape_cast %220 : vector<1x4x8xf32> to vector<4x8xf32>
    %cst_203 = arith.constant dense<0.000000e+00> : vector<4x256xf32>
    %222 = tpu.matmul %221, %216, %cst_203 {dimension_numbers = #tpu.dot_dimension_numbers<[1], [0], [0], [1], [0, 0, 1, 1], [], []>} : vector<4x8xf32>, vector<8x256xf32>, vector<4x256xf32> -> vector<4x256xf32>
    %223 = arith.maximumf %219, %222 : vector<4x256xf32>
    %c2_204 = arith.constant 2 : index
    %c0_205 = arith.constant 0 : index
    %c0_206 = arith.constant 0 : index
    %224 = vector.load %arg23[%c2_204, %c0_205, %c0_206] : memref<4x4x8xf32, #tpu.memory_space<vmem>>, vector<1x4x8xf32>
    %225 = vector.shape_cast %224 : vector<1x4x8xf32> to vector<4x8xf32>
    %cst_207 = arith.constant dense<0.000000e+00> : vector<4x256xf32>
    %226 = tpu.matmul %225, %216, %cst_207 {dimension_numbers = #tpu.dot_dimension_numbers<[1], [0], [0], [1], [0, 0, 1, 1], [], []>} : vector<4x8xf32>, vector<8x256xf32>, vector<4x256xf32> -> vector<4x256xf32>
    %227 = arith.maximumf %223, %226 : vector<4x256xf32>
    %c3_208 = arith.constant 3 : index
    %c0_209 = arith.constant 0 : index
    %c0_210 = arith.constant 0 : index
    %228 = vector.load %arg23[%c3_208, %c0_209, %c0_210] : memref<4x4x8xf32, #tpu.memory_space<vmem>>, vector<1x4x8xf32>
    %229 = vector.shape_cast %228 : vector<1x4x8xf32> to vector<4x8xf32>
    %cst_211 = arith.constant dense<0.000000e+00> : vector<4x256xf32>
    %230 = tpu.matmul %229, %216, %cst_211 {dimension_numbers = #tpu.dot_dimension_numbers<[1], [0], [0], [1], [0, 0, 1, 1], [], []>} : vector<4x8xf32>, vector<8x256xf32>, vector<4x256xf32> -> vector<4x256xf32>
    %231 = arith.maximumf %227, %230 : vector<4x256xf32>
    %c0_212 = arith.constant 0 : index
    %c0_213 = arith.constant 0 : index
    %c0_214 = arith.constant 0 : index
    %232 = vector.load %arg24[%c0_212, %c0_213, %c0_214] : memref<4x256x128xf32, #tpu.memory_space<vmem>>, vector<1x256x128xf32>
    %233 = vector.shape_cast %232 : vector<1x256x128xf32> to vector<256x128xf32>
    %cst_215 = arith.constant dense<0.000000e+00> : vector<4x128xf32>
    %234 = tpu.matmul %231, %233, %cst_215 {dimension_numbers = #tpu.dot_dimension_numbers<[1], [0], [0], [1], [0, 0, 1, 1], [], []>} : vector<4x256xf32>, vector<256x128xf32>, vector<4x128xf32> -> vector<4x128xf32>
    %c1_216 = arith.constant 1 : index
    %c0_217 = arith.constant 0 : index
    %c0_218 = arith.constant 0 : index
    %235 = vector.load %arg24[%c1_216, %c0_217, %c0_218] : memref<4x256x128xf32, #tpu.memory_space<vmem>>, vector<1x256x128xf32>
    %236 = vector.shape_cast %235 : vector<1x256x128xf32> to vector<256x128xf32>
    %cst_219 = arith.constant dense<0.000000e+00> : vector<4x128xf32>
    %237 = tpu.matmul %231, %236, %cst_219 {dimension_numbers = #tpu.dot_dimension_numbers<[1], [0], [0], [1], [0, 0, 1, 1], [], []>} : vector<4x256xf32>, vector<256x128xf32>, vector<4x128xf32> -> vector<4x128xf32>
    %238 = arith.maximumf %234, %237 : vector<4x128xf32>
    %c2_220 = arith.constant 2 : index
    %c0_221 = arith.constant 0 : index
    %c0_222 = arith.constant 0 : index
    %239 = vector.load %arg24[%c2_220, %c0_221, %c0_222] : memref<4x256x128xf32, #tpu.memory_space<vmem>>, vector<1x256x128xf32>
    %240 = vector.shape_cast %239 : vector<1x256x128xf32> to vector<256x128xf32>
    %cst_223 = arith.constant dense<0.000000e+00> : vector<4x128xf32>
    %241 = tpu.matmul %231, %240, %cst_223 {dimension_numbers = #tpu.dot_dimension_numbers<[1], [0], [0], [1], [0, 0, 1, 1], [], []>} : vector<4x256xf32>, vector<256x128xf32>, vector<4x128xf32> -> vector<4x128xf32>
    %242 = arith.maximumf %238, %241 : vector<4x128xf32>
    %c3_224 = arith.constant 3 : index
    %c0_225 = arith.constant 0 : index
    %c0_226 = arith.constant 0 : index
    %243 = vector.load %arg24[%c3_224, %c0_225, %c0_226] : memref<4x256x128xf32, #tpu.memory_space<vmem>>, vector<1x256x128xf32>
    %244 = vector.shape_cast %243 : vector<1x256x128xf32> to vector<256x128xf32>
    %cst_227 = arith.constant dense<0.000000e+00> : vector<4x128xf32>
    %245 = tpu.matmul %231, %244, %cst_227 {dimension_numbers = #tpu.dot_dimension_numbers<[1], [0], [0], [1], [0, 0, 1, 1], [], []>} : vector<4x256xf32>, vector<256x128xf32>, vector<4x128xf32> -> vector<4x128xf32>
    %246 = arith.maximumf %242, %245 : vector<4x128xf32>
    %c0_228 = arith.constant 0 : index
    %c0_229 = arith.constant 0 : index
    %c0_230 = arith.constant 0 : index
    %247 = vector.load %arg25[%c0_228, %c0_229, %c0_230] : memref<3x4x4xf32, #tpu.memory_space<vmem>>, vector<1x4x4xf32>
    %248 = vector.shape_cast %247 : vector<1x4x4xf32> to vector<4x4xf32>
    %cst_231 = arith.constant dense<0.000000e+00> : vector<4x128xf32>
    %249 = tpu.matmul %248, %246, %cst_231 {dimension_numbers = #tpu.dot_dimension_numbers<[1], [0], [0], [1], [0, 0, 1, 1], [], []>} : vector<4x4xf32>, vector<4x128xf32>, vector<4x128xf32> -> vector<4x128xf32>
    %c0_232 = arith.constant 0 : index
    %c0_233 = arith.constant 0 : index
    %c0_234 = arith.constant 0 : index
    %250 = vector.load %arg26[%c0_232, %c0_233, %c0_234] : memref<3x128x128xf32, #tpu.memory_space<vmem>>, vector<1x128x128xf32>
    %251 = vector.shape_cast %250 : vector<1x128x128xf32> to vector<128x128xf32>
    %cst_235 = arith.constant dense<0.000000e+00> : vector<4x128xf32>
    %252 = tpu.matmul %249, %251, %cst_235 {dimension_numbers = #tpu.dot_dimension_numbers<[1], [0], [0], [1], [0, 0, 1, 1], [], []>} : vector<4x128xf32>, vector<128x128xf32>, vector<4x128xf32> -> vector<4x128xf32>
    %c1_236 = arith.constant 1 : index
    %c0_237 = arith.constant 0 : index
    %c0_238 = arith.constant 0 : index
    %253 = vector.load %arg25[%c1_236, %c0_237, %c0_238] : memref<3x4x4xf32, #tpu.memory_space<vmem>>, vector<1x4x4xf32>
    %254 = vector.shape_cast %253 : vector<1x4x4xf32> to vector<4x4xf32>
    %cst_239 = arith.constant dense<0.000000e+00> : vector<4x128xf32>
    %255 = tpu.matmul %254, %246, %cst_239 {dimension_numbers = #tpu.dot_dimension_numbers<[1], [0], [0], [1], [0, 0, 1, 1], [], []>} : vector<4x4xf32>, vector<4x128xf32>, vector<4x128xf32> -> vector<4x128xf32>
    %c1_240 = arith.constant 1 : index
    %c0_241 = arith.constant 0 : index
    %c0_242 = arith.constant 0 : index
    %256 = vector.load %arg26[%c1_240, %c0_241, %c0_242] : memref<3x128x128xf32, #tpu.memory_space<vmem>>, vector<1x128x128xf32>
    %257 = vector.shape_cast %256 : vector<1x128x128xf32> to vector<128x128xf32>
    %cst_243 = arith.constant dense<0.000000e+00> : vector<4x128xf32>
    %258 = tpu.matmul %255, %257, %cst_243 {dimension_numbers = #tpu.dot_dimension_numbers<[1], [0], [0], [1], [0, 0, 1, 1], [], []>} : vector<4x128xf32>, vector<128x128xf32>, vector<4x128xf32> -> vector<4x128xf32>
    %259 = arith.addf %252, %258 : vector<4x128xf32>
    %c2_244 = arith.constant 2 : index
    %c0_245 = arith.constant 0 : index
    %c0_246 = arith.constant 0 : index
    %260 = vector.load %arg25[%c2_244, %c0_245, %c0_246] : memref<3x4x4xf32, #tpu.memory_space<vmem>>, vector<1x4x4xf32>
    %261 = vector.shape_cast %260 : vector<1x4x4xf32> to vector<4x4xf32>
    %cst_247 = arith.constant dense<0.000000e+00> : vector<4x128xf32>
    %262 = tpu.matmul %261, %246, %cst_247 {dimension_numbers = #tpu.dot_dimension_numbers<[1], [0], [0], [1], [0, 0, 1, 1], [], []>} : vector<4x4xf32>, vector<4x128xf32>, vector<4x128xf32> -> vector<4x128xf32>
    %c2_248 = arith.constant 2 : index
    %c0_249 = arith.constant 0 : index
    %c0_250 = arith.constant 0 : index
    %263 = vector.load %arg26[%c2_248, %c0_249, %c0_250] : memref<3x128x128xf32, #tpu.memory_space<vmem>>, vector<1x128x128xf32>
    %264 = vector.shape_cast %263 : vector<1x128x128xf32> to vector<128x128xf32>
    %cst_251 = arith.constant dense<0.000000e+00> : vector<4x128xf32>
    %265 = tpu.matmul %262, %264, %cst_251 {dimension_numbers = #tpu.dot_dimension_numbers<[1], [0], [0], [1], [0, 0, 1, 1], [], []>} : vector<4x128xf32>, vector<128x128xf32>, vector<4x128xf32> -> vector<4x128xf32>
    %266 = arith.addf %259, %265 : vector<4x128xf32>
    %cst_252 = arith.constant dense<0.000000e+00> : vector<128xf32>
    %267 = vector.multi_reduction <add>, %266, %cst_252 [0] : vector<4x128xf32> to vector<128xf32>
    %268 = vector.shape_cast %267 : vector<128xf32> to vector<1x128xf32>
    %269 = arith.mulf %266, %266 : vector<4x128xf32>
    %cst_253 = arith.constant dense<0.000000e+00> : vector<128xf32>
    %270 = vector.multi_reduction <add>, %269, %cst_253 [0] : vector<4x128xf32> to vector<128xf32>
    %271 = vector.shape_cast %270 : vector<128xf32> to vector<1x128xf32>
    %c0_254 = arith.constant 0 : index
    %c0_255 = arith.constant 0 : index
    %272 = vector.load %arg27[%c0_254, %c0_255] : memref<128x64xf32, #tpu.memory_space<vmem>>, vector<128x64xf32>
    %cst_256 = arith.constant dense<0.000000e+00> : vector<1x64xf32>
    %273 = tpu.matmul %268, %272, %cst_256 {dimension_numbers = #tpu.dot_dimension_numbers<[1], [0], [0], [1], [0, 0, 1, 1], [], []>} : vector<1x128xf32>, vector<128x64xf32>, vector<1x64xf32> -> vector<1x64xf32>
    %c0_257 = arith.constant 0 : index
    %c0_258 = arith.constant 0 : index
    %274 = vector.load %arg27[%c0_257, %c0_258] : memref<128x64xf32, #tpu.memory_space<vmem>>, vector<128x64xf32>
    %cst_259 = arith.constant dense<0.000000e+00> : vector<1x64xf32>
    %275 = tpu.matmul %271, %274, %cst_259 {dimension_numbers = #tpu.dot_dimension_numbers<[1], [0], [0], [1], [0, 0, 1, 1], [], []>} : vector<1x128xf32>, vector<128x64xf32>, vector<1x64xf32> -> vector<1x64xf32>
    %276 = arith.mulf %273, %273 : vector<1x64xf32>
    %277 = arith.subf %275, %276 : vector<1x64xf32>
    %c0_260 = arith.constant 0 : index
    %c0_261 = arith.constant 0 : index
    %278 = vector.load %arg29[%c0_260, %c0_261] : memref<1x64xf32, #tpu.memory_space<vmem>>, vector<1x64xf32>
    %cst_262 = arith.constant 9.99999974E-6 : f32
    %279 = vector.broadcast %cst_262 : f32 to vector<1x64xf32>
    %280 = arith.addf %277, %279 : vector<1x64xf32>
    %281 = math.rsqrt %280 : vector<1x64xf32>
    %282 = arith.mulf %278, %281 : vector<1x64xf32>
    %c0_263 = arith.constant 0 : index
    %c0_264 = arith.constant 0 : index
    %283 = vector.load %arg30[%c0_263, %c0_264] : memref<1x64xf32, #tpu.memory_space<vmem>>, vector<1x64xf32>
    %284 = arith.mulf %273, %282 : vector<1x64xf32>
    %285 = arith.subf %283, %284 : vector<1x64xf32>
    %c0_265 = arith.constant 0 : index
    %c0_266 = arith.constant 0 : index
    %286 = vector.load %arg28[%c0_265, %c0_266] : memref<64x128xf32, #tpu.memory_space<vmem>>, vector<64x128xf32>
    %cst_267 = arith.constant dense<0.000000e+00> : vector<1x128xf32>
    %287 = tpu.matmul %282, %286, %cst_267 {dimension_numbers = #tpu.dot_dimension_numbers<[1], [0], [0], [1], [0, 0, 1, 1], [], []>} : vector<1x64xf32>, vector<64x128xf32>, vector<1x128xf32> -> vector<1x128xf32>
    %288 = vector.broadcast %287 : vector<1x128xf32> to vector<4x128xf32>
    %289 = arith.mulf %266, %288 : vector<4x128xf32>
    %c0_268 = arith.constant 0 : index
    %c0_269 = arith.constant 0 : index
    %290 = vector.load %arg28[%c0_268, %c0_269] : memref<64x128xf32, #tpu.memory_space<vmem>>, vector<64x128xf32>
    %cst_270 = arith.constant dense<0.000000e+00> : vector<1x128xf32>
    %291 = tpu.matmul %285, %290, %cst_270 {dimension_numbers = #tpu.dot_dimension_numbers<[1], [0], [0], [1], [0, 0, 1, 1], [], []>} : vector<1x64xf32>, vector<64x128xf32>, vector<1x128xf32> -> vector<1x128xf32>
    %292 = vector.broadcast %291 : vector<1x128xf32> to vector<4x128xf32>
    %293 = arith.addf %289, %292 : vector<4x128xf32>
    %cst_271 = arith.constant 0.000000e+00 : f32
    %294 = vector.broadcast %cst_271 : f32 to vector<4x128xf32>
    %295 = arith.cmpf oge, %293, %294 : vector<4x128xf32>
    %cst_272 = arith.constant 0.00999999977 : f32
    %296 = vector.broadcast %cst_272 : f32 to vector<4x128xf32>
    %297 = arith.mulf %296, %293 : vector<4x128xf32>
    %298 = arith.select %295, %293, %297 : vector<4x128xi1>, vector<4x128xf32>
    %c0_273 = arith.constant 0 : index
    %c0_274 = arith.constant 0 : index
    %c0_275 = arith.constant 0 : index
    %299 = vector.load %arg31[%c0_273, %c0_274, %c0_275] : memref<2x2x4xf32, #tpu.memory_space<vmem>>, vector<1x2x4xf32>
    %300 = vector.shape_cast %299 : vector<1x2x4xf32> to vector<2x4xf32>
    %cst_276 = arith.constant dense<0.000000e+00> : vector<2x128xf32>
    %301 = tpu.matmul %300, %298, %cst_276 {dimension_numbers = #tpu.dot_dimension_numbers<[1], [0], [0], [1], [0, 0, 1, 1], [], []>} : vector<2x4xf32>, vector<4x128xf32>, vector<2x128xf32> -> vector<2x128xf32>
    %c1_277 = arith.constant 1 : index
    %c0_278 = arith.constant 0 : index
    %c0_279 = arith.constant 0 : index
    %302 = vector.load %arg31[%c1_277, %c0_278, %c0_279] : memref<2x2x4xf32, #tpu.memory_space<vmem>>, vector<1x2x4xf32>
    %303 = vector.shape_cast %302 : vector<1x2x4xf32> to vector<2x4xf32>
    %cst_280 = arith.constant dense<0.000000e+00> : vector<2x128xf32>
    %304 = tpu.matmul %303, %298, %cst_280 {dimension_numbers = #tpu.dot_dimension_numbers<[1], [0], [0], [1], [0, 0, 1, 1], [], []>} : vector<2x4xf32>, vector<4x128xf32>, vector<2x128xf32> -> vector<2x128xf32>
    %305 = arith.maximumf %301, %304 : vector<2x128xf32>
    %c0_281 = arith.constant 0 : index
    %c0_282 = arith.constant 0 : index
    %c0_283 = arith.constant 0 : index
    %306 = vector.load %arg32[%c0_281, %c0_282, %c0_283] : memref<2x128x64xf32, #tpu.memory_space<vmem>>, vector<1x128x64xf32>
    %307 = vector.shape_cast %306 : vector<1x128x64xf32> to vector<128x64xf32>
    %cst_284 = arith.constant dense<0.000000e+00> : vector<2x64xf32>
    %308 = tpu.matmul %305, %307, %cst_284 {dimension_numbers = #tpu.dot_dimension_numbers<[1], [0], [0], [1], [0, 0, 1, 1], [], []>} : vector<2x128xf32>, vector<128x64xf32>, vector<2x64xf32> -> vector<2x64xf32>
    %c1_285 = arith.constant 1 : index
    %c0_286 = arith.constant 0 : index
    %c0_287 = arith.constant 0 : index
    %309 = vector.load %arg32[%c1_285, %c0_286, %c0_287] : memref<2x128x64xf32, #tpu.memory_space<vmem>>, vector<1x128x64xf32>
    %310 = vector.shape_cast %309 : vector<1x128x64xf32> to vector<128x64xf32>
    %cst_288 = arith.constant dense<0.000000e+00> : vector<2x64xf32>
    %311 = tpu.matmul %305, %310, %cst_288 {dimension_numbers = #tpu.dot_dimension_numbers<[1], [0], [0], [1], [0, 0, 1, 1], [], []>} : vector<2x128xf32>, vector<128x64xf32>, vector<2x64xf32> -> vector<2x64xf32>
    %312 = arith.maximumf %308, %311 : vector<2x64xf32>
    %c0_289 = arith.constant 0 : index
    %c0_290 = arith.constant 0 : index
    %313 = vector.load %arg33[%c0_289, %c0_290] : memref<64x32xf32, #tpu.memory_space<vmem>>, vector<64x32xf32>
    %cst_291 = arith.constant dense<0.000000e+00> : vector<2x32xf32>
    %314 = tpu.matmul %312, %313, %cst_291 {dimension_numbers = #tpu.dot_dimension_numbers<[1], [0], [0], [1], [0, 0, 1, 1], [], []>} : vector<2x64xf32>, vector<64x32xf32>, vector<2x32xf32> -> vector<2x32xf32>
    %c0_292 = arith.constant 0 : index
    %c0_293 = arith.constant 0 : index
    %315 = vector.load %arg34[%c0_292, %c0_293] : memref<1x32xf32, #tpu.memory_space<vmem>>, vector<1x32xf32>
    %316 = vector.broadcast %315 : vector<1x32xf32> to vector<2x32xf32>
    %317 = arith.addf %314, %316 : vector<2x32xf32>
    %318 = math.tanh %317 : vector<2x32xf32>
    %c0_294 = arith.constant 0 : index
    %c0_295 = arith.constant 0 : index
    %319 = vector.load %arg35[%c0_294, %c0_295] : memref<2x32xf32, #tpu.memory_space<vmem>>, vector<2x32xf32>
    tpu.vector_store %arg35[%c0_294, %c0_295], %318 {strides = array<i32>} : memref<2x32xf32, #tpu.memory_space<vmem>>, vector<2x32xf32>,
    return
  }
}

</mosaic_0001>

<bundles_post_ra>
// kernel: model_e_forward.1
= control target key start
LH: loop header
LB: loop body
LE: loop exit
PB: predicated region body
PF: predicated region fallthrough
CT: control target
= control target key end

     0   :  { %s4137_s6 = smov 1   ;;  %s4138_s10 = smov 2   ;;  %s5268_s0 = inlined_call_operand.smem [shape: u32[36], index: -1, kind: input, shape index: {}] }
   0x1   :  { %s4181_s5 = sld [smem:[%s5268_s0]]   ;;  %s4139_s14 = smov 3  }
   0x2   :  { %s4186_s9 = sld [smem:[%s5268_s0 + %s4137_s6]]   ;;  %s4140_s18 = smov 4  }
   0x3   :  { %s4191_s13 = sld [smem:[%s5268_s0 + %s4138_s10]]   ;;  %s4141_s22 = smov 5  }
   0x4   :  { %s4196_s17 = sld [smem:[%s5268_s0 + %s4139_s14]]   ;;  %s4142_s26 = smov 6  }
   0x5   :  { %s4201_s21 = sld [smem:[%s5268_s0 + %s4140_s18]]   ;;  %s4143_s30 = smov 7  }
   0x6   :  { %s4206_s25 = sld [smem:[%s5268_s0 + %s4141_s22]]   ;;  %s4144_s4 = smov 8  }
   0x7   :  { %s4211_s29 = sld [smem:[%s5268_s0 + %s4142_s26]]   ;;  %s4145_s10 = smov 9  }
   0x8   :  { %s4216_s3 = sld [smem:[%s5268_s0 + %s4143_s30]]   ;;  %s4146_s15 = smov 10  }
   0x9   :  { %s4221_s8 = sld [smem:[%s5268_s0 + %s4144_s4]]   ;;  %s4147_s20 = smov 11  }
   0xa   :  { %s4226_s14 = sld [smem:[%s5268_s0 + %s4145_s10]]   ;;  %s4148_s26 = smov 12  }
   0xb   :  { %s4231_s19 = sld [smem:[%s5268_s0 + %s4146_s15]]   ;;  %s4149_s1 = smov 13  }
   0xc   :  { %s4236_s24 = sld [smem:[%s5268_s0 + %s4147_s20]]   ;;  %s4150_s7 = smov 14  }
   0xd   :  { %s4241_s30 = sld [smem:[%s5268_s0 + %s4148_s26]]   ;;  %s4151_s15 = smov 15  }
   0xe   :  { %s4246_s6 = sld [smem:[%s5268_s0 + %s4149_s1]]   ;;  %s4152_s22 = smov 16  }
   0xf   :  { %s4251_s12 = sld [smem:[%s5268_s0 + %s4150_s7]]   ;;  %s4153_s28 = smov 17  }
  0x10   :  { %s4256_s20 = sld [smem:[%s5268_s0 + %s4151_s15]]   ;;  %s4154_s7 = smov 18  }
  0x11   :  { %s4261_s27 = sld [smem:[%s5268_s0 + %s4152_s22]]   ;;  %s4155_s15 = smov 19  }
  0x12   :  { %s4266_s4 = sld [smem:[%s5268_s0 + %s4153_s28]]   ;;  %s4156_s22 = smov 20  }
  0x13   :  { %s4157_s28 = smov 21  }
  0x15   :  { %5282 = sst [smem:[#allocation5_spill]] %s4251_s12 }
  0x16   :  { %5283 = sst [smem:[#allocation6_spill]] %s4256_s20 }
  0x17   :  { %5284 = sst [smem:[#allocation7_spill]] %s4261_s27 }
  0x18   :  { %5285 = sst [smem:[#allocation8_spill]] %s4266_s4 }
  0x19   :  { %s4271_s12 = sld [smem:[%s5268_s0 + %s4154_s7]]   ;;  %s4158_s7 = smov 22  }
  0x1a   :  { %s4276_s20 = sld [smem:[%s5268_s0 + %s4155_s15]]   ;;  %s4159_s15 = smov 23  }
  0x1b   :  { %s4281_s27 = sld [smem:[%s5268_s0 + %s4156_s22]]   ;;  %s4160_s22 = smov 24  }
  0x1c   :  { %s4286_s4 = sld [smem:[%s5268_s0 + %s4157_s28]]   ;;  %s4161_s28 = smov 25  }
  0x1f   :  { %5286 = sst [smem:[#allocation9_spill]] %s4271_s12 }
  0x20   :  { %5287 = sst [smem:[#allocation10_spill]] %s4276_s20 }
  0x21   :  { %5288 = sst [smem:[#allocation11_spill]] %s4281_s27 }
  0x22   :  { %5289 = sst [smem:[#allocation12_spill]] %s4286_s4 }
  0x23   :  { %s4291_s12 = sld [smem:[%s5268_s0 + %s4158_s7]]   ;;  %s4162_s7 = smov 26  }
  0x24   :  { %s4296_s20 = sld [smem:[%s5268_s0 + %s4159_s15]]   ;;  %s4163_s15 = smov 27  }
  0x25   :  { %s4301_s27 = sld [smem:[%s5268_s0 + %s4160_s22]]   ;;  %s4164_s22 = smov 28  }
  0x26   :  { %s4306_s4 = sld [smem:[%s5268_s0 + %s4161_s28]]   ;;  %s4165_s28 = smov 29  }
  0x29   :  { %5290 = sst [smem:[#allocation13_spill]] %s4291_s12 }
  0x2a   :  { %5291 = sst [smem:[#allocation14_spill]] %s4296_s20 }
  0x2b   :  { %5292 = sst [smem:[#allocation15_spill]] %s4301_s27 }
  0x2c   :  { %5293 = sst [smem:[#allocation16_spill]] %s4306_s4 }
  0x2d   :  { %s4311_s12 = sld [smem:[%s5268_s0 + %s4162_s7]]   ;;  %s4166_s7 = smov 30  }
  0x2e   :  { %s4316_s20 = sld [smem:[%s5268_s0 + %s4163_s15]]   ;;  %s4167_s15 = smov 31  }
  0x2f   :  { %s4321_s27 = sld [smem:[%s5268_s0 + %s4164_s22]]   ;;  %s4168_s22 = smov 32  }
  0x30   :  { %s4326_s4 = sld [smem:[%s5268_s0 + %s4165_s28]]   ;;  %s4169_s28 = smov 33  }
  0x33   :  { %5294 = sst [smem:[#allocation17_spill]] %s4311_s12 }
  0x34   :  { %5295 = sst [smem:[#allocation18_spill]] %s4316_s20 }
  0x35   :  { %5296 = sst [smem:[#allocation19_spill]] %s4321_s27 }
  0x36   :  { %5297 = sst [smem:[#allocation20_spill]] %s4326_s4 }
  0x37   :  { %s4331_s12 = sld [smem:[%s5268_s0 + %s4166_s7]]   ;;  %s4170_s7 = smov 34  }
  0x38   :  { %s4336_s20 = sld [smem:[%s5268_s0 + %s4167_s15]]   ;;  %s4171_s15 = smov 35  }
  0x39   :  { %s4341_s27 = sld [smem:[%s5268_s0 + %s4168_s22]]  }
  0x3a   :  { %s4346_s4 = sld [smem:[%s5268_s0 + %s4169_s28]]  }
  0x3d   :  { %5298 = sst [smem:[#allocation21_spill]] %s4331_s12 }
  0x3e   :  { %5299 = sst [smem:[#allocation22_spill]] %s4336_s20 }
  0x3f   :  { %s4351_s12 = sld [smem:[%s5268_s0 + %s4170_s7]]  }
  0x40   :  { %s4356_s20 = sld [smem:[%s5268_s0 + %s4171_s15]]  }
  0x41   :  { %v150_v0 = vld [vmem:[%s4181_s5 + $0x18] sm:$0xff]  ;;  %v149_v1 = vld [vmem:[%s4181_s5 + $0x10] sm:$0xff]  ;;  %v148_v2 = vld [vmem:[%s4181_s5 + $0x8] sm:$0xff]  ;;  %vm155_vm0 = vcmask 261120  }
  0x42   :  { %180 = vmatpush.msra.mxu0 %v150_v0  ;;  %228 = vmatpush.msra.mxu1 %v150_v0  ;;  %v147_v3 = vld [vmem:[%s4181_s5] sm:$0xff]  ;;  %v3568_v4 = vld [vmem:[%s4191_s13 + $0x18] sm:$0xff]  ;;  %v198_v5 = vld [vmem:[%s4191_s13 + $0x8] sm:$0xff] }
  0x43   :  { %v151_v6 = vld [vmem:[%s4186_s9] sm:$0xff] }
  0x44   :  { %181 = vmatpush.msra.mxu0 %v149_v1  ;;  %229 = vmatpush.msra.mxu1 %v149_v1  ;;  %v3559_v7 = vld [vmem:[%s4186_s9 + $0x20] sm:$0xff] }
  0x46   :  { %182 = vmatpush.msra.mxu0 %v148_v2  ;;  %230 = vmatpush.msra.mxu1 %v148_v2 }
  0x47   :  { %76 = vsyncpa [#allocation3], 0  ;;  %275 = vmatpush.msra.mxu2 %v3568_v4  ;;  %316 = vmatpush.msra.mxu3 %v198_v5  ;;  %v152_v8 = vld [vmem:[%s4186_s9 + $0x8] sm:$0xff]  ;;  %v153_v10 = vld [vmem:[%s4186_s9 + $0x10] sm:$0xff]  ;;  %vm248_vm1 = vcmask 130048   ;;  %vm522_vm5 = vcmask 64512  }
  0x48   :  { %183 = vmatpush.msra.mxu0 %v147_v3  ;;  %231 = vmatpush.msra.mxu1 %v147_v3  ;;  %v3560_v9 = vld [vmem:[%s4186_s9 + $0x28] sm:$0xff]  ;;  %v3561_v11 = vld [vmem:[%s4186_s9 + $0x30] sm:$0xff]  ;;  %v154_v12 = vld [vmem:[%s4186_s9 + $0x18] sm:$0xff]  ;;  %vm985_vm10 = vcmask 523264   ;;  %s5300_s0 = sld [smem:[#allocation5_spill]]  ;;  %s3511_s1 = sshll.u32 %s4356_s20, 4  ;;  %s3512_s1 = int_to_ptr.hbm [resolvable:$true] %s3511_s1 }
  0x49   :  { %3555 = vmatmul.msk.f32.vlgmr.msra.gmra.mxu0 %vm155_vm0, %v151_v6  ;;  %3563 = vmatmul.msk.f32.vlgmr.msra.gmra.mxu1 %vm155_vm0, %v3559_v7  ;;  %v3562_v13 = vld [vmem:[%s4186_s9 + $0x38] sm:$0xff]  ;;  %v3567_v14 = vld [vmem:[%s4191_s13 + $0x10] sm:$0xff]  ;;  %v197_v15 = vld [vmem:[%s4191_s13] sm:$0xff]  ;;  %s5301_s5 = sld [smem:[#allocation6_spill]]  ;;  %s4127_s7 = scalar_lea.hbm %s4356_s20, 2 }
  0x4a   :  { %276 = vmatpush.msra.mxu2 %v3567_v14  ;;  %317 = vmatpush.msra.mxu3 %v197_v15  ;;  %v3577_v24 = vld [vmem:[%s4186_s9 + $0x40] sm:$0xff]  ;;  %v3578_v25 = vld [vmem:[%s4186_s9 + $0x48] sm:$0xff]  ;;  %v3579_v26 = vld [vmem:[%s4186_s9 + $0x50] sm:$0xff]  ;;  %s5315_s22 = sld [smem:[#allocation20_spill]] }
  0x4b   :  { %v3580_v27 = vld [vmem:[%s4186_s9 + $0x58] sm:$0xff]  ;;  %v3586_v28 = vld [vmem:[%s4191_s13 + $0x28] sm:$0xff]  ;;  %v3585_v29 = vld [vmem:[%s4191_s13 + $0x20] sm:$0xff]  ;;  %s5302_s9 = sld [smem:[#allocation7_spill]] }
  0x4c   :  { %360 = vmatpush.msrb.mxu2 %v150_v0  ;;  %406 = vmatpush.msrb.mxu3 %v3586_v28  ;;  %v462_v40 = vld [vmem:[%s4196_s17 + $0x78] sm:$0xff]  ;;  %v461_v41 = vld [vmem:[%s4196_s17 + $0x70] sm:$0xff]  ;;  %v460_v42 = vld [vmem:[%s4196_s17 + $0x68] sm:$0xff]  ;;  %s5303_s13 = sld [smem:[#allocation9_spill]] }
  0x4d   :  { %463 = vmatpush.msrb.mxu0 %v462_v40  ;;  %483 = vmatpush.msrb.mxu1 %v462_v40  ;;  %v459_v44 = vld [vmem:[%s4196_s17 + $0x60] sm:$0xff]  ;;  %v458_v45 = vld [vmem:[%s4196_s17 + $0x58] sm:$0xff]  ;;  %v457_v46 = vld [vmem:[%s4196_s17 + $0x50] sm:$0xff]  ;;  %s5316_s23 = sld [smem:[#allocation21_spill]] }
  0x4e   :  { %361 = vmatpush.msrb.mxu2 %v149_v1  ;;  %407 = vmatpush.msrb.mxu3 %v3585_v29  ;;  %v456_v47 = vld [vmem:[%s4196_s17 + $0x48] sm:$0xff]  ;;  %v455_v48 = vld [vmem:[%s4196_s17 + $0x40] sm:$0xff]  ;;  %v454_v50 = vld [vmem:[%s4196_s17 + $0x38] sm:$0xff]  ;;  %s5317_s26 = sld [smem:[#allocation22_spill]] }
  0x4f   :  { %464 = vmatpush.msrb.mxu0 %v461_v41  ;;  %484 = vmatpush.msrb.mxu1 %v461_v41  ;;  %v453_v51 = vld [vmem:[%s4196_s17 + $0x30] sm:$0xff]  ;;  %v452_v52 = vld [vmem:[%s4196_s17 + $0x28] sm:$0xff]  ;;  %v451_v53 = vld [vmem:[%s4196_s17 + $0x20] sm:$0xff] }
  0x50   :  { %362 = vmatpush.msrb.mxu2 %v148_v2  ;;  %v450_v54 = vld [vmem:[%s4196_s17 + $0x18] sm:$0xff]  ;;  %v449_v56 = vld [vmem:[%s4196_s17 + $0x10] sm:$0xff]  ;;  %v448_v57 = vld [vmem:[%s4196_s17 + $0x8] sm:$0xff] }
  0x51   :  { %3556 = vmatmul.msk.f32.gmra.mxu0 %vm155_vm0, %v152_v8  ;;  %3564 = vmatmul.msk.f32.gmra.mxu1 %vm155_vm0, %v3560_v9  ;;  %v447_v58 = vld [vmem:[%s4196_s17] sm:$0xff]  ;;  %s5304_s17 = sld [smem:[#allocation8_spill]] }
  0x52   :  { %363 = vmatpush.msrb.mxu2 %v147_v3  ;;  %465 = vmatpush.msrb.mxu0 %v460_v42  ;;  %v521_v28 = vld [vmem:[%s4201_s21] sm:$0xff]  ;;  %s5305_s21 = sld [smem:[#allocation10_spill]] }
  0x53   :  { %485 = vmatpush.msrb.mxu1 %v460_v42 }
  0x54   :  { %466 = vmatpush.msrb.mxu0 %v459_v44 }
  0x55   :  { %486 = vmatpush.msrb.mxu1 %v459_v44  ;;  %v518_v44 = vld [vmem:[%s4211_s29] sm:$0x1]  ;;  %s5307_s29 = sld [smem:[#allocation12_spill]] }
  0x56   :  { %467 = vmatpush.msrb.mxu0 %v458_v45 }
  0x57   :  { %487 = vmatpush.msrb.mxu1 %v458_v45 }
  0x58   :  { %468 = vmatpush.msrb.mxu0 %v457_v46 }
  0x59   :  { %3557 = vmatmul.msk.f32.gmra.mxu0 %vm155_vm0, %v153_v10  ;;  %3565 = vmatmul.msk.f32.gmra.mxu1 %vm155_vm0, %v3561_v11 }
  0x5a   :  { %488 = vmatpush.msrb.mxu1 %v457_v46  ;;  %469 = vmatpush.msrb.mxu0 %v456_v47 }
  0x5c   :  { %489 = vmatpush.msrb.mxu1 %v456_v47  ;;  %470 = vmatpush.msrb.mxu0 %v455_v48 }
  0x5e   :  { %490 = vmatpush.msrb.mxu1 %v455_v48  ;;  %471 = vmatpush.msrb.mxu0 %v454_v50 }
  0x60   :  { %491 = vmatpush.msrb.mxu1 %v454_v50  ;;  %472 = vmatpush.msrb.mxu0 %v453_v51 }
  0x61   :  { %3558 = vmatmul.msk.f32.gmra.mxu0 %vm155_vm0, %v154_v12  ;;  %3566 = vmatmul.msk.f32.gmra.mxu1 %vm155_vm0, %v3562_v13 }
  0x62   :  { %492 = vmatpush.msrb.mxu1 %v453_v51  ;;  %473 = vmatpush.msrb.mxu0 %v452_v52 }
  0x64   :  { %493 = vmatpush.msrb.mxu1 %v452_v52  ;;  %474 = vmatpush.msrb.mxu0 %v451_v53 }
  0x66   :  { %494 = vmatpush.msrb.mxu1 %v451_v53  ;;  %475 = vmatpush.msrb.mxu0 %v450_v54 }
  0x68   :  { %495 = vmatpush.msrb.mxu1 %v450_v54  ;;  %476 = vmatpush.msrb.mxu0 %v449_v56 }
  0x6a   :  { %496 = vmatpush.msrb.mxu1 %v449_v56  ;;  %477 = vmatpush.msrb.mxu0 %v448_v57 }
  0x6c   :  { %497 = vmatpush.msrb.mxu1 %v448_v57  ;;  %478 = vmatpush.msrb.mxu0 %v447_v58 }
  0x6e   :  { %498 = vmatpush.msrb.mxu1 %v447_v58 }
  0x70   :  { %541 = vmatpush.msra.mxu1 %v521_v28 }
  0xc6   :  { %v185_v16 = vpop.f32.mrf.mxu0  ;;  %v233_v17 = vpop.f32.mrf.mxu1 }
  0xc7   :  { %3569 = vmatmul.msk.f32.vlgmr.msra.gmra.mxu2 %vm248_vm1, %v233_v17  ;;  %3573 = vmatmul.msk.f32.vlgmr.msra.gmra.mxu3 %vm248_vm1, %v185_v16 }
  0xce   :  { %v188_v18 = vpop.f32.mrf.mxu0  ;;  %v236_v19 = vpop.f32.mrf.mxu1 }
  0xcf   :  { %3570 = vmatmul.msk.f32.gmra.mxu2 %vm248_vm1, %v236_v19  ;;  %3574 = vmatmul.msk.f32.gmra.mxu3 %vm248_vm1, %v188_v18 }
  0xd6   :  { %v191_v20 = vpop.f32.mrf.mxu0  ;;  %v239_v21 = vpop.f32.mrf.mxu1 }
  0xd7   :  { %3571 = vmatmul.msk.f32.gmra.mxu2 %vm248_vm1, %v239_v21  ;;  %3575 = vmatmul.msk.f32.gmra.mxu3 %vm248_vm1, %v191_v20 }
  0xde   :  { %v194_v22 = vpop.f32.mrf.mxu0  ;;  %v242_v23 = vpop.f32.mrf.mxu1 }
  0xdf   :  { %3572 = vmatmul.msk.f32.gmra.mxu2 %vm248_vm1, %v242_v23  ;;  %3576 = vmatmul.msk.f32.gmra.mxu3 %vm248_vm1, %v194_v22 }
  0xe7   :  { %3581 = vmatmul.msk.f32.vlgmr.msrb.gmra.mxu2 %vm155_vm0, %v3577_v24 }
  0xef   :  { %3582 = vmatmul.msk.f32.gmra.mxu2 %vm155_vm0, %v3578_v25 }
  0xf7   :  { %3583 = vmatmul.msk.f32.gmra.mxu2 %vm155_vm0, %v3579_v26 }
  0xff   :  { %3584 = vmatmul.msk.f32.gmra.mxu2 %vm155_vm0, %v3580_v27 }
 0x14a   :  { %v4400_v30 = vpop.f32.mrf.mxu2  ;;  %v319_v38 = vpop.f32.mrf.mxu3 }
 0x14b   :  { %v320_v62 = vadd.f32 %v319_v38, %v4400_v30 }
 0x152   :  { %v4402_v31 = vpop.f32.mrf.mxu2  ;;  %v322_v39 = vpop.f32.mrf.mxu3 }
 0x153   :  { %v323_v60 = vadd.f32 %v322_v39, %v4402_v31  ;;  %v505_v39 = vld [vmem:[%s4206_s25] sm:$0x1]  ;;  %s5306_s25 = sld [smem:[#allocation11_spill]] }
 0x15a   :  { %v4404_v32 = vpop.f32.mrf.mxu2  ;;  %v325_v43 = vpop.f32.mrf.mxu3 }
 0x15b   :  { %v326_v63 = vadd.f32 %v325_v43, %v4404_v32 }
 0x162   :  { %v4406_v33 = vpop.f32.mrf.mxu2  ;;  %v328_v49 = vpop.f32.mrf.mxu3 }
 0x163   :  { %v329_v4 = vadd.f32 %v328_v49, %v4406_v33 }
 0x16a   :  { %v365_v34 = vpop.f32.mrf.mxu2 }
 0x16b   :  { %3587 = vmatmul.msk.f32.vlgmr.msrb.gmra.mxu3 %vm248_vm1, %v365_v34 }
 0x172   :  { %v368_v35 = vpop.f32.mrf.mxu2 }
 0x173   :  { %3588 = vmatmul.msk.f32.gmra.mxu3 %vm248_vm1, %v368_v35 }
 0x17a   :  { %v371_v36 = vpop.f32.mrf.mxu2 }
 0x17b   :  { %3589 = vmatmul.msk.f32.gmra.mxu3 %vm248_vm1, %v371_v36 }
 0x182   :  { %v374_v37 = vpop.f32.mrf.mxu2 }
 0x183   :  { %3590 = vmatmul.msk.f32.gmra.mxu3 %vm248_vm1, %v374_v37 }
 0x1ee   :  { %v409_v55 = vpop.f32.mrf.mxu3 }
 0x1ef   :  { %v4431_v1 = vadd.f32 %v409_v55, %v320_v62 }
 0x1f1   :  { %v434_v5 = vmul.f32 %v4431_v1, %v4431_v1 }
 0x1f6   :  { %v412_v59 = vpop.f32.mrf.mxu3 }
 0x1f7   :  { %v422_v0 = vadd.f32 %v412_v59, %v323_v60 }
 0x1f9   :  { %v435_v3 = vmul.f32 %v422_v0, %v422_v0  ;;  %v425_v6 = vadd.f32 %v422_v0, %v4431_v1 }
 0x1fb   :  { %v438_v9 = vadd.f32 %v435_v3, %v434_v5  ;;  %v3603_v3 = vld [vmem:[%s4216_s3 + $0x30] sm:$0xff] }
 0x1fc   :  { %v3595_v5 = vld [vmem:[%s4216_s3 + $0x10] sm:$0xff] }
 0x1fe   :  { %v415_v61 = vpop.f32.mrf.mxu3 }
 0x1ff   :  { %v423_v2 = vadd.f32 %v415_v61, %v326_v63 }
 0x201   :  { %v436_v7 = vmul.f32 %v423_v2, %v423_v2  ;;  %v426_v10 = vadd.f32 %v425_v6, %v423_v2  ;;  %v3638_v6 = vld [vmem:[%s4221_s8 + $0x178] sm:$0xff] }
 0x203   :  { %v439_v12 = vadd.f32 %v438_v9, %v436_v7  ;;  %v3654_v7 = vld [vmem:[%s4221_s8 + $0x1f8] sm:$0xff] }
 0x204   :  { %v3622_v9 = vld [vmem:[%s4221_s8 + $0xf8] sm:$0xff] }
 0x206   :  { %v418_v8 = vpop.f32.mrf.mxu3 }
 0x207   :  { %v424_v11 = vadd.f32 %v418_v8, %v329_v4  ;;  %v591_v4 = vld [vmem:[%s4216_s3] sm:$0xff]  ;;  %v739_v8 = vld [vmem:[%s4221_s8 + $0x78] sm:$0xff] }
 0x209   :  { %v427_v13 = vadd.f32 %v426_v10, %v424_v11  ;;  %v437_v14 = vmul.f32 %v424_v11, %v424_v11  ;;  %v3637_v10 = vld [vmem:[%s4221_s8 + $0x170] sm:$0xff] }
 0x20b   :  { %v428_v15 = vrot.slane %v427_v13, 4  ;;  %v440_v16 = vadd.f32 %v439_v12, %v437_v14  ;;  %v738_v12 = vld [vmem:[%s4221_s8 + $0x70] sm:$0xff]  ;;  %v3636_v14 = vld [vmem:[%s4221_s8 + $0x168] sm:$0xff] }
 0x20d   :  { %v429_v17 = vadd.f32 %v428_v15, %v427_v13  ;;  %v441_v18 = vrot.slane %v440_v16, 4  ;;  %v3621_v13 = vld [vmem:[%s4221_s8 + $0xf0] sm:$0xff]  ;;  %v3652_v15 = vld [vmem:[%s4221_s8 + $0x1e8] sm:$0xff] }
 0x20f   :  { %v430_v19 = vrot.slane %v429_v17, 2  ;;  %v442_v20 = vadd.f32 %v441_v18, %v440_v16  ;;  %v737_v16 = vld [vmem:[%s4221_s8 + $0x68] sm:$0xff] }
 0x210   :  { %v3600_v18 = vld [vmem:[%s4216_s3 + $0x28] sm:$0xff] }
 0x211   :  { %v431_v21 = vadd.f32 %v430_v19, %v429_v17  ;;  %v443_v22 = vrot.slane %v442_v20, 2  ;;  %v3620_v17 = vld [vmem:[%s4221_s8 + $0xe8] sm:$0xff]  ;;  %v3604_v19 = vld [vmem:[%s4216_s3 + $0x38] sm:$0xff] }
 0x213   :  { %v432_v23 = vrot.slane %v431_v21, 1  ;;  %v444_v24 = vadd.f32 %v443_v22, %v442_v20  ;;  %v592_v20 = vld [vmem:[%s4216_s3 + $0x8] sm:$0xff]  ;;  %v3635_v22 = vld [vmem:[%s4221_s8 + $0x160] sm:$0xff] }
 0x215   :  { %v433_v25 = vadd.f32 %v432_v23, %v431_v21  ;;  %v445_v26 = vrot.slane %v444_v24, 1  ;;  %v3596_v21 = vld [vmem:[%s4216_s3 + $0x18] sm:$0xff]  ;;  %v3651_v23 = vld [vmem:[%s4221_s8 + $0x1e0] sm:$0xff] }
 0x217   :  { %479 = vmatmul.f32.vlgmr.msrb.gmra.mxu0 %v433_v25  ;;  %v446_v27 = vadd.f32 %v445_v26, %v444_v24  ;;  %v736_v24 = vld [vmem:[%s4221_s8 + $0x60] sm:$0xff]  ;;  %v3634_v26 = vld [vmem:[%s4221_s8 + $0x158] sm:$0xff] }
 0x218   :  { %v3619_v25 = vld [vmem:[%s4221_s8 + $0xe0] sm:$0xff] }
 0x219   :  { %499 = vmatmul.f32.vlgmr.msrb.gmra.mxu1 %v446_v27  ;;  %v3650_v27 = vld [vmem:[%s4221_s8 + $0x1d8] sm:$0xff] }
 0x21a   :  { %569 = vmatpush.msrb.mxu1 %v521_v28  ;;  %v735_v28 = vld [vmem:[%s4221_s8 + $0x58] sm:$0xff] }
 0x294   :  { %v480_v29 = vpop.f32.mrf.mxu0 }
 0x295   :  { %v503_v30 = vmul.f32 %v480_v29, %v480_v29 }
 0x296   :  { %v500_v31 = vpop.f32.mrf.mxu1 }
 0x297   :  { %v504_v32 = vsub.f32 %v500_v31, %v503_v30  ;;  %v3633_v30 = vld [vmem:[%s4221_s8 + $0x150] sm:$0xff] }
 0x298   :  { %v3649_v31 = vld [vmem:[%s4221_s8 + $0x1d0] sm:$0xff] }
 0x299   :  { %v506_v33 = vadd.f32 1e-05, %v504_v32  ;;  %v734_v32 = vld [vmem:[%s4221_s8 + $0x50] sm:$0xff] }
 0x29b   :  { %4101 = vrsqrt.f32 %v506_v33  ;;  %vm513_vm3 = vweird.f32 %v506_v33 }
 0x2a1   :  { %v4102_v34 = vpop.eup %4101 }
 0x2a2   :  { %v508_v35 = vmul.f32 %v4102_v34, %v506_v33  ;;  %vm514_vm2 = vweird.f32 %v4102_v34  ;;  %v3617_v33 = vld [vmem:[%s4221_s8 + $0xd0] sm:$0xff] }
 0x2a3   :  { %vm515_vm4 = vmor %vm513_vm3, %vm514_vm2 }
 0x2a4   :  { %v509_v36 = vmul.f32 %v4102_v34, %v508_v35  ;;  %v3648_v35 = vld [vmem:[%s4221_s8 + $0x1c8] sm:$0xff] }
 0x2a6   :  { %v510_v37 = vmul.f32 0.5, %v509_v36  ;;  %v733_v36 = vld [vmem:[%s4221_s8 + $0x48] sm:$0xff] }
 0x2a8   :  { %v511_v38 = vsub.f32 1.5, %v510_v37  ;;  %v3616_v37 = vld [vmem:[%s4221_s8 + $0xc8] sm:$0xff] }
 0x2aa   :  { %v512_v40 = vmul.f32 %v4102_v34, %v511_v38  ;;  %v3631_v38 = vld [vmem:[%s4221_s8 + $0x140] sm:$0xff] }
 0x2ac   :  { %v516_v41 = vsel %vm515_vm4, %v4102_v34, %v512_v40  ;;  %v3632_v34 = vld [vmem:[%s4221_s8 + $0x148] sm:$0xff]  ;;  %v732_v40 = vld [vmem:[%s4221_s8 + $0x40] sm:$0xff] }
 0x2ad   :  { %v517_v42 = vmul.f32 %v516_v41, %v505_v39  ;;  %v3647_v39 = vld [vmem:[%s4221_s8 + $0x1c0] sm:$0xff] }
 0x2ae   :  { %v3615_v41 = vld [vmem:[%s4221_s8 + $0xc0] sm:$0xff] }
 0x2af   :  { %3591 = vmatmul.msk.f32.vlgmr.msra.gmra.mxu1 %vm522_vm5, %v517_v42  ;;  %v519_v43 = vmul.f32 %v517_v42, %v480_v29  ;;  %v3618_v29 = vld [vmem:[%s4221_s8 + $0xd8] sm:$0xff] }
 0x2b0   :  { %v3630_v42 = vld [vmem:[%s4221_s8 + $0x138] sm:$0xff] }
 0x2b1   :  { %v520_v45 = vsub.f32 %v518_v44, %v519_v43  ;;  %v3646_v43 = vld [vmem:[%s4221_s8 + $0x1b8] sm:$0xff] }
 0x2b2   :  { %v731_v44 = vld [vmem:[%s4221_s8 + $0x38] sm:$0xff] }
 0x2b7   :  { %3592 = vmatmul.msk.f32.vlgmr.msrb.gmra.mxu1 %vm522_vm5, %v520_v45  ;;  %v3614_v45 = vld [vmem:[%s4221_s8 + $0xb8] sm:$0xff] }
 0x32c   :  { %v543_v46 = vpop.f32.mrf.mxu1 }
 0x32d   :  { %v546_v47 = vperm.slane %v543_v46, 0  ;;  %v3629_v46 = vld [vmem:[%s4221_s8 + $0x130] sm:$0xff] }
 0x32f   :  { %v548_v49 = vmul.f32 %v546_v47, %v422_v0  ;;  %v549_v50 = vmul.f32 %v546_v47, %v423_v2  ;;  %v550_v51 = vmul.f32 %v546_v47, %v424_v11  ;;  %v547_v53 = vmul.f32 %v546_v47, %v4431_v1  ;;  %v3599_v2 = vld [vmem:[%s4216_s3 + $0x20] sm:$0xff]  ;;  %v3653_v11 = vld [vmem:[%s4221_s8 + $0x1f0] sm:$0xff]  ;;  %s5308_s3 = sld [smem:[#allocation13_spill]] }
 0x330   :  { %v3645_v47 = vld [vmem:[%s4221_s8 + $0x1b0] sm:$0xff] }
 0x334   :  { %v571_v48 = vpop.f32.mrf.mxu1 }
 0x335   :  { %v574_v52 = vperm.slane %v571_v48, 0  ;;  %v730_v48 = vld [vmem:[%s4221_s8 + $0x30] sm:$0xff] }
 0x337   :  { %v578_v54 = vadd.f32 %v574_v52, %v550_v51  ;;  %v577_v55 = vadd.f32 %v574_v52, %v549_v50  ;;  %v576_v56 = vadd.f32 %v574_v52, %v548_v49  ;;  %v575_v59 = vadd.f32 %v574_v52, %v547_v53  ;;  %v3613_v49 = vld [vmem:[%s4221_s8 + $0xb0] sm:$0xff]  ;;  %v3628_v50 = vld [vmem:[%s4221_s8 + $0x128] sm:$0xff]  ;;  %v3627_v52 = vld [vmem:[%s4221_s8 + $0x120] sm:$0xff] }
 0x338   :  { %v3644_v51 = vld [vmem:[%s4221_s8 + $0x1a8] sm:$0xff] }
 0x339   :  { %vm582_vm6 = vcmp.ge.f32.partialorder %v578_v54, 0.0  ;;  %v586_v57 = vmul.f32 0.01, %v578_v54  ;;  %v585_v58 = vmul.f32 0.01, %v577_v55  ;;  %vm581_vm7 = vcmp.ge.f32.partialorder %v577_v55, 0.0 }
 0x33a   :  { %v584_v61 = vmul.f32 0.01, %v576_v56  ;;  %vm580_vm8 = vcmp.ge.f32.partialorder %v576_v56, 0.0  ;;  %v583_v63 = vmul.f32 0.01, %v575_v59  ;;  %vm579_vm9 = vcmp.ge.f32.partialorder %v575_v59, 0.0 }
 0x33b   :  { %v590_v60 = vsel %vm582_vm6, %v578_v54, %v586_v57  ;;  %v589_v62 = vsel %vm581_vm7, %v577_v55, %v585_v58  ;;  %v729_v53 = vld [vmem:[%s4221_s8 + $0x28] sm:$0xff]  ;;  %v3643_v55 = vld [vmem:[%s4221_s8 + $0x1a0] sm:$0xff]  ;;  %v3626_v58 = vld [vmem:[%s4221_s8 + $0x118] sm:$0xff] }
 0x33c   :  { %611 = vmatpush.msra.mxu0 %v590_v60  ;;  %643 = vmatpush.msra.mxu1 %v590_v60  ;;  %v588_v0 = vsel %vm580_vm8, %v576_v56, %v584_v61  ;;  %v587_v1 = vsel %vm579_vm9, %v575_v59, %v583_v63  ;;  %v3612_v54 = vld [vmem:[%s4221_s8 + $0xa8] sm:$0xff]  ;;  %v728_v56 = vld [vmem:[%s4221_s8 + $0x20] sm:$0xff]  ;;  %v3642_v59 = vld [vmem:[%s4221_s8 + $0x198] sm:$0xff]  ;;  %vm3000_vm8 = vcmask 31744  }
 0x33d   :  { %677 = vmatpush.msra.mxu2 %v590_v60  ;;  %711 = vmatpush.msra.mxu3 %v590_v60  ;;  %v3611_v57 = vld [vmem:[%s4221_s8 + $0xa0] sm:$0xff]  ;;  %v727_v60 = vld [vmem:[%s4221_s8 + $0x18] sm:$0xff]  ;;  %v3641_v63 = vld [vmem:[%s4221_s8 + $0x190] sm:$0xff] }
 0x33e   :  { %612 = vmatpush.msra.mxu0 %v589_v62  ;;  %644 = vmatpush.msra.mxu1 %v589_v62  ;;  %v3610_v61 = vld [vmem:[%s4221_s8 + $0x98] sm:$0xff] }
 0x33f   :  { %678 = vmatpush.msra.mxu2 %v589_v62  ;;  %712 = vmatpush.msra.mxu3 %v589_v62  ;;  %v3625_v62 = vld [vmem:[%s4221_s8 + $0x110] sm:$0xff] }
 0x340   :  { %613 = vmatpush.msra.mxu0 %v588_v0  ;;  %645 = vmatpush.msra.mxu1 %v588_v0 }
 0x341   :  { %679 = vmatpush.msra.mxu2 %v588_v0  ;;  %713 = vmatpush.msra.mxu3 %v588_v0  ;;  %v726_v0 = vld [vmem:[%s4221_s8 + $0x10] sm:$0xff] }
 0x342   :  { %614 = vmatpush.msra.mxu0 %v587_v1  ;;  %646 = vmatpush.msra.mxu1 %v587_v1 }
 0x343   :  { %680 = vmatpush.msra.mxu2 %v587_v1  ;;  %714 = vmatpush.msra.mxu3 %v587_v1  ;;  %v3609_v1 = vld [vmem:[%s4221_s8 + $0x90] sm:$0xff] }
 0x344   :  { %3601 = vmatmul.msk.f32.vlgmr.msra.gmra.mxu2 %vm155_vm0, %v3599_v2  ;;  %3605 = vmatmul.msk.f32.vlgmr.msra.gmra.mxu3 %vm155_vm0, %v3603_v3  ;;  %v3624_v2 = vld [vmem:[%s4221_s8 + $0x108] sm:$0xff] }
 0x345   :  { %3593 = vmatmul.msk.f32.vlgmr.msra.gmra.mxu0 %vm155_vm0, %v591_v4  ;;  %3597 = vmatmul.msk.f32.vlgmr.msra.gmra.mxu1 %vm155_vm0, %v3595_v5  ;;  %v3640_v3 = vld [vmem:[%s4221_s8 + $0x188] sm:$0xff] }
 0x346   :  { %822 = vmatpush.msrb.mxu2 %v3638_v6  ;;  %864 = vmatpush.msrb.mxu3 %v3654_v7  ;;  %v725_v4 = vld [vmem:[%s4221_s8 + $0x8] sm:$0xff]  ;;  %v3623_v6 = vld [vmem:[%s4221_s8 + $0x100] sm:$0xff] }
 0x347   :  { %740 = vmatpush.msrb.mxu0 %v739_v8  ;;  %780 = vmatpush.msrb.mxu1 %v3622_v9  ;;  %v3608_v5 = vld [vmem:[%s4221_s8 + $0x88] sm:$0xff]  ;;  %v3639_v7 = vld [vmem:[%s4221_s8 + $0x180] sm:$0xff] }
 0x348   :  { %823 = vmatpush.msrb.mxu2 %v3637_v10  ;;  %865 = vmatpush.msrb.mxu3 %v3653_v11  ;;  %v724_v8 = vld [vmem:[%s4221_s8] sm:$0xff] }
 0x349   :  { %741 = vmatpush.msrb.mxu0 %v738_v12  ;;  %781 = vmatpush.msrb.mxu1 %v3621_v13  ;;  %v3607_v9 = vld [vmem:[%s4221_s8 + $0x80] sm:$0xff]  ;;  %s5309_s8 = sld [smem:[#allocation14_spill]] }
 0x34a   :  { %824 = vmatpush.msrb.mxu2 %v3636_v14  ;;  %866 = vmatpush.msrb.mxu3 %v3652_v15 }
 0x34b   :  { %742 = vmatpush.msrb.mxu0 %v737_v16  ;;  %782 = vmatpush.msrb.mxu1 %v3620_v17 }
 0x34c   :  { %3602 = vmatmul.msk.f32.gmra.mxu2 %vm155_vm0, %v3600_v18  ;;  %3606 = vmatmul.msk.f32.gmra.mxu3 %vm155_vm0, %v3604_v19 }
 0x34d   :  { %3594 = vmatmul.msk.f32.gmra.mxu0 %vm155_vm0, %v592_v20  ;;  %3598 = vmatmul.msk.f32.gmra.mxu1 %vm155_vm0, %v3596_v21 }
 0x34e   :  { %825 = vmatpush.msrb.mxu2 %v3635_v22  ;;  %867 = vmatpush.msrb.mxu3 %v3651_v23 }
 0x34f   :  { %743 = vmatpush.msrb.mxu0 %v736_v24  ;;  %783 = vmatpush.msrb.mxu1 %v3619_v25  ;;  %v3675_v24 = vld [vmem:[%s4231_s19 + $0xf0] sm:$0xff]  ;;  %v3673_v25 = vld [vmem:[%s4231_s19 + $0xe0] sm:$0xff] }
 0x350   :  { %826 = vmatpush.msrb.mxu2 %v3634_v26  ;;  %868 = vmatpush.msrb.mxu3 %v3650_v27  ;;  %v3671_v26 = vld [vmem:[%s4231_s19 + $0xd0] sm:$0xff]  ;;  %v3669_v27 = vld [vmem:[%s4231_s19 + $0xc0] sm:$0xff] }
 0x351   :  { %744 = vmatpush.msrb.mxu0 %v735_v28  ;;  %784 = vmatpush.msrb.mxu1 %v3618_v29  ;;  %v3667_v28 = vld [vmem:[%s4231_s19 + $0xb0] sm:$0xff]  ;;  %v3665_v29 = vld [vmem:[%s4231_s19 + $0xa0] sm:$0xff] }
 0x352   :  { %827 = vmatpush.msrb.mxu2 %v3633_v30  ;;  %869 = vmatpush.msrb.mxu3 %v3649_v31  ;;  %v3663_v30 = vld [vmem:[%s4231_s19 + $0x90] sm:$0xff]  ;;  %v3661_v31 = vld [vmem:[%s4231_s19 + $0x80] sm:$0xff] }
 0x353   :  { %745 = vmatpush.msrb.mxu0 %v734_v32  ;;  %785 = vmatpush.msrb.mxu1 %v3617_v33 }
 0x354   :  { %828 = vmatpush.msrb.mxu2 %v3632_v34  ;;  %870 = vmatpush.msrb.mxu3 %v3648_v35 }
 0x355   :  { %746 = vmatpush.msrb.mxu0 %v733_v36  ;;  %786 = vmatpush.msrb.mxu1 %v3616_v37 }
 0x356   :  { %829 = vmatpush.msrb.mxu2 %v3631_v38  ;;  %871 = vmatpush.msrb.mxu3 %v3647_v39 }
 0x357   :  { %747 = vmatpush.msrb.mxu0 %v732_v40  ;;  %787 = vmatpush.msrb.mxu1 %v3615_v41 }
 0x358   :  { %830 = vmatpush.msrb.mxu2 %v3630_v42  ;;  %872 = vmatpush.msrb.mxu3 %v3646_v43 }
 0x359   :  { %748 = vmatpush.msrb.mxu0 %v731_v44  ;;  %788 = vmatpush.msrb.mxu1 %v3614_v45 }
 0x35a   :  { %831 = vmatpush.msrb.mxu2 %v3629_v46  ;;  %873 = vmatpush.msrb.mxu3 %v3645_v47  ;;  %v3657_v46 = vld [vmem:[%s4226_s14 + $0x10] sm:$0xff]  ;;  %v889_v47 = vld [vmem:[%s4226_s14] sm:$0xff] }
 0x35b   :  { %749 = vmatpush.msrb.mxu0 %v730_v48  ;;  %789 = vmatpush.msrb.mxu1 %v3613_v49  ;;  %v3658_v48 = vld [vmem:[%s4226_s14 + $0x18] sm:$0xff]  ;;  %v890_v49 = vld [vmem:[%s4226_s14 + $0x8] sm:$0xff] }
 0x35c   :  { %832 = vmatpush.msrb.mxu2 %v3628_v50  ;;  %874 = vmatpush.msrb.mxu3 %v3644_v51  ;;  %v3676_v50 = vld [vmem:[%s4231_s19 + $0xf8] sm:$0xff]  ;;  %v3674_v51 = vld [vmem:[%s4231_s19 + $0xe8] sm:$0xff] }
 0x35d   :  { %750 = vmatpush.msrb.mxu0 %v729_v53  ;;  %790 = vmatpush.msrb.mxu1 %v3612_v54  ;;  %v3670_v53 = vld [vmem:[%s4231_s19 + $0xc8] sm:$0xff]  ;;  %v934_v54 = vld [vmem:[%s4231_s19 + $0x70] sm:$0xff] }
 0x35e   :  { %833 = vmatpush.msrb.mxu2 %v3627_v52  ;;  %875 = vmatpush.msrb.mxu3 %v3643_v55  ;;  %v3672_v52 = vld [vmem:[%s4231_s19 + $0xd8] sm:$0xff] }
 0x35f   :  { %751 = vmatpush.msrb.mxu0 %v728_v56  ;;  %791 = vmatpush.msrb.mxu1 %v3611_v57  ;;  %v935_v55 = vld [vmem:[%s4231_s19 + $0x78] sm:$0xff]  ;;  %v932_v57 = vld [vmem:[%s4231_s19 + $0x60] sm:$0xff] }
 0x360   :  { %834 = vmatpush.msrb.mxu2 %v3626_v58  ;;  %876 = vmatpush.msrb.mxu3 %v3642_v59  ;;  %v3668_v56 = vld [vmem:[%s4231_s19 + $0xb8] sm:$0xff]  ;;  %v933_v58 = vld [vmem:[%s4231_s19 + $0x68] sm:$0xff] }
 0x361   :  { %752 = vmatpush.msrb.mxu0 %v727_v60  ;;  %792 = vmatpush.msrb.mxu1 %v3610_v61  ;;  %v3666_v59 = vld [vmem:[%s4231_s19 + $0xa8] sm:$0xff]  ;;  %v930_v60 = vld [vmem:[%s4231_s19 + $0x50] sm:$0xff]  ;;  %v931_v61 = vld [vmem:[%s4231_s19 + $0x58] sm:$0xff] }
 0x362   :  { %835 = vmatpush.msrb.mxu2 %v3625_v62  ;;  %877 = vmatpush.msrb.mxu3 %v3641_v63  ;;  %v3664_v62 = vld [vmem:[%s4231_s19 + $0x98] sm:$0xff]  ;;  %v928_v63 = vld [vmem:[%s4231_s19 + $0x40] sm:$0xff] }
 0x363   :  { %753 = vmatpush.msrb.mxu0 %v726_v0  ;;  %793 = vmatpush.msrb.mxu1 %v3609_v1  ;;  %v929_v0 = vld [vmem:[%s4231_s19 + $0x48] sm:$0xff] }
 0x364   :  { %836 = vmatpush.msrb.mxu2 %v3624_v2  ;;  %878 = vmatpush.msrb.mxu3 %v3640_v3  ;;  %v3662_v1 = vld [vmem:[%s4231_s19 + $0x88] sm:$0xff]  ;;  %v926_v2 = vld [vmem:[%s4231_s19 + $0x30] sm:$0xff]  ;;  %v927_v3 = vld [vmem:[%s4231_s19 + $0x38] sm:$0xff] }
 0x365   :  { %754 = vmatpush.msrb.mxu0 %v725_v4  ;;  %794 = vmatpush.msrb.mxu1 %v3608_v5  ;;  %v924_v4 = vld [vmem:[%s4231_s19 + $0x20] sm:$0xff]  ;;  %v925_v5 = vld [vmem:[%s4231_s19 + $0x28] sm:$0xff] }
 0x366   :  { %837 = vmatpush.msrb.mxu2 %v3623_v6  ;;  %879 = vmatpush.msrb.mxu3 %v3639_v7  ;;  %v922_v6 = vld [vmem:[%s4231_s19 + $0x10] sm:$0xff]  ;;  %v923_v7 = vld [vmem:[%s4231_s19 + $0x18] sm:$0xff] }
 0x367   :  { %755 = vmatpush.msrb.mxu0 %v724_v8  ;;  %795 = vmatpush.msrb.mxu1 %v3607_v9  ;;  %v920_v8 = vld [vmem:[%s4231_s19] sm:$0xff]  ;;  %v921_v9 = vld [vmem:[%s4231_s19 + $0x8] sm:$0xff] }
 0x368   :  { %1000 = vmatpush.msra.mxu2 %v3675_v24  ;;  %1023 = vmatpush.msra.mxu3 %v3676_v50  ;;  %v3695_v24 = vld [vmem:[%s4231_s19 + $0x130] sm:$0xff]  ;;  %v1250_v50 = vld [vmem:[%s4236_s24 + $0xb8] sm:$0xff] }
 0x36a   :  { %1001 = vmatpush.msra.mxu2 %v3673_v25  ;;  %1024 = vmatpush.msra.mxu3 %v3674_v51  ;;  %v3696_v25 = vld [vmem:[%s4231_s19 + $0x138] sm:$0xff]  ;;  %v1236_v51 = vld [vmem:[%s4236_s24 + $0x48] sm:$0xff] }
 0x36c   :  { %1002 = vmatpush.msra.mxu2 %v3671_v26  ;;  %1025 = vmatpush.msra.mxu3 %v3672_v52  ;;  %v3693_v26 = vld [vmem:[%s4231_s19 + $0x120] sm:$0xff]  ;;  %v1249_v52 = vld [vmem:[%s4236_s24 + $0xb0] sm:$0xff] }
 0x36e   :  { %1003 = vmatpush.msra.mxu2 %v3669_v27  ;;  %1026 = vmatpush.msra.mxu3 %v3670_v53  ;;  %v3694_v27 = vld [vmem:[%s4231_s19 + $0x128] sm:$0xff] }
 0x370   :  { %1004 = vmatpush.msra.mxu2 %v3667_v28  ;;  %1027 = vmatpush.msra.mxu3 %v3668_v56  ;;  %v3691_v28 = vld [vmem:[%s4231_s19 + $0x110] sm:$0xff]  ;;  %v1234_v56 = vld [vmem:[%s4236_s24 + $0x38] sm:$0xff] }
 0x372   :  { %1005 = vmatpush.msra.mxu2 %v3665_v29  ;;  %1028 = vmatpush.msra.mxu3 %v3666_v59  ;;  %v3692_v29 = vld [vmem:[%s4231_s19 + $0x118] sm:$0xff] }
 0x373   :  { %v1246_v59 = vld [vmem:[%s4236_s24 + $0x98] sm:$0xff] }
 0x374   :  { %1006 = vmatpush.msra.mxu2 %v3663_v30  ;;  %1029 = vmatpush.msra.mxu3 %v3664_v62  ;;  %v3689_v30 = vld [vmem:[%s4231_s19 + $0x100] sm:$0xff]  ;;  %v1245_v62 = vld [vmem:[%s4236_s24 + $0x90] sm:$0xff] }
 0x376   :  { %1007 = vmatpush.msra.mxu2 %v3661_v31  ;;  %1030 = vmatpush.msra.mxu3 %v3662_v1  ;;  %v3690_v31 = vld [vmem:[%s4231_s19 + $0x108] sm:$0xff] }
 0x3c2   :  { %v616_v10 = vpop.f32.mrf.mxu0  ;;  %v648_v11 = vpop.f32.mrf.mxu1 }
 0x3c3   :  { %v654_v12 = vmax.f32 %v616_v10, %v648_v11 }
 0x3c7   :  { %v682_v13 = vpop.f32.mrf.mxu2  ;;  %v716_v14 = vpop.f32.mrf.mxu3 }
 0x3c8   :  { %v688_v15 = vmax.f32 %v654_v12, %v682_v13 }
 0x3ca   :  { %v722_v16 = vmax.f32 %v688_v15, %v716_v14  ;;  %v619_v17 = vpop.f32.mrf.mxu0  ;;  %v651_v18 = vpop.f32.mrf.mxu1  ;;  %v3685_v14 = vld [vmem:[%s4226_s14 + $0x20] sm:$0xff]  ;;  %v3686_v15 = vld [vmem:[%s4226_s14 + $0x28] sm:$0xff]  ;;  %s5310_s14 = sld [smem:[#allocation15_spill]] }
 0x3cb   :  { %v655_v19 = vmax.f32 %v619_v17, %v651_v18  ;;  %v3704_v17 = vld [vmem:[%s4231_s19 + $0x178] sm:$0xff]  ;;  %v3701_v18 = vld [vmem:[%s4231_s19 + $0x160] sm:$0xff] }
 0x3cc   :  { %838 = vmatmul.f32.vlgmr.msrb.gmra.mxu2 %v722_v16  ;;  %880 = vmatmul.f32.vlgmr.msrb.gmra.mxu3 %v722_v16 }
 0x3cd   :  { %756 = vmatmul.f32.vlgmr.msrb.gmra.mxu0 %v722_v16  ;;  %796 = vmatmul.f32.vlgmr.msrb.gmra.mxu1 %v722_v16  ;;  %v3703_v16 = vld [vmem:[%s4231_s19 + $0x170] sm:$0xff] }
 0x3ce   :  { %1153 = vmatpush.msrb.mxu3 %v3703_v16 }
 0x3cf   :  { %v685_v20 = vpop.f32.mrf.mxu2  ;;  %v719_v21 = vpop.f32.mrf.mxu3 }
 0x3d0   :  { %v689_v22 = vmax.f32 %v655_v19, %v685_v20  ;;  %v3702_v19 = vld [vmem:[%s4231_s19 + $0x168] sm:$0xff]  ;;  %v3699_v20 = vld [vmem:[%s4231_s19 + $0x150] sm:$0xff]  ;;  %1154 = vmatpush.msrb.mxu3 %v3701_v18 }
 0x3d2   :  { %v723_v23 = vmax.f32 %v689_v22, %v719_v21  ;;  %v3700_v21 = vld [vmem:[%s4231_s19 + $0x158] sm:$0xff]  ;;  %1155 = vmatpush.msrb.mxu3 %v3699_v20  ;;  %v3697_v22 = vld [vmem:[%s4231_s19 + $0x140] sm:$0xff] }
 0x3d4   :  { %841 = vmatmul.f32.gmra.mxu2 %v723_v23  ;;  %883 = vmatmul.f32.gmra.mxu3 %v723_v23 }
 0x3d5   :  { %759 = vmatmul.f32.gmra.mxu0 %v723_v23  ;;  %799 = vmatmul.f32.gmra.mxu1 %v723_v23  ;;  %v3698_v23 = vld [vmem:[%s4231_s19 + $0x148] sm:$0xff]  ;;  %s5311_s19 = sld [smem:[#allocation17_spill]] }
 0x3d6   :  { %1156 = vmatpush.msrb.mxu3 %v3697_v22 }
 0x3d8   :  { %1157 = vmatpush.msrb.mxu3 %v3695_v24 }
 0x3da   :  { %1158 = vmatpush.msrb.mxu3 %v3693_v26 }
 0x3dc   :  { %1159 = vmatpush.msrb.mxu3 %v3691_v28 }
 0x3de   :  { %1160 = vmatpush.msrb.mxu3 %v3689_v30 }
 0x44a   :  { %v757_v32 = vpop.f32.mrf.mxu0  ;;  %v797_v33 = vpop.f32.mrf.mxu1 }
 0x44b   :  { %v803_v38 = vmax.f32 %v757_v32, %v797_v33  ;;  %v1258_v32 = vld [vmem:[%s4236_s24 + $0xf8] sm:$0xff]  ;;  %v1257_v33 = vld [vmem:[%s4236_s24 + $0xf0] sm:$0xff] }
 0x44f   :  { %v839_v34 = vpop.f32.mrf.mxu2  ;;  %v881_v35 = vpop.f32.mrf.mxu3 }
 0x450   :  { %v845_v41 = vmax.f32 %v803_v38, %v839_v34  ;;  %v1256_v34 = vld [vmem:[%s4236_s24 + $0xe8] sm:$0xff] }
 0x452   :  { %v760_v36 = vpop.f32.mrf.mxu0  ;;  %v800_v37 = vpop.f32.mrf.mxu1  ;;  %v887_v45 = vmax.f32 %v845_v41, %v881_v35  ;;  %v1241_v41 = vld [vmem:[%s4236_s24 + $0x70] sm:$0xff] }
 0x453   :  { %v804_v39 = vmax.f32 %v760_v36, %v800_v37 }
 0x457   :  { %v842_v40 = vpop.f32.mrf.mxu2  ;;  %v884_v43 = vpop.f32.mrf.mxu3 }
 0x458   :  { %v846_v42 = vmax.f32 %v804_v39, %v842_v40  ;;  %v1242_v39 = vld [vmem:[%s4236_s24 + $0x78] sm:$0xff]  ;;  %v1255_v40 = vld [vmem:[%s4236_s24 + $0xe0] sm:$0xff] }
 0x45a   :  { %v888_v44 = vmax.f32 %v846_v42, %v884_v43  ;;  %v1254_v42 = vld [vmem:[%s4236_s24 + $0xd8] sm:$0xff]  ;;  %v1240_v43 = vld [vmem:[%s4236_s24 + $0x68] sm:$0xff] }
 0x45c   :  { %911 = vmatpush.msra.mxu0 %v888_v44  ;;  %959 = vmatpush.msra.mxu1 %v888_v44 }
 0x45d   :  { %1113 = vmatpush.msrb.mxu2 %v888_v44  ;;  %v1253_v44 = vld [vmem:[%s4236_s24 + $0xd0] sm:$0xff] }
 0x45e   :  { %912 = vmatpush.msra.mxu0 %v887_v45  ;;  %960 = vmatpush.msra.mxu1 %v887_v45 }
 0x45f   :  { %1114 = vmatpush.msrb.mxu2 %v887_v45  ;;  %3659 = vmatmul.msk.f32.vlgmr.msra.gmra.mxu1 %vm248_vm1, %v3657_v46  ;;  %v1239_v45 = vld [vmem:[%s4236_s24 + $0x60] sm:$0xff]  ;;  %v1252_v46 = vld [vmem:[%s4236_s24 + $0xc8] sm:$0xff] }
 0x460   :  { %3655 = vmatmul.msk.f32.vlgmr.msra.gmra.mxu0 %vm248_vm1, %v889_v47  ;;  %1075 = vmatpush.msrb.mxu1 %v935_v55  ;;  %v1238_v47 = vld [vmem:[%s4236_s24 + $0x58] sm:$0xff]  ;;  %v1248_v55 = vld [vmem:[%s4236_s24 + $0xa8] sm:$0xff] }
 0x461   :  { %1052 = vmatpush.msrb.mxu0 %v934_v54  ;;  %v1235_v54 = vld [vmem:[%s4236_s24 + $0x40] sm:$0xff] }
 0x462   :  { %1076 = vmatpush.msrb.mxu1 %v933_v58  ;;  %v1233_v58 = vld [vmem:[%s4236_s24 + $0x30] sm:$0xff] }
 0x463   :  { %1053 = vmatpush.msrb.mxu0 %v932_v57  ;;  %v1247_v57 = vld [vmem:[%s4236_s24 + $0xa0] sm:$0xff] }
 0x464   :  { %1077 = vmatpush.msrb.mxu1 %v931_v61  ;;  %v1232_v61 = vld [vmem:[%s4236_s24 + $0x28] sm:$0xff] }
 0x465   :  { %1054 = vmatpush.msrb.mxu0 %v930_v60 }
 0x466   :  { %1078 = vmatpush.msrb.mxu1 %v929_v0  ;;  %v1244_v0 = vld [vmem:[%s4236_s24 + $0x88] sm:$0xff] }
 0x467   :  { %3660 = vmatmul.msk.f32.gmra.mxu1 %vm248_vm1, %v3658_v48  ;;  %1055 = vmatpush.msrb.mxu0 %v928_v63  ;;  %v1251_v48 = vld [vmem:[%s4236_s24 + $0xc0] sm:$0xff] }
 0x468   :  { %3656 = vmatmul.msk.f32.gmra.mxu0 %vm248_vm1, %v890_v49  ;;  %1079 = vmatpush.msrb.mxu1 %v927_v3  ;;  %v1237_v49 = vld [vmem:[%s4236_s24 + $0x50] sm:$0xff]  ;;  %v1231_v63 = vld [vmem:[%s4236_s24 + $0x20] sm:$0xff] }
 0x469   :  { %1056 = vmatpush.msrb.mxu0 %v926_v2  ;;  %v1230_v2 = vld [vmem:[%s4236_s24 + $0x18] sm:$0xff]  ;;  %v1243_v3 = vld [vmem:[%s4236_s24 + $0x80] sm:$0xff] }
 0x46a   :  { %1080 = vmatpush.msrb.mxu1 %v925_v5 }
 0x46b   :  { %1057 = vmatpush.msrb.mxu0 %v924_v4  ;;  %v1229_v4 = vld [vmem:[%s4236_s24 + $0x10] sm:$0xff] }
 0x46c   :  { %1081 = vmatpush.msrb.mxu1 %v923_v7  ;;  %v1227_v7 = vld [vmem:[%s4236_s24] sm:$0xff] }
 0x46d   :  { %1058 = vmatpush.msrb.mxu0 %v922_v6  ;;  %v1228_v6 = vld [vmem:[%s4236_s24 + $0x8] sm:$0xff]  ;;  %s5312_s24 = sld [smem:[#allocation16_spill]] }
 0x46e   :  { %1082 = vmatpush.msrb.mxu1 %v921_v9 }
 0x46f   :  { %1059 = vmatpush.msrb.mxu0 %v920_v8 }
 0x470   :  { %1259 = vmatpush.msra.mxu1 %v1242_v39 }
 0x471   :  { %1176 = vmatpush.msra.mxu0 %v3704_v17 }
 0x472   :  { %1260 = vmatpush.msra.mxu1 %v1241_v41 }
 0x473   :  { %1177 = vmatpush.msra.mxu0 %v3702_v19 }
 0x474   :  { %1261 = vmatpush.msra.mxu1 %v1240_v43 }
 0x475   :  { %1178 = vmatpush.msra.mxu0 %v3700_v21 }
 0x476   :  { %1262 = vmatpush.msra.mxu1 %v1239_v45 }
 0x477   :  { %1179 = vmatpush.msra.mxu0 %v3698_v23 }
 0x478   :  { %1263 = vmatpush.msra.mxu1 %v1238_v47 }
 0x479   :  { %1180 = vmatpush.msra.mxu0 %v3696_v25 }
 0x47a   :  { %1264 = vmatpush.msra.mxu1 %v1237_v49 }
 0x47b   :  { %1181 = vmatpush.msra.mxu0 %v3694_v27 }
 0x47c   :  { %1265 = vmatpush.msra.mxu1 %v1236_v51 }
 0x47d   :  { %1182 = vmatpush.msra.mxu0 %v3692_v29 }
 0x47e   :  { %1266 = vmatpush.msra.mxu1 %v1235_v54 }
 0x47f   :  { %1183 = vmatpush.msra.mxu0 %v3690_v31 }
 0x480   :  { %1267 = vmatpush.msra.mxu1 %v1234_v56 }
 0x482   :  { %1268 = vmatpush.msra.mxu1 %v1233_v58 }
 0x484   :  { %1269 = vmatpush.msra.mxu1 %v1232_v61 }
 0x486   :  { %1270 = vmatpush.msra.mxu1 %v1231_v63 }
 0x488   :  { %1271 = vmatpush.msra.mxu1 %v1230_v2 }
 0x48a   :  { %1272 = vmatpush.msra.mxu1 %v1229_v4 }
 0x48c   :  { %1273 = vmatpush.msra.mxu1 %v1228_v6 }
 0x48e   :  { %1274 = vmatpush.msra.mxu1 %v1227_v7 }
 0x4dc   :  { %v962_v10 = vpop.f32.mrf.mxu1 }
 0x4dd   :  { %3677 = vmatmul.msk.f32.vlgmr.msra.gmra.mxu2 %vm985_vm10, %v962_v10  ;;  %3679 = vmatmul.msk.f32.vlgmr.msra.gmra.mxu3 %vm985_vm10, %v962_v10  ;;  %v914_v11 = vpop.f32.mrf.mxu0 }
 0x4de   :  { %3681 = vmatmul.msk.f32.vlgmr.msrb.gmra.mxu0 %vm985_vm10, %v914_v11  ;;  %3683 = vmatmul.msk.f32.vlgmr.msrb.gmra.mxu1 %vm985_vm10, %v914_v11 }
 0x4df   :  { %1279 = vmatpush.msra.mxu2 %v1258_v32  ;;  %1319 = vmatpush.msrb.mxu0 %v1258_v32 }
 0x4e0   :  { %1299 = vmatpush.msra.mxu3 %v1242_v39 }
 0x4e1   :  { %1280 = vmatpush.msra.mxu2 %v1257_v33  ;;  %1320 = vmatpush.msrb.mxu0 %v1257_v33 }
 0x4e2   :  { %1300 = vmatpush.msra.mxu3 %v1241_v41 }
 0x4e3   :  { %1281 = vmatpush.msra.mxu2 %v1256_v34  ;;  %1321 = vmatpush.msrb.mxu0 %v1256_v34 }
 0x4e4   :  { %v965_v12 = vpop.f32.mrf.mxu1  ;;  %1301 = vmatpush.msra.mxu3 %v1240_v43 }
 0x4e5   :  { %3678 = vmatmul.msk.f32.gmra.mxu2 %vm985_vm10, %v965_v12  ;;  %3680 = vmatmul.msk.f32.gmra.mxu3 %vm985_vm10, %v965_v12  ;;  %v917_v13 = vpop.f32.mrf.mxu0 }
 0x4e6   :  { %3682 = vmatmul.msk.f32.gmra.mxu0 %vm985_vm10, %v917_v13  ;;  %3684 = vmatmul.msk.f32.gmra.mxu1 %vm985_vm10, %v917_v13 }
 0x4e7   :  { %1282 = vmatpush.msra.mxu2 %v1255_v40  ;;  %1322 = vmatpush.msrb.mxu0 %v1255_v40 }
 0x4e8   :  { %1302 = vmatpush.msra.mxu3 %v1239_v45 }
 0x4e9   :  { %1283 = vmatpush.msra.mxu2 %v1254_v42  ;;  %1323 = vmatpush.msrb.mxu0 %v1254_v42 }
 0x4ea   :  { %1303 = vmatpush.msra.mxu3 %v1238_v47 }
 0x4eb   :  { %1284 = vmatpush.msra.mxu2 %v1253_v44  ;;  %1324 = vmatpush.msrb.mxu0 %v1253_v44 }
 0x4ec   :  { %1304 = vmatpush.msra.mxu3 %v1237_v49 }
 0x4ed   :  { %3687 = vmatmul.msk.f32.vlgmr.msrb.gmra.mxu2 %vm248_vm1, %v3685_v14  ;;  %1325 = vmatpush.msrb.mxu0 %v1252_v46 }
 0x4ee   :  { %1285 = vmatpush.msra.mxu2 %v1252_v46  ;;  %1305 = vmatpush.msra.mxu3 %v1236_v51 }
 0x4ef   :  { %1326 = vmatpush.msrb.mxu0 %v1251_v48 }
 0x4f0   :  { %1286 = vmatpush.msra.mxu2 %v1251_v48  ;;  %1306 = vmatpush.msra.mxu3 %v1235_v54  ;;  %v1363_v54 = vld [vmem:[%s4241_s30 + $0x30] sm:$0xff] }
 0x4f1   :  { %1327 = vmatpush.msrb.mxu0 %v1250_v50  ;;  %1380 = vmatpush.msrb.mxu1 %v1363_v54 }
 0x4f2   :  { %1287 = vmatpush.msra.mxu2 %v1250_v50  ;;  %1307 = vmatpush.msra.mxu3 %v1234_v56  ;;  %v1359_v56 = vld [vmem:[%s4241_s30 + $0x10] sm:$0xff] }
 0x4f3   :  { %1328 = vmatpush.msrb.mxu0 %v1249_v52 }
 0x4f4   :  { %1288 = vmatpush.msra.mxu2 %v1249_v52  ;;  %1308 = vmatpush.msra.mxu3 %v1233_v58 }
 0x4f5   :  { %3688 = vmatmul.msk.f32.gmra.mxu2 %vm248_vm1, %v3686_v15  ;;  %1329 = vmatpush.msrb.mxu0 %v1248_v55 }
 0x4f6   :  { %1289 = vmatpush.msra.mxu2 %v1248_v55  ;;  %1309 = vmatpush.msra.mxu3 %v1232_v61  ;;  %v1361_v55 = vld [vmem:[%s4241_s30 + $0x20] sm:$0xff]  ;;  %v1362_v61 = vld [vmem:[%s4241_s30 + $0x28] sm:$0xff] }
 0x4f7   :  { %1330 = vmatpush.msrb.mxu0 %v1247_v57  ;;  %1381 = vmatpush.msrb.mxu1 %v1361_v55 }
 0x4f8   :  { %1290 = vmatpush.msra.mxu2 %v1247_v57  ;;  %1310 = vmatpush.msra.mxu3 %v1231_v63  ;;  %v1357_v57 = vld [vmem:[%s4241_s30] sm:$0xff]  ;;  %v1360_v63 = vld [vmem:[%s4241_s30 + $0x18] sm:$0xff] }
 0x4f9   :  { %1331 = vmatpush.msrb.mxu0 %v1246_v59  ;;  %1382 = vmatpush.msrb.mxu1 %v1359_v56 }
 0x4fa   :  { %1291 = vmatpush.msra.mxu2 %v1246_v59  ;;  %1311 = vmatpush.msra.mxu3 %v1230_v2 }
 0x4fb   :  { %1332 = vmatpush.msrb.mxu0 %v1245_v62  ;;  %1383 = vmatpush.msrb.mxu1 %v1357_v57 }
 0x4fc   :  { %1292 = vmatpush.msra.mxu2 %v1245_v62  ;;  %1312 = vmatpush.msra.mxu3 %v1229_v4 }
 0x4fd   :  { %1333 = vmatpush.msrb.mxu0 %v1244_v0 }
 0x4fe   :  { %1293 = vmatpush.msra.mxu2 %v1244_v0  ;;  %1313 = vmatpush.msra.mxu3 %v1228_v6  ;;  %v1358_v0 = vld [vmem:[%s4241_s30 + $0x8] sm:$0xff] }
 0x4ff   :  { %1334 = vmatpush.msrb.mxu0 %v1243_v3 }
 0x500   :  { %1294 = vmatpush.msra.mxu2 %v1243_v3  ;;  %1314 = vmatpush.msra.mxu3 %v1227_v7 }
 0x502   :  { %1429 = vmatpush.msrb.mxu2 %v1363_v54  ;;  %v1674_v54 = vld [vmem:[%s5302_s9 + $0x70] sm:$0xff] }
 0x504   :  { %1430 = vmatpush.msrb.mxu2 %v1361_v55  ;;  %v1690_v55 = vld [vmem:[%s5302_s9 + $0xf0] sm:$0xff] }
 0x506   :  { %1431 = vmatpush.msrb.mxu2 %v1359_v56  ;;  %v3736_v56 = vld [vmem:[%s5302_s9 + $0x160] sm:$0xff] }
 0x508   :  { %1432 = vmatpush.msrb.mxu2 %v1357_v57  ;;  %v1673_v57 = vld [vmem:[%s5302_s9 + $0x68] sm:$0xff] }
 0x55b   :  { %v1061_v53 = vpop.f32.mrf.mxu0  ;;  %v1084_v5 = vpop.f32.mrf.mxu1 }
 0x560   :  { %v4594_v35 = vpop.f32.mrf.mxu2  ;;  %v1032_v60 = vpop.f32.mrf.mxu3 }
 0x561   :  { %v1085_v11 = vadd.f32 %v1084_v5, %v1032_v60  ;;  %v1062_v17 = vadd.f32 %v1061_v53, %v4594_v35  ;;  %v1364_v60 = vld [vmem:[%s4241_s30 + $0x38] sm:$0xff]  ;;  %s5313_s30 = sld [smem:[#allocation18_spill]] }
 0x563   :  { %v1064_v1 = vpop.f32.mrf.mxu0  ;;  %v1087_v10 = vpop.f32.mrf.mxu1 }
 0x568   :  { %v4596_v36 = vpop.f32.mrf.mxu2  ;;  %v1035_v8 = vpop.f32.mrf.mxu3 }
 0x569   :  { %v1088_v13 = vadd.f32 %v1087_v10, %v1035_v8  ;;  %v1065_v22 = vadd.f32 %v1064_v1, %v4596_v36 }
 0x570   :  { %v1116_v37 = vpop.f32.mrf.mxu2 }
 0x571   :  { %3705 = vmatmul.msk.f32.vlgmr.msrb.gmra.mxu3 %vm985_vm10, %v1116_v37  ;;  %3707 = vmatmul.msk.f32.vlgmr.msra.gmra.mxu0 %vm985_vm10, %v1116_v37 }
 0x578   :  { %v1119_v38 = vpop.f32.mrf.mxu2 }
 0x579   :  { %3706 = vmatmul.msk.f32.gmra.mxu3 %vm985_vm10, %v1119_v38  ;;  %3708 = vmatmul.msk.f32.gmra.mxu0 %vm985_vm10, %v1119_v38 }
 0x5ee   :  { %v1185_v9 = vpop.f32.mrf.mxu0 }
 0x5ef   :  { %v4631_v14 = vadd.f32 %v1185_v9, %v1085_v11 }
 0x5f1   :  { %v1210_v18 = vmul.f32 %v4631_v14, %v4631_v14 }
 0x5f4   :  { %v1162_v12 = vpop.f32.mrf.mxu3 }
 0x5f5   :  { %v4642_v21 = vadd.f32 %v1162_v12, %v1062_v17  ;;  %v1341_v12 = vld [vmem:[%s4246_s6] sm:$0x1]  ;;  %s5314_s6 = sld [smem:[#allocation19_spill]] }
 0x5f6   :  { %v1188_v15 = vpop.f32.mrf.mxu0 }
 0x5f7   :  { %v4633_v16 = vadd.f32 %v1188_v15, %v1088_v13  ;;  %v1209_v29 = vmul.f32 %v4642_v21, %v4642_v21 }
 0x5f9   :  { %v1202_v19 = vadd.f32 %v4633_v16, %v4631_v14  ;;  %v1212_v20 = vmul.f32 %v4633_v16, %v4633_v16 }
 0x5fb   :  { %v1203_v23 = vrot.slane %v1202_v19, 4  ;;  %v1220_v24 = vadd.f32 %v1212_v20, %v1210_v18  ;;  %v1354_v18 = vld [vmem:[%s5300_s0] sm:$0x1] }
 0x5fc   :  { %v1165_v25 = vpop.f32.mrf.mxu3 }
 0x5fd   :  { %v1204_v26 = vadd.f32 %v1203_v23, %v1202_v19  ;;  %v1221_v27 = vrot.slane %v1220_v24, 4  ;;  %v4645_v28 = vadd.f32 %v1165_v25, %v1065_v22 }
 0x5ff   :  { %v1205_v30 = vrot.slane %v1204_v26, 2  ;;  %v1222_v31 = vadd.f32 %v1221_v27, %v1220_v24  ;;  %v1195_v32 = vadd.f32 %v4645_v28, %v4642_v21  ;;  %v1211_v33 = vmul.f32 %v4645_v28, %v4645_v28 }
 0x601   :  { %v1206_v34 = vadd.f32 %v1205_v30, %v1204_v26  ;;  %v1223_v35 = vrot.slane %v1222_v31, 2  ;;  %v1196_v36 = vrot.slane %v1195_v32, 4  ;;  %v1213_v37 = vadd.f32 %v1211_v33, %v1209_v29 }
 0x603   :  { %v1197_v38 = vadd.f32 %v1196_v36, %v1195_v32  ;;  %v1214_v39 = vrot.slane %v1213_v37, 4  ;;  %v1207_v40 = vrot.slane %v1206_v34, 1  ;;  %v1224_v41 = vadd.f32 %v1223_v35, %v1222_v31 }
 0x605   :  { %v1198_v42 = vrot.slane %v1197_v38, 2  ;;  %v1215_v43 = vadd.f32 %v1214_v39, %v1213_v37  ;;  %v1208_v44 = vadd.f32 %v1207_v40, %v1206_v34  ;;  %v1225_v45 = vrot.slane %v1224_v41, 1 }
 0x607   :  { %v1199_v46 = vadd.f32 %v1198_v42, %v1197_v38  ;;  %v1216_v47 = vrot.slane %v1215_v43, 2  ;;  %1295 = vmatmul.f32.vlgmr.msra.gmra.mxu2 %v1208_v44  ;;  %v1226_v48 = vadd.f32 %v1225_v45, %v1224_v41  ;;  %v3715_v41 = vld [vmem:[%s5301_s5 + $0x8] sm:$0xff]  ;;  %v1475_v42 = vld [vmem:[%s5301_s5] sm:$0xff] }
 0x609   :  { %1335 = vmatmul.f32.vlgmr.msrb.gmra.mxu0 %v1226_v48  ;;  %v1200_v49 = vrot.slane %v1199_v46, 1  ;;  %v1217_v50 = vadd.f32 %v1216_v47, %v1215_v43  ;;  %v3738_v47 = vld [vmem:[%s5302_s9 + $0x170] sm:$0xff]  ;;  %v3721_v48 = vld [vmem:[%s5301_s5 + $0x18] sm:$0xff] }
 0x60b   :  { %v1201_v51 = vadd.f32 %v1200_v49, %v1199_v46  ;;  %v1218_v52 = vrot.slane %v1217_v50, 1  ;;  %v3718_v49 = vld [vmem:[%s5301_s5 + $0x10] sm:$0xff] }
 0x60d   :  { %1275 = vmatmul.f32.vlgmr.msra.gmra.mxu1 %v1201_v51  ;;  %v1219_v53 = vadd.f32 %v1218_v52, %v1217_v50  ;;  %v3755_v50 = vld [vmem:[%s5302_s9 + $0x1f8] sm:$0xff]  ;;  %v3737_v52 = vld [vmem:[%s5302_s9 + $0x168] sm:$0xff] }
 0x60e   :  { %1400 = vmatpush.msra.mxu1 %v1364_v60  ;;  %v1691_v51 = vld [vmem:[%s5302_s9 + $0xf8] sm:$0xff] }
 0x60f   :  { %1315 = vmatmul.f32.vlgmr.msra.gmra.mxu3 %v1219_v53  ;;  %v3754_v53 = vld [vmem:[%s5302_s9 + $0x1f0] sm:$0xff] }
 0x610   :  { %1401 = vmatpush.msra.mxu1 %v1362_v61 }
 0x612   :  { %1402 = vmatpush.msra.mxu1 %v1360_v63 }
 0x614   :  { %1403 = vmatpush.msra.mxu1 %v1358_v0 }
 0x686   :  { %v1336_v1 = vpop.f32.mrf.mxu0 }
 0x68a   :  { %v1276_v58 = vpop.f32.mrf.mxu1  ;;  %v1296_v59 = vpop.f32.mrf.mxu2 }
 0x68b   :  { %v1297_v62 = vadd.f32 %v1296_v59, %v1276_v58  ;;  %v3753_v58 = vld [vmem:[%s5302_s9 + $0x1e8] sm:$0xff] }
 0x68c   :  { %v1689_v59 = vld [vmem:[%s5302_s9 + $0xe8] sm:$0xff] }
 0x68d   :  { %v1339_v3 = vmul.f32 %v1297_v62, %v1297_v62 }
 0x692   :  { %v1316_v2 = vpop.f32.mrf.mxu3 }
 0x693   :  { %v1337_v4 = vadd.f32 %v1336_v1, %v1316_v2  ;;  %v3751_v1 = vld [vmem:[%s5302_s9 + $0x1d8] sm:$0xff] }
 0x694   :  { %v1671_v2 = vld [vmem:[%s5302_s9 + $0x58] sm:$0xff] }
 0x695   :  { %v1340_v5 = vsub.f32 %v1337_v4, %v1339_v3  ;;  %v1687_v3 = vld [vmem:[%s5302_s9 + $0xd8] sm:$0xff]  ;;  %v3733_v4 = vld [vmem:[%s5302_s9 + $0x148] sm:$0xff] }
 0x697   :  { %v1342_v6 = vadd.f32 1e-05, %v1340_v5  ;;  %v3750_v5 = vld [vmem:[%s5302_s9 + $0x1d0] sm:$0xff] }
 0x699   :  { %4103 = vrsqrt.f32 %v1342_v6  ;;  %vm1349_vm12 = vweird.f32 %v1342_v6 }
 0x69f   :  { %v4104_v7 = vpop.eup %4103 }
 0x6a0   :  { %v1344_v8 = vmul.f32 %v4104_v7, %v1342_v6  ;;  %vm1350_vm11 = vweird.f32 %v4104_v7  ;;  %v1670_v6 = vld [vmem:[%s5302_s9 + $0x50] sm:$0xff] }
 0x6a1   :  { %vm1351_vm13 = vmor %vm1349_vm12, %vm1350_vm11 }
 0x6a2   :  { %v1345_v9 = vmul.f32 %v4104_v7, %v1344_v8  ;;  %v3732_v8 = vld [vmem:[%s5302_s9 + $0x140] sm:$0xff] }
 0x6a4   :  { %v1346_v10 = vmul.f32 0.5, %v1345_v9  ;;  %v3749_v9 = vld [vmem:[%s5302_s9 + $0x1c8] sm:$0xff] }
 0x6a6   :  { %v1347_v11 = vsub.f32 1.5, %v1346_v10  ;;  %v1669_v10 = vld [vmem:[%s5302_s9 + $0x48] sm:$0xff] }
 0x6a8   :  { %v1348_v13 = vmul.f32 %v4104_v7, %v1347_v11  ;;  %v1685_v11 = vld [vmem:[%s5302_s9 + $0xc8] sm:$0xff] }
 0x6aa   :  { %v1352_v15 = vsel %vm1351_vm13, %v4104_v7, %v1348_v13  ;;  %v1686_v7 = vld [vmem:[%s5302_s9 + $0xd0] sm:$0xff]  ;;  %v3748_v13 = vld [vmem:[%s5302_s9 + $0x1c0] sm:$0xff] }
 0x6ab   :  { %v1353_v17 = vmul.f32 %v1352_v15, %v1341_v12  ;;  %v3731_v12 = vld [vmem:[%s5302_s9 + $0x138] sm:$0xff]  ;;  %v1668_v15 = vld [vmem:[%s5302_s9 + $0x40] sm:$0xff] }
 0x6ad   :  { %3709 = vmatmul.msk.f32.vlgmr.msrb.gmra.mxu1 %vm155_vm0, %v1353_v17  ;;  %v1355_v19 = vmul.f32 %v1353_v17, %v1297_v62  ;;  %v1672_v62 = vld [vmem:[%s5302_s9 + $0x60] sm:$0xff] }
 0x6ae   :  { %1449 = vmatpush.msrb.mxu1 %v1364_v60  ;;  %v3735_v60 = vld [vmem:[%s5302_s9 + $0x158] sm:$0xff] }
 0x6af   :  { %v1356_v20 = vsub.f32 %v1354_v18, %v1355_v19  ;;  %v3730_v18 = vld [vmem:[%s5302_s9 + $0x130] sm:$0xff]  ;;  %v3747_v19 = vld [vmem:[%s5302_s9 + $0x1b8] sm:$0xff] }
 0x6b0   :  { %1450 = vmatpush.msrb.mxu1 %v1362_v61  ;;  %v3752_v61 = vld [vmem:[%s5302_s9 + $0x1e0] sm:$0xff] }
 0x6b1   :  { %3711 = vmatmul.msk.f32.vlgmr.msrb.gmra.mxu2 %vm155_vm0, %v1356_v20 }
 0x6b2   :  { %1451 = vmatpush.msrb.mxu1 %v1360_v63  ;;  %v1688_v63 = vld [vmem:[%s5302_s9 + $0xe0] sm:$0xff] }
 0x6b4   :  { %1452 = vmatpush.msrb.mxu1 %v1358_v0  ;;  %v3734_v0 = vld [vmem:[%s5302_s9 + $0x150] sm:$0xff] }
 0x6b5   :  { %3710 = vmatmul.msk.f32.vlgmr.msra.gmra.mxu1 %vm155_vm0, %v1353_v17  ;;  %v1684_v17 = vld [vmem:[%s5302_s9 + $0xc0] sm:$0xff] }
 0x6bd   :  { %3712 = vmatmul.msk.f32.vlgmr.msrb.gmra.mxu1 %vm155_vm0, %v1356_v20  ;;  %v1667_v20 = vld [vmem:[%s5302_s9 + $0x38] sm:$0xff] }
 0x72a   :  { %v1385_v22 = vpop.f32.mrf.mxu1 }
 0x72b   :  { %v1408_v23 = vperm.slane %v1385_v22, 0  ;;  %v1683_v22 = vld [vmem:[%s5302_s9 + $0xb8] sm:$0xff] }
 0x72d   :  { %v1410_v26 = vmul.f32 %v1408_v23, %v4642_v21  ;;  %v1412_v27 = vmul.f32 %v1408_v23, %v4645_v28  ;;  %v3729_v23 = vld [vmem:[%s5302_s9 + $0x128] sm:$0xff] }
 0x732   :  { %v1405_v24 = vpop.f32.mrf.mxu1 }
 0x733   :  { %v1409_v30 = vperm.slane %v1405_v24, 0  ;;  %v3746_v24 = vld [vmem:[%s5302_s9 + $0x1b0] sm:$0xff] }
 0x734   :  { %v1434_v25 = vpop.f32.mrf.mxu2 }
 0x735   :  { %v1457_v29 = vperm.slane %v1434_v25, 0  ;;  %v1411_v36 = vmul.f32 %v1409_v30, %v4631_v14  ;;  %v1413_v37 = vmul.f32 %v1409_v30, %v4633_v16  ;;  %v3739_v14 = vld [vmem:[%s5302_s9 + $0x178] sm:$0xff]  ;;  %v1666_v25 = vld [vmem:[%s5302_s9 + $0x30] sm:$0xff]  ;;  %v1665_v30 = vld [vmem:[%s5302_s9 + $0x28] sm:$0xff] }
 0x736   :  { %v1675_v16 = vld [vmem:[%s5302_s9 + $0x78] sm:$0xff] }
 0x737   :  { %v1459_v31 = vadd.f32 %v1457_v29, %v1410_v26  ;;  %v1461_v32 = vadd.f32 %v1457_v29, %v1412_v27  ;;  %v1682_v26 = vld [vmem:[%s5302_s9 + $0xb0] sm:$0xff]  ;;  %v3728_v27 = vld [vmem:[%s5302_s9 + $0x120] sm:$0xff]  ;;  %v3745_v29 = vld [vmem:[%s5302_s9 + $0x1a8] sm:$0xff] }
 0x739   :  { %v1467_v33 = vmul.f32 0.01, %v1459_v31  ;;  %v1469_v34 = vmul.f32 0.01, %v1461_v32  ;;  %vm1465_vm14 = vcmp.ge.f32.partialorder %v1461_v32, 0.0  ;;  %vm1463_vm15 = vcmp.ge.f32.partialorder %v1459_v31, 0.0 }
 0x73a   :  { %v1454_v35 = vpop.f32.mrf.mxu1 }
 0x73b   :  { %v1458_v38 = vperm.slane %v1454_v35, 0  ;;  %v1473_v39 = vsel %vm1465_vm14, %v1461_v32, %v1469_v34  ;;  %v1471_v40 = vsel %vm1463_vm15, %v1459_v31, %v1467_v33  ;;  %v1681_v31 = vld [vmem:[%s5302_s9 + $0xa8] sm:$0xff]  ;;  %v3727_v32 = vld [vmem:[%s5302_s9 + $0x118] sm:$0xff]  ;;  %v3744_v33 = vld [vmem:[%s5302_s9 + $0x1a0] sm:$0xff]  ;;  %vm3502_vm14 = vcmask 254976  }
 0x73c   :  { %1493 = vmatpush.msra.mxu0 %v1473_v39  ;;  %1538 = vmatpush.msra.mxu2 %v1473_v39  ;;  %v1664_v34 = vld [vmem:[%s5302_s9 + $0x20] sm:$0xff] }
 0x73d   :  { %v1460_v21 = vadd.f32 %v1458_v38, %v1411_v36  ;;  %v1462_v28 = vadd.f32 %v1458_v38, %v1413_v37  ;;  %v1680_v35 = vld [vmem:[%s5302_s9 + $0xa0] sm:$0xff]  ;;  %v3726_v36 = vld [vmem:[%s5302_s9 + $0x110] sm:$0xff]  ;;  %v3743_v37 = vld [vmem:[%s5302_s9 + $0x198] sm:$0xff] }
 0x73e   :  { %1494 = vmatpush.msra.mxu0 %v1471_v40  ;;  %1539 = vmatpush.msra.mxu2 %v1471_v40  ;;  %v1663_v38 = vld [vmem:[%s5302_s9 + $0x18] sm:$0xff] }
 0x73f   :  { %v1468_v43 = vmul.f32 0.01, %v1460_v21  ;;  %v1470_v44 = vmul.f32 0.01, %v1462_v28  ;;  %vm1466_vm0 = vcmp.ge.f32.partialorder %v1462_v28, 0.0  ;;  %vm1464_vm2 = vcmp.ge.f32.partialorder %v1460_v21, 0.0  ;;  %3716 = vmatmul.msk.f32.vlgmr.msra.gmra.mxu2 %vm248_vm1, %v3715_v41  ;;  %3713 = vmatmul.msk.f32.vlgmr.msra.gmra.mxu0 %vm248_vm1, %v1475_v42 }
 0x740   :  { %1585 = vmatpush.msrb.mxu0 %v1473_v39  ;;  %1632 = vmatpush.msrb.mxu2 %v1473_v39  ;;  %v1679_v39 = vld [vmem:[%s5302_s9 + $0x98] sm:$0xff] }
 0x741   :  { %v1474_v45 = vsel %vm1466_vm0, %v1462_v28, %v1470_v44  ;;  %v1472_v46 = vsel %vm1464_vm2, %v1460_v21, %v1468_v43  ;;  %v3725_v21 = vld [vmem:[%s5302_s9 + $0x108] sm:$0xff]  ;;  %v3742_v28 = vld [vmem:[%s5302_s9 + $0x190] sm:$0xff]  ;;  %v3803_v44 = vld [vmem:[%s5302_s9 + $0x378] sm:$0xff] }
 0x742   :  { %1586 = vmatpush.msrb.mxu0 %v1471_v40  ;;  %1633 = vmatpush.msrb.mxu2 %v1471_v40  ;;  %v1662_v40 = vld [vmem:[%s5302_s9 + $0x10] sm:$0xff]  ;;  %v3741_v43 = vld [vmem:[%s5302_s9 + $0x188] sm:$0xff] }
 0x743   :  { %1513 = vmatpush.msra.mxu1 %v1474_v45  ;;  %1558 = vmatpush.msrb.mxu3 %v1474_v45 }
 0x744   :  { %1765 = vmatpush.msra.mxu2 %v3739_v14  ;;  %1692 = vmatpush.msra.mxu0 %v1675_v16  ;;  %v1661_v14 = vld [vmem:[%s5302_s9 + $0x8] sm:$0xff] }
 0x745   :  { %1514 = vmatpush.msra.mxu1 %v1472_v46  ;;  %1559 = vmatpush.msrb.mxu3 %v1472_v46  ;;  %v1677_v16 = vld [vmem:[%s5302_s9 + $0x88] sm:$0xff] }
 0x746   :  { %3717 = vmatmul.msk.f32.vlgmr.msrb.gmra.mxu3 %vm248_vm1, %v3715_v41  ;;  %3714 = vmatmul.msk.f32.vlgmr.msra.gmra.mxu1 %vm248_vm1, %v1475_v42  ;;  %v1678_v41 = vld [vmem:[%s5302_s9 + $0x90] sm:$0xff]  ;;  %v3724_v42 = vld [vmem:[%s5302_s9 + $0x100] sm:$0xff] }
 0x747   :  { %1605 = vmatpush.msrb.mxu1 %v1474_v45  ;;  %1652 = vmatpush.msra.mxu3 %v1474_v45  ;;  %v3740_v45 = vld [vmem:[%s5302_s9 + $0x180] sm:$0xff] }
 0x748   :  { %1766 = vmatpush.msra.mxu2 %v3738_v47  ;;  %3719 = vmatmul.msk.f32.vlgmr.msrb.gmra.mxu0 %vm248_vm1, %v3718_v49  ;;  %v3819_v47 = vld [vmem:[%s5302_s9 + $0x3f8] sm:$0xff] }
 0x749   :  { %1606 = vmatpush.msrb.mxu1 %v1472_v46  ;;  %1653 = vmatpush.msra.mxu3 %v1472_v46  ;;  %v3802_v46 = vld [vmem:[%s5302_s9 + $0x370] sm:$0xff] }
 0x74a   :  { %3722 = vmatmul.msk.f32.vlgmr.msrb.gmra.mxu2 %vm248_vm1, %v3721_v48  ;;  %1693 = vmatpush.msra.mxu0 %v1674_v54  ;;  %v3770_v54 = vld [vmem:[%s5302_s9 + $0x270] sm:$0xff] }
 0x74b   :  { %1785 = vmatpush.msrb.mxu3 %v3755_v50  ;;  %1712 = vmatpush.msra.mxu1 %v1691_v51  ;;  %v3771_v50 = vld [vmem:[%s5302_s9 + $0x278] sm:$0xff]  ;;  %v3818_v51 = vld [vmem:[%s5302_s9 + $0x3f0] sm:$0xff] }
 0x74c   :  { %1767 = vmatpush.msra.mxu2 %v3737_v52  ;;  %1694 = vmatpush.msra.mxu0 %v1673_v57  ;;  %v3787_v52 = vld [vmem:[%s5302_s9 + $0x2f8] sm:$0xff]  ;;  %v3800_v57 = vld [vmem:[%s5302_s9 + $0x360] sm:$0xff] }
 0x74d   :  { %1786 = vmatpush.msrb.mxu3 %v3754_v53  ;;  %1713 = vmatpush.msra.mxu1 %v1690_v55  ;;  %v3801_v53 = vld [vmem:[%s5302_s9 + $0x368] sm:$0xff] }
 0x74e   :  { %1768 = vmatpush.msra.mxu2 %v3736_v56  ;;  %3723 = vmatmul.msk.f32.vlgmr.msra.gmra.mxu3 %vm248_vm1, %v3721_v48  ;;  %v1660_v48 = vld [vmem:[%s5302_s9] sm:$0xff]  ;;  %v3817_v55 = vld [vmem:[%s5302_s9 + $0x3e8] sm:$0xff]  ;;  %v3786_v56 = vld [vmem:[%s5302_s9 + $0x2f0] sm:$0xff] }
 0x74f   :  { %3720 = vmatmul.msk.f32.vlgmr.msrb.gmra.mxu1 %vm248_vm1, %v3718_v49  ;;  %1787 = vmatpush.msrb.mxu3 %v3753_v58  ;;  %v1676_v49 = vld [vmem:[%s5302_s9 + $0x80] sm:$0xff]  ;;  %v3769_v58 = vld [vmem:[%s5302_s9 + $0x268] sm:$0xff] }
 0x750   :  { %1714 = vmatpush.msra.mxu1 %v1689_v59  ;;  %1769 = vmatpush.msra.mxu2 %v3735_v60  ;;  %v3816_v59 = vld [vmem:[%s5302_s9 + $0x3e0] sm:$0xff]  ;;  %v3785_v60 = vld [vmem:[%s5302_s9 + $0x2e8] sm:$0xff] }
 0x751   :  { %1788 = vmatpush.msrb.mxu3 %v3752_v61  ;;  %1695 = vmatpush.msra.mxu0 %v1672_v62  ;;  %v3799_v61 = vld [vmem:[%s5302_s9 + $0x358] sm:$0xff] }
 0x752   :  { %1715 = vmatpush.msra.mxu1 %v1688_v63  ;;  %1770 = vmatpush.msra.mxu2 %v3734_v0  ;;  %v3815_v62 = vld [vmem:[%s5302_s9 + $0x3d8] sm:$0xff]  ;;  %v3768_v63 = vld [vmem:[%s5302_s9 + $0x260] sm:$0xff] }
 0x753   :  { %1789 = vmatpush.msrb.mxu3 %v3751_v1  ;;  %1696 = vmatpush.msra.mxu0 %v1671_v2  ;;  %v3767_v0 = vld [vmem:[%s5302_s9 + $0x258] sm:$0xff]  ;;  %v3798_v1 = vld [vmem:[%s5302_s9 + $0x350] sm:$0xff] }
 0x754   :  { %1716 = vmatpush.msra.mxu1 %v1687_v3  ;;  %1771 = vmatpush.msra.mxu2 %v3733_v4  ;;  %v3766_v2 = vld [vmem:[%s5302_s9 + $0x250] sm:$0xff]  ;;  %v3784_v3 = vld [vmem:[%s5302_s9 + $0x2e0] sm:$0xff]  ;;  %v3797_v4 = vld [vmem:[%s5302_s9 + $0x348] sm:$0xff] }
 0x755   :  { %1790 = vmatpush.msrb.mxu3 %v3750_v5  ;;  %1697 = vmatpush.msra.mxu0 %v1670_v6  ;;  %v3765_v5 = vld [vmem:[%s5302_s9 + $0x248] sm:$0xff]  ;;  %v3814_v6 = vld [vmem:[%s5302_s9 + $0x3d0] sm:$0xff] }
 0x756   :  { %1717 = vmatpush.msra.mxu1 %v1686_v7  ;;  %1772 = vmatpush.msra.mxu2 %v3732_v8  ;;  %v3783_v7 = vld [vmem:[%s5302_s9 + $0x2d8] sm:$0xff]  ;;  %v3796_v8 = vld [vmem:[%s5302_s9 + $0x340] sm:$0xff] }
 0x757   :  { %1791 = vmatpush.msrb.mxu3 %v3749_v9  ;;  %1698 = vmatpush.msra.mxu0 %v1669_v10  ;;  %v3764_v9 = vld [vmem:[%s5302_s9 + $0x240] sm:$0xff]  ;;  %v3782_v10 = vld [vmem:[%s5302_s9 + $0x2d0] sm:$0xff] }
 0x758   :  { %1718 = vmatpush.msra.mxu1 %v1685_v11  ;;  %1773 = vmatpush.msra.mxu2 %v3731_v12  ;;  %v3795_v11 = vld [vmem:[%s5302_s9 + $0x338] sm:$0xff] }
 0x759   :  { %1792 = vmatpush.msrb.mxu3 %v3748_v13  ;;  %1699 = vmatpush.msra.mxu0 %v1668_v15  ;;  %v3763_v12 = vld [vmem:[%s5302_s9 + $0x238] sm:$0xff]  ;;  %v3813_v13 = vld [vmem:[%s5302_s9 + $0x3c8] sm:$0xff] }
 0x75a   :  { %1719 = vmatpush.msra.mxu1 %v1684_v17  ;;  %1774 = vmatpush.msra.mxu2 %v3730_v18  ;;  %v3781_v15 = vld [vmem:[%s5302_s9 + $0x2c8] sm:$0xff]  ;;  %v3794_v17 = vld [vmem:[%s5302_s9 + $0x330] sm:$0xff]  ;;  %v3812_v18 = vld [vmem:[%s5302_s9 + $0x3c0] sm:$0xff] }
 0x75b   :  { %1793 = vmatpush.msrb.mxu3 %v3747_v19  ;;  %1700 = vmatpush.msra.mxu0 %v1667_v20  ;;  %v3811_v19 = vld [vmem:[%s5302_s9 + $0x3b8] sm:$0xff]  ;;  %v3762_v20 = vld [vmem:[%s5302_s9 + $0x230] sm:$0xff] }
 0x75c   :  { %1720 = vmatpush.msra.mxu1 %v1683_v22  ;;  %1775 = vmatpush.msra.mxu2 %v3729_v23  ;;  %v3780_v22 = vld [vmem:[%s5302_s9 + $0x2c0] sm:$0xff]  ;;  %v3793_v23 = vld [vmem:[%s5302_s9 + $0x328] sm:$0xff] }
 0x75d   :  { %1794 = vmatpush.msrb.mxu3 %v3746_v24  ;;  %1701 = vmatpush.msra.mxu0 %v1666_v25  ;;  %v3761_v24 = vld [vmem:[%s5302_s9 + $0x228] sm:$0xff]  ;;  %v3810_v25 = vld [vmem:[%s5302_s9 + $0x3b0] sm:$0xff] }
 0x75e   :  { %1721 = vmatpush.msra.mxu1 %v1682_v26  ;;  %1776 = vmatpush.msra.mxu2 %v3728_v27  ;;  %v3779_v26 = vld [vmem:[%s5302_s9 + $0x2b8] sm:$0xff]  ;;  %v3792_v27 = vld [vmem:[%s5302_s9 + $0x320] sm:$0xff] }
 0x75f   :  { %1795 = vmatpush.msrb.mxu3 %v3745_v29  ;;  %1702 = vmatpush.msra.mxu0 %v1665_v30  ;;  %v3760_v29 = vld [vmem:[%s5302_s9 + $0x220] sm:$0xff]  ;;  %v3778_v30 = vld [vmem:[%s5302_s9 + $0x2b0] sm:$0xff] }
 0x760   :  { %1722 = vmatpush.msra.mxu1 %v1681_v31  ;;  %1777 = vmatpush.msra.mxu2 %v3727_v32  ;;  %v3791_v31 = vld [vmem:[%s5302_s9 + $0x318] sm:$0xff] }
 0x761   :  { %1796 = vmatpush.msrb.mxu3 %v3744_v33  ;;  %1703 = vmatpush.msra.mxu0 %v1664_v34  ;;  %v3759_v32 = vld [vmem:[%s5302_s9 + $0x218] sm:$0xff]  ;;  %v3809_v33 = vld [vmem:[%s5302_s9 + $0x3a8] sm:$0xff] }
 0x762   :  { %1723 = vmatpush.msra.mxu1 %v1680_v35  ;;  %1778 = vmatpush.msra.mxu2 %v3726_v36  ;;  %v3777_v34 = vld [vmem:[%s5302_s9 + $0x2a8] sm:$0xff]  ;;  %v3790_v35 = vld [vmem:[%s5302_s9 + $0x310] sm:$0xff]  ;;  %v3808_v36 = vld [vmem:[%s5302_s9 + $0x3a0] sm:$0xff] }
 0x763   :  { %1797 = vmatpush.msrb.mxu3 %v3743_v37  ;;  %1704 = vmatpush.msra.mxu0 %v1663_v38  ;;  %v3758_v37 = vld [vmem:[%s5302_s9 + $0x210] sm:$0xff]  ;;  %v3776_v38 = vld [vmem:[%s5302_s9 + $0x2a0] sm:$0xff] }
 0x764   :  { %1724 = vmatpush.msra.mxu1 %v1679_v39  ;;  %1779 = vmatpush.msra.mxu2 %v3725_v21  ;;  %v3789_v39 = vld [vmem:[%s5302_s9 + $0x308] sm:$0xff] }
 0x765   :  { %1798 = vmatpush.msrb.mxu3 %v3742_v28  ;;  %1705 = vmatpush.msra.mxu0 %v1662_v40  ;;  %v3757_v21 = vld [vmem:[%s5302_s9 + $0x208] sm:$0xff]  ;;  %v3807_v28 = vld [vmem:[%s5302_s9 + $0x398] sm:$0xff] }
 0x766   :  { %1725 = vmatpush.msra.mxu1 %v1678_v41  ;;  %1780 = vmatpush.msra.mxu2 %v3724_v42  ;;  %v3775_v40 = vld [vmem:[%s5302_s9 + $0x298] sm:$0xff]  ;;  %v3806_v41 = vld [vmem:[%s5302_s9 + $0x390] sm:$0xff] }
 0x767   :  { %1799 = vmatpush.msrb.mxu3 %v3741_v43  ;;  %1706 = vmatpush.msra.mxu0 %v1661_v14  ;;  %v3774_v42 = vld [vmem:[%s5302_s9 + $0x290] sm:$0xff]  ;;  %v3788_v43 = vld [vmem:[%s5302_s9 + $0x300] sm:$0xff]  ;;  %v3805_v14 = vld [vmem:[%s5302_s9 + $0x388] sm:$0xff] }
 0x768   :  { %1913 = vmatpush.msrb.mxu2 %v3803_v44  ;;  %1726 = vmatpush.msra.mxu1 %v1677_v16  ;;  %v3756_v44 = vld [vmem:[%s5302_s9 + $0x200] sm:$0xff] }
 0x769   :  { %1800 = vmatpush.msrb.mxu3 %v3740_v45  ;;  %1707 = vmatpush.msra.mxu0 %v1660_v48  ;;  %v3804_v16 = vld [vmem:[%s5302_s9 + $0x380] sm:$0xff]  ;;  %v3773_v45 = vld [vmem:[%s5302_s9 + $0x288] sm:$0xff] }
 0x76a   :  { %1914 = vmatpush.msrb.mxu2 %v3802_v46  ;;  %1727 = vmatpush.msra.mxu1 %v1676_v49  ;;  %v3772_v46 = vld [vmem:[%s5302_s9 + $0x280] sm:$0xff] }
 0x76b   :  { %1933 = vmatpush.msra.mxu3 %v3819_v47  ;;  %1839 = vmatpush.msrb.mxu0 %v3771_v50 }
 0x76c   :  { %1859 = vmatpush.msrb.mxu1 %v3787_v52  ;;  %1915 = vmatpush.msrb.mxu2 %v3801_v53 }
 0x76d   :  { %1934 = vmatpush.msra.mxu3 %v3818_v51  ;;  %1840 = vmatpush.msrb.mxu0 %v3770_v54 }
 0x76e   :  { %1860 = vmatpush.msrb.mxu1 %v3786_v56  ;;  %1916 = vmatpush.msrb.mxu2 %v3800_v57 }
 0x76f   :  { %1935 = vmatpush.msra.mxu3 %v3817_v55  ;;  %1841 = vmatpush.msrb.mxu0 %v3769_v58  ;;  %v3853_v58 = vld [vmem:[%s5303_s13 + $0x1f0] sm:$0xff] }
 0x770   :  { %1861 = vmatpush.msrb.mxu1 %v3785_v60  ;;  %1917 = vmatpush.msrb.mxu2 %v3799_v61 }
 0x771   :  { %1936 = vmatpush.msra.mxu3 %v3816_v59  ;;  %1842 = vmatpush.msrb.mxu0 %v3768_v63  ;;  %v3851_v59 = vld [vmem:[%s5303_s13 + $0x1e0] sm:$0xff]  ;;  %v3849_v63 = vld [vmem:[%s5303_s13 + $0x1d0] sm:$0xff] }
 0x772   :  { %1918 = vmatpush.msrb.mxu2 %v3798_v1  ;;  %1862 = vmatpush.msrb.mxu1 %v3784_v3  ;;  %v3845_v1 = vld [vmem:[%s5303_s13 + $0x1b0] sm:$0xff] }
 0x773   :  { %1937 = vmatpush.msra.mxu3 %v3815_v62  ;;  %1843 = vmatpush.msrb.mxu0 %v3767_v0  ;;  %v3847_v0 = vld [vmem:[%s5303_s13 + $0x1c0] sm:$0xff]  ;;  %v3841_v3 = vld [vmem:[%s5303_s13 + $0x190] sm:$0xff] }
 0x774   :  { %1919 = vmatpush.msrb.mxu2 %v3797_v4  ;;  %1863 = vmatpush.msrb.mxu1 %v3783_v7  ;;  %v3839_v4 = vld [vmem:[%s5303_s13 + $0x180] sm:$0xff]  ;;  %v3833_v7 = vld [vmem:[%s5303_s13 + $0x150] sm:$0xff] }
 0x775   :  { %1844 = vmatpush.msrb.mxu0 %v3766_v2  ;;  %1938 = vmatpush.msra.mxu3 %v3814_v6  ;;  %v3843_v2 = vld [vmem:[%s5303_s13 + $0x1a0] sm:$0xff] }
 0x776   :  { %1920 = vmatpush.msrb.mxu2 %v3796_v8  ;;  %1864 = vmatpush.msrb.mxu1 %v3782_v10  ;;  %v3835_v6 = vld [vmem:[%s5303_s13 + $0x160] sm:$0xff] }
 0x777   :  { %1845 = vmatpush.msrb.mxu0 %v3765_v5  ;;  %1939 = vmatpush.msra.mxu3 %v3813_v13  ;;  %v3837_v5 = vld [vmem:[%s5303_s13 + $0x170] sm:$0xff]  ;;  %v3831_v8 = vld [vmem:[%s5303_s13 + $0x140] sm:$0xff]  ;;  %v3854_v13 = vld [vmem:[%s5303_s13 + $0x1f8] sm:$0xff] }
 0x778   :  { %1921 = vmatpush.msrb.mxu2 %v3795_v11  ;;  %1865 = vmatpush.msrb.mxu1 %v3781_v15  ;;  %v3827_v10 = vld [vmem:[%s5303_s13 + $0x120] sm:$0xff]  ;;  %v3825_v11 = vld [vmem:[%s5303_s13 + $0x110] sm:$0xff]  ;;  %v3852_v15 = vld [vmem:[%s5303_s13 + $0x1e8] sm:$0xff] }
 0x779   :  { %1846 = vmatpush.msrb.mxu0 %v3764_v9  ;;  %1940 = vmatpush.msra.mxu3 %v3812_v18  ;;  %v3829_v9 = vld [vmem:[%s5303_s13 + $0x130] sm:$0xff]  ;;  %v3848_v18 = vld [vmem:[%s5303_s13 + $0x1c8] sm:$0xff] }
 0x77a   :  { %1922 = vmatpush.msrb.mxu2 %v3794_v17  ;;  %1866 = vmatpush.msrb.mxu1 %v3780_v22  ;;  %v3850_v17 = vld [vmem:[%s5303_s13 + $0x1d8] sm:$0xff] }
 0x77b   :  { %1847 = vmatpush.msrb.mxu0 %v3763_v12  ;;  %1941 = vmatpush.msra.mxu3 %v3811_v19  ;;  %v3823_v12 = vld [vmem:[%s5303_s13 + $0x100] sm:$0xff]  ;;  %v3846_v19 = vld [vmem:[%s5303_s13 + $0x1b8] sm:$0xff] }
 0x77c   :  { %1923 = vmatpush.msrb.mxu2 %v3793_v23  ;;  %1867 = vmatpush.msrb.mxu1 %v3779_v26 }
 0x77d   :  { %1848 = vmatpush.msrb.mxu0 %v3762_v20  ;;  %1942 = vmatpush.msra.mxu3 %v3810_v25  ;;  %v3844_v20 = vld [vmem:[%s5303_s13 + $0x1a8] sm:$0xff] }
 0x77e   :  { %1924 = vmatpush.msrb.mxu2 %v3792_v27  ;;  %1868 = vmatpush.msrb.mxu1 %v3778_v30 }
 0x77f   :  { %1849 = vmatpush.msrb.mxu0 %v3761_v24  ;;  %1943 = vmatpush.msra.mxu3 %v3809_v33 }
 0x780   :  { %1925 = vmatpush.msrb.mxu2 %v3791_v31  ;;  %1869 = vmatpush.msrb.mxu1 %v3777_v34 }
 0x781   :  { %1850 = vmatpush.msrb.mxu0 %v3760_v29  ;;  %1944 = vmatpush.msra.mxu3 %v3808_v36 }
 0x782   :  { %1926 = vmatpush.msrb.mxu2 %v3790_v35  ;;  %1870 = vmatpush.msrb.mxu1 %v3776_v38  ;;  %v3821_v38 = vld [vmem:[%s5304_s17 + $0x8] sm:$0xff] }
 0x783   :  { %1851 = vmatpush.msrb.mxu0 %v3759_v32  ;;  %1945 = vmatpush.msra.mxu3 %v3807_v28  ;;  %v2008_v28 = vld [vmem:[%s5303_s13 + $0xf0] sm:$0xff] }
 0x784   :  { %1927 = vmatpush.msrb.mxu2 %v3789_v39  ;;  %1871 = vmatpush.msrb.mxu1 %v3775_v40  ;;  %v1954_v39 = vld [vmem:[%s5304_s17] sm:$0xff]  ;;  %v2007_v40 = vld [vmem:[%s5303_s13 + $0xe8] sm:$0xff] }
 0x785   :  { %1852 = vmatpush.msrb.mxu0 %v3758_v37  ;;  %1946 = vmatpush.msra.mxu3 %v3806_v41  ;;  %v2006_v41 = vld [vmem:[%s5303_s13 + $0xe0] sm:$0xff] }
 0x786   :  { %1928 = vmatpush.msrb.mxu2 %v3788_v43  ;;  %1872 = vmatpush.msrb.mxu1 %v3774_v42  ;;  %v2005_v42 = vld [vmem:[%s5303_s13 + $0xd8] sm:$0xff]  ;;  %v2004_v43 = vld [vmem:[%s5303_s13 + $0xd0] sm:$0xff] }
 0x787   :  { %1853 = vmatpush.msrb.mxu0 %v3757_v21  ;;  %1947 = vmatpush.msra.mxu3 %v3805_v14  ;;  %v2009_v21 = vld [vmem:[%s5303_s13 + $0xf8] sm:$0xff]  ;;  %v2002_v14 = vld [vmem:[%s5303_s13 + $0xc0] sm:$0xff] }
 0x788   :  { %1873 = vmatpush.msrb.mxu1 %v3773_v45  ;;  %v3840_v45 = vld [vmem:[%s5303_s13 + $0x188] sm:$0xff] }
 0x789   :  { %1854 = vmatpush.msrb.mxu0 %v3756_v44  ;;  %1948 = vmatpush.msra.mxu3 %v3804_v16  ;;  %v3842_v44 = vld [vmem:[%s5303_s13 + $0x198] sm:$0xff]  ;;  %v2003_v16 = vld [vmem:[%s5303_s13 + $0xc8] sm:$0xff] }
 0x78a   :  { %1874 = vmatpush.msrb.mxu1 %v3772_v46  ;;  %v2000_v46 = vld [vmem:[%s5303_s13 + $0xb0] sm:$0xff] }
 0x7bc   :  { %v1496_v47 = vpop.f32.mrf.mxu0 }
 0x7c2   :  { %v1541_v49 = vpop.f32.mrf.mxu2 }
 0x7c3   :  { %v1516_v48 = vpop.f32.mrf.mxu1  ;;  %v1564_v50 = vmax.f32 %v1496_v47, %v1541_v49  ;;  %v2001_v47 = vld [vmem:[%s5303_s13 + $0xb8] sm:$0xff]  ;;  %v1998_v49 = vld [vmem:[%s5303_s13 + $0xa0] sm:$0xff] }
 0x7c5   :  { %v1588_v51 = vpop.f32.mrf.mxu0 }
 0x7c6   :  { %v1611_v53 = vmax.f32 %v1564_v50, %v1588_v51  ;;  %v1999_v50 = vld [vmem:[%s5303_s13 + $0xa8] sm:$0xff] }
 0x7c7   :  { %v3836_v51 = vld [vmem:[%s5303_s13 + $0x168] sm:$0xff] }
 0x7c9   :  { %v1561_v52 = vpop.f32.mrf.mxu3 }
 0x7ca   :  { %v1565_v54 = vmax.f32 %v1516_v48, %v1561_v52  ;;  %v3838_v48 = vld [vmem:[%s5303_s13 + $0x178] sm:$0xff]  ;;  %v1996_v52 = vld [vmem:[%s5303_s13 + $0x90] sm:$0xff] }
 0x7cc   :  { %v1608_v56 = vpop.f32.mrf.mxu1 }
 0x7cd   :  { %v1635_v55 = vpop.f32.mrf.mxu2  ;;  %v1612_v60 = vmax.f32 %v1565_v54, %v1608_v56  ;;  %v3834_v54 = vld [vmem:[%s5303_s13 + $0x158] sm:$0xff]  ;;  %v1995_v56 = vld [vmem:[%s5303_s13 + $0x88] sm:$0xff] }
 0x7ce   :  { %v1658_v57 = vmax.f32 %v1611_v53, %v1635_v55  ;;  %v1997_v53 = vld [vmem:[%s5303_s13 + $0x98] sm:$0xff]  ;;  %v1994_v55 = vld [vmem:[%s5303_s13 + $0x80] sm:$0xff] }
 0x7d0   :  { %1781 = vmatmul.f32.vlgmr.msra.gmra.mxu2 %v1658_v57  ;;  %1708 = vmatmul.f32.vlgmr.msra.gmra.mxu0 %v1658_v57 }
 0x7d1   :  { %2068 = vmatpush.msra.mxu2 %v3853_v58  ;;  %v1655_v61 = vpop.f32.mrf.mxu3  ;;  %v1992_v58 = vld [vmem:[%s5303_s13 + $0x70] sm:$0xff] }
 0x7d2   :  { %v1659_v62 = vmax.f32 %v1612_v60, %v1655_v61  ;;  %v3830_v60 = vld [vmem:[%s5303_s13 + $0x138] sm:$0xff]  ;;  %v1990_v61 = vld [vmem:[%s5303_s13 + $0x60] sm:$0xff] }
 0x7d3   :  { %2069 = vmatpush.msra.mxu2 %v3851_v59  ;;  %v1993_v59 = vld [vmem:[%s5303_s13 + $0x78] sm:$0xff] }
 0x7d4   :  { %1801 = vmatmul.f32.vlgmr.msrb.gmra.mxu3 %v1659_v62  ;;  %1728 = vmatmul.f32.vlgmr.msra.gmra.mxu1 %v1659_v62 }
 0x7d5   :  { %2070 = vmatpush.msra.mxu2 %v3849_v63  ;;  %2088 = vmatpush.msrb.mxu3 %v3854_v13  ;;  %v3828_v63 = vld [vmem:[%s5303_s13 + $0x128] sm:$0xff] }
 0x7d6   :  { %v1979_v13 = vld [vmem:[%s5303_s13 + $0x8] sm:$0xff] }
 0x7d7   :  { %2071 = vmatpush.msra.mxu2 %v3847_v0  ;;  %2089 = vmatpush.msrb.mxu3 %v3852_v15  ;;  %v1988_v0 = vld [vmem:[%s5303_s13 + $0x50] sm:$0xff] }
 0x7d8   :  { %1929 = vmatmul.f32.vlgmr.msrb.gmra.mxu2 %v1658_v57  ;;  %1855 = vmatmul.f32.vlgmr.msrb.gmra.mxu0 %v1658_v57  ;;  %v3832_v57 = vld [vmem:[%s5303_s13 + $0x148] sm:$0xff]  ;;  %v3887_v15 = vld [vmem:[%s5303_s13 + $0x2f0] sm:$0xff] }
 0x7d9   :  { %2072 = vmatpush.msra.mxu2 %v3845_v1  ;;  %2090 = vmatpush.msrb.mxu3 %v3850_v17  ;;  %v1989_v1 = vld [vmem:[%s5303_s13 + $0x58] sm:$0xff] }
 0x7da   :  { %v3888_v17 = vld [vmem:[%s5303_s13 + $0x2f8] sm:$0xff] }
 0x7db   :  { %2073 = vmatpush.msra.mxu2 %v3843_v2  ;;  %2091 = vmatpush.msrb.mxu3 %v3848_v18  ;;  %v3826_v2 = vld [vmem:[%s5303_s13 + $0x118] sm:$0xff]  ;;  %v3885_v18 = vld [vmem:[%s5303_s13 + $0x2e0] sm:$0xff] }
 0x7dc   :  { %1949 = vmatmul.f32.vlgmr.msra.gmra.mxu3 %v1659_v62  ;;  %1875 = vmatmul.f32.vlgmr.msrb.gmra.mxu1 %v1659_v62  ;;  %v1991_v62 = vld [vmem:[%s5303_s13 + $0x68] sm:$0xff] }
 0x7dd   :  { %2074 = vmatpush.msra.mxu2 %v3841_v3  ;;  %2092 = vmatpush.msrb.mxu3 %v3846_v19  ;;  %v1986_v3 = vld [vmem:[%s5303_s13 + $0x40] sm:$0xff]  ;;  %v3886_v19 = vld [vmem:[%s5303_s13 + $0x2e8] sm:$0xff] }
 0x7df   :  { %2075 = vmatpush.msra.mxu2 %v3839_v4  ;;  %2093 = vmatpush.msrb.mxu3 %v3844_v20  ;;  %v1987_v4 = vld [vmem:[%s5303_s13 + $0x48] sm:$0xff]  ;;  %v3883_v20 = vld [vmem:[%s5303_s13 + $0x2d0] sm:$0xff] }
 0x7e1   :  { %2076 = vmatpush.msra.mxu2 %v3837_v5  ;;  %2094 = vmatpush.msrb.mxu3 %v3842_v44  ;;  %v3824_v5 = vld [vmem:[%s5303_s13 + $0x108] sm:$0xff]  ;;  %v3864_v44 = vld [vmem:[%s5303_s13 + $0x238] sm:$0xff] }
 0x7e3   :  { %2077 = vmatpush.msra.mxu2 %v3835_v6  ;;  %2095 = vmatpush.msrb.mxu3 %v3840_v45  ;;  %v1984_v6 = vld [vmem:[%s5303_s13 + $0x30] sm:$0xff] }
 0x7e4   :  { %v3859_v45 = vld [vmem:[%s5303_s13 + $0x210] sm:$0xff] }
 0x7e5   :  { %2078 = vmatpush.msra.mxu2 %v3833_v7  ;;  %2096 = vmatpush.msrb.mxu3 %v3838_v48  ;;  %v1985_v7 = vld [vmem:[%s5303_s13 + $0x38] sm:$0xff]  ;;  %v3858_v48 = vld [vmem:[%s5303_s13 + $0x208] sm:$0xff] }
 0x7e7   :  { %2079 = vmatpush.msra.mxu2 %v3831_v8  ;;  %2097 = vmatpush.msrb.mxu3 %v3836_v51  ;;  %v1982_v8 = vld [vmem:[%s5303_s13 + $0x20] sm:$0xff]  ;;  %v2289_v51 = vld [vmem:[%s5305_s21 + $0x78] sm:$0xff] }
 0x7e9   :  { %2080 = vmatpush.msra.mxu2 %v3829_v9  ;;  %2098 = vmatpush.msrb.mxu3 %v3834_v54  ;;  %v1983_v9 = vld [vmem:[%s5303_s13 + $0x28] sm:$0xff] }
 0x7ea   :  { %v2287_v54 = vld [vmem:[%s5305_s21 + $0x68] sm:$0xff] }
 0x7eb   :  { %2081 = vmatpush.msra.mxu2 %v3827_v10  ;;  %2099 = vmatpush.msrb.mxu3 %v3832_v57  ;;  %v1980_v10 = vld [vmem:[%s5303_s13 + $0x10] sm:$0xff]  ;;  %v2301_v57 = vld [vmem:[%s5305_s21 + $0xd8] sm:$0xff] }
 0x7ed   :  { %2082 = vmatpush.msra.mxu2 %v3825_v11  ;;  %2100 = vmatpush.msrb.mxu3 %v3830_v60  ;;  %v1981_v11 = vld [vmem:[%s5303_s13 + $0x18] sm:$0xff]  ;;  %v2299_v60 = vld [vmem:[%s5305_s21 + $0xc8] sm:$0xff] }
 0x7ef   :  { %2083 = vmatpush.msra.mxu2 %v3823_v12  ;;  %2101 = vmatpush.msrb.mxu3 %v3828_v63  ;;  %v1978_v12 = vld [vmem:[%s5303_s13] sm:$0xff] }
 0x7f1   :  { %2102 = vmatpush.msrb.mxu3 %v3826_v2  ;;  %v2283_v2 = vld [vmem:[%s5305_s21 + $0x48] sm:$0xff] }
 0x7f3   :  { %2103 = vmatpush.msrb.mxu3 %v3824_v5  ;;  %v2295_v5 = vld [vmem:[%s5305_s21 + $0xa8] sm:$0xff] }
 0x7f5   :  { %2206 = vmatpush.msra.mxu3 %v3887_v15  ;;  %v2277_v15 = vld [vmem:[%s5305_s21 + $0x18] sm:$0xff] }
 0x7f7   :  { %2207 = vmatpush.msra.mxu3 %v3885_v18  ;;  %v2276_v18 = vld [vmem:[%s5305_s21 + $0x10] sm:$0xff] }
 0x7f9   :  { %2208 = vmatpush.msra.mxu3 %v3883_v20  ;;  %v2274_v20 = vld [vmem:[%s5305_s21] sm:$0xff] }
 0x84d   :  { %v1709_v22 = vpop.f32.mrf.mxu0 }
 0x851   :  { %v1729_v23 = vpop.f32.mrf.mxu1 }
 0x852   :  { %v1730_v29 = vadd.f32 %v1729_v23, %v1709_v22  ;;  %v3884_v22 = vld [vmem:[%s5303_s13 + $0x2d8] sm:$0xff]  ;;  %v3881_v23 = vld [vmem:[%s5303_s13 + $0x2c0] sm:$0xff] }
 0x853   :  { %v1782_v24 = vpop.f32.mrf.mxu2  ;;  %2209 = vmatpush.msra.mxu3 %v3881_v23 }
 0x855   :  { %v1856_v30 = vpop.f32.mrf.mxu0 }
 0x857   :  { %v1802_v25 = vpop.f32.mrf.mxu3 }
 0x858   :  { %v1803_v26 = vadd.f32 %v1802_v25, %v1782_v24  ;;  %v3882_v24 = vld [vmem:[%s5303_s13 + $0x2c8] sm:$0xff]  ;;  %v3879_v25 = vld [vmem:[%s5303_s13 + $0x2b0] sm:$0xff] }
 0x859   :  { %v1876_v27 = vpop.f32.mrf.mxu1  ;;  %2210 = vmatpush.msra.mxu3 %v3879_v25 }
 0x85a   :  { %v1805_v31 = vmax.f32 %v1730_v29, %v1803_v26  ;;  %v1877_v32 = vadd.f32 %v1876_v27, %v1856_v30  ;;  %v3880_v26 = vld [vmem:[%s5303_s13 + $0x2b8] sm:$0xff]  ;;  %v3877_v27 = vld [vmem:[%s5303_s13 + $0x2a0] sm:$0xff]  ;;  %v3878_v29 = vld [vmem:[%s5303_s13 + $0x2a8] sm:$0xff] }
 0x85b   :  { %v1930_v33 = vpop.f32.mrf.mxu2  ;;  %v3875_v30 = vld [vmem:[%s5303_s13 + $0x290] sm:$0xff]  ;;  %2211 = vmatpush.msra.mxu3 %v3877_v27 }
 0x85c   :  { %v1879_v35 = vmax.f32 %v1805_v31, %v1877_v32  ;;  %v3876_v31 = vld [vmem:[%s5303_s13 + $0x298] sm:$0xff]  ;;  %v3873_v32 = vld [vmem:[%s5303_s13 + $0x280] sm:$0xff] }
 0x85d   :  { %2212 = vmatpush.msra.mxu3 %v3875_v30 }
 0x85f   :  { %v1950_v34 = vpop.f32.mrf.mxu3  ;;  %2213 = vmatpush.msra.mxu3 %v3873_v32 }
 0x860   :  { %v1951_v36 = vadd.f32 %v1950_v34, %v1930_v33  ;;  %v3874_v33 = vld [vmem:[%s5303_s13 + $0x288] sm:$0xff]  ;;  %v3871_v34 = vld [vmem:[%s5303_s13 + $0x270] sm:$0xff] }
 0x861   :  { %2214 = vmatpush.msra.mxu3 %v3871_v34 }
 0x862   :  { %v1953_v37 = vmax.f32 %v1879_v35, %v1951_v36  ;;  %v3872_v35 = vld [vmem:[%s5303_s13 + $0x278] sm:$0xff]  ;;  %v3869_v36 = vld [vmem:[%s5303_s13 + $0x260] sm:$0xff] }
 0x863   :  { %2215 = vmatpush.msra.mxu3 %v3869_v36 }
 0x864   :  { %1973 = vmatpush.msra.mxu0 %v1953_v37  ;;  %2030 = vmatpush.msra.mxu1 %v1953_v37 }
 0x865   :  { %2168 = vmatpush.msrb.mxu2 %v1953_v37  ;;  %3822 = vmatmul.msk.f32.vlgmr.msra.gmra.mxu1 %vm522_vm5, %v3821_v38  ;;  %v3870_v37 = vld [vmem:[%s5303_s13 + $0x268] sm:$0xff]  ;;  %v3867_v38 = vld [vmem:[%s5303_s13 + $0x250] sm:$0xff] }
 0x866   :  { %3820 = vmatmul.msk.f32.vlgmr.msra.gmra.mxu0 %vm522_vm5, %v1954_v39  ;;  %2128 = vmatpush.msrb.mxu1 %v2009_v21  ;;  %v3868_v39 = vld [vmem:[%s5303_s13 + $0x258] sm:$0xff] }
 0x867   :  { %2108 = vmatpush.msrb.mxu0 %v2008_v28  ;;  %2216 = vmatpush.msra.mxu3 %v3867_v38 }
 0x868   :  { %2129 = vmatpush.msrb.mxu1 %v2007_v40  ;;  %v3855_v40 = vld [vmem:[%s5304_s17 + $0x10] sm:$0xff] }
 0x869   :  { %2109 = vmatpush.msrb.mxu0 %v2006_v41  ;;  %v3865_v41 = vld [vmem:[%s5303_s13 + $0x240] sm:$0xff] }
 0x86a   :  { %2130 = vmatpush.msrb.mxu1 %v2005_v42  ;;  %v3866_v42 = vld [vmem:[%s5303_s13 + $0x248] sm:$0xff]  ;;  %2217 = vmatpush.msra.mxu3 %v3865_v41 }
 0x86b   :  { %2110 = vmatpush.msrb.mxu0 %v2004_v43  ;;  %v3863_v43 = vld [vmem:[%s5303_s13 + $0x230] sm:$0xff] }
 0x86c   :  { %2131 = vmatpush.msrb.mxu1 %v2003_v16  ;;  %v3862_v16 = vld [vmem:[%s5303_s13 + $0x228] sm:$0xff]  ;;  %2218 = vmatpush.msra.mxu3 %v3863_v43 }
 0x86d   :  { %2111 = vmatpush.msrb.mxu0 %v2002_v14  ;;  %v3861_v14 = vld [vmem:[%s5303_s13 + $0x220] sm:$0xff] }
 0x86e   :  { %2132 = vmatpush.msrb.mxu1 %v2001_v47  ;;  %2219 = vmatpush.msra.mxu3 %v3861_v14  ;;  %v3857_v47 = vld [vmem:[%s5303_s13 + $0x200] sm:$0xff] }
 0x86f   :  { %2112 = vmatpush.msrb.mxu0 %v2000_v46  ;;  %v3860_v46 = vld [vmem:[%s5303_s13 + $0x218] sm:$0xff] }
 0x870   :  { %2133 = vmatpush.msrb.mxu1 %v1999_v50  ;;  %2220 = vmatpush.msra.mxu3 %v3859_v45  ;;  %v2304_v50 = vld [vmem:[%s5305_s21 + $0xf0] sm:$0xff] }
 0x871   :  { %2113 = vmatpush.msrb.mxu0 %v1998_v49  ;;  %v2305_v49 = vld [vmem:[%s5305_s21 + $0xf8] sm:$0xff] }
 0x872   :  { %2134 = vmatpush.msrb.mxu1 %v1997_v53  ;;  %2221 = vmatpush.msra.mxu3 %v3857_v47  ;;  %v2303_v53 = vld [vmem:[%s5305_s21 + $0xe8] sm:$0xff] }
 0x873   :  { %2114 = vmatpush.msrb.mxu0 %v1996_v52  ;;  %v2288_v52 = vld [vmem:[%s5305_s21 + $0x70] sm:$0xff] }
 0x874   :  { %2135 = vmatpush.msrb.mxu1 %v1995_v56  ;;  %v2286_v56 = vld [vmem:[%s5305_s21 + $0x60] sm:$0xff] }
 0x875   :  { %2115 = vmatpush.msrb.mxu0 %v1994_v55  ;;  %v2302_v55 = vld [vmem:[%s5305_s21 + $0xe0] sm:$0xff] }
 0x876   :  { %2136 = vmatpush.msrb.mxu1 %v1993_v59  ;;  %v2300_v59 = vld [vmem:[%s5305_s21 + $0xd0] sm:$0xff] }
 0x877   :  { %2116 = vmatpush.msrb.mxu0 %v1992_v58  ;;  %v2285_v58 = vld [vmem:[%s5305_s21 + $0x58] sm:$0xff] }
 0x878   :  { %2137 = vmatpush.msrb.mxu1 %v1991_v62 }
 0x879   :  { %2117 = vmatpush.msrb.mxu0 %v1990_v61  ;;  %v2298_v61 = vld [vmem:[%s5305_s21 + $0xc0] sm:$0xff] }
 0x87a   :  { %2138 = vmatpush.msrb.mxu1 %v1989_v1  ;;  %v2297_v1 = vld [vmem:[%s5305_s21 + $0xb8] sm:$0xff] }
 0x87b   :  { %2118 = vmatpush.msrb.mxu0 %v1988_v0  ;;  %v2284_v0 = vld [vmem:[%s5305_s21 + $0x50] sm:$0xff] }
 0x87c   :  { %2139 = vmatpush.msrb.mxu1 %v1987_v4  ;;  %v2282_v4 = vld [vmem:[%s5305_s21 + $0x40] sm:$0xff] }
 0x87d   :  { %2119 = vmatpush.msrb.mxu0 %v1986_v3  ;;  %v2296_v3 = vld [vmem:[%s5305_s21 + $0xb0] sm:$0xff] }
 0x87e   :  { %2140 = vmatpush.msrb.mxu1 %v1985_v7  ;;  %v2294_v7 = vld [vmem:[%s5305_s21 + $0xa0] sm:$0xff] }
 0x87f   :  { %2120 = vmatpush.msrb.mxu0 %v1984_v6  ;;  %v2281_v6 = vld [vmem:[%s5305_s21 + $0x38] sm:$0xff] }
 0x880   :  { %2141 = vmatpush.msrb.mxu1 %v1983_v9  ;;  %v2293_v9 = vld [vmem:[%s5305_s21 + $0x98] sm:$0xff] }
 0x881   :  { %2121 = vmatpush.msrb.mxu0 %v1982_v8  ;;  %v2280_v8 = vld [vmem:[%s5305_s21 + $0x30] sm:$0xff] }
 0x882   :  { %2142 = vmatpush.msrb.mxu1 %v1981_v11  ;;  %v2292_v11 = vld [vmem:[%s5305_s21 + $0x90] sm:$0xff] }
 0x883   :  { %2122 = vmatpush.msrb.mxu0 %v1980_v10  ;;  %v2279_v10 = vld [vmem:[%s5305_s21 + $0x28] sm:$0xff] }
 0x884   :  { %2143 = vmatpush.msrb.mxu1 %v1979_v13  ;;  %v2291_v13 = vld [vmem:[%s5305_s21 + $0x88] sm:$0xff] }
 0x885   :  { %2123 = vmatpush.msrb.mxu0 %v1978_v12  ;;  %v2278_v12 = vld [vmem:[%s5305_s21 + $0x20] sm:$0xff] }
 0x886   :  { %2306 = vmatpush.msra.mxu1 %v2289_v51 }
 0x887   :  { %2226 = vmatpush.msra.mxu0 %v3888_v17  ;;  %v2290_v17 = vld [vmem:[%s5305_s21 + $0x80] sm:$0xff] }
 0x888   :  { %2307 = vmatpush.msra.mxu1 %v2288_v52 }
 0x889   :  { %2227 = vmatpush.msra.mxu0 %v3886_v19  ;;  %v2275_v19 = vld [vmem:[%s5305_s21 + $0x8] sm:$0xff] }
 0x88a   :  { %2308 = vmatpush.msra.mxu1 %v2287_v54 }
 0x88b   :  { %2228 = vmatpush.msra.mxu0 %v3884_v22 }
 0x88c   :  { %2309 = vmatpush.msra.mxu1 %v2286_v56 }
 0x88d   :  { %2229 = vmatpush.msra.mxu0 %v3882_v24 }
 0x88e   :  { %2310 = vmatpush.msra.mxu1 %v2285_v58 }
 0x88f   :  { %2230 = vmatpush.msra.mxu0 %v3880_v26 }
 0x890   :  { %2311 = vmatpush.msra.mxu1 %v2284_v0 }
 0x891   :  { %2231 = vmatpush.msra.mxu0 %v3878_v29 }
 0x892   :  { %2312 = vmatpush.msra.mxu1 %v2283_v2 }
 0x893   :  { %2232 = vmatpush.msra.mxu0 %v3876_v31 }
 0x894   :  { %2313 = vmatpush.msra.mxu1 %v2282_v4 }
 0x895   :  { %2233 = vmatpush.msra.mxu0 %v3874_v33 }
 0x896   :  { %2314 = vmatpush.msra.mxu1 %v2281_v6 }
 0x897   :  { %2234 = vmatpush.msra.mxu0 %v3872_v35 }
 0x898   :  { %2315 = vmatpush.msra.mxu1 %v2280_v8 }
 0x899   :  { %2235 = vmatpush.msra.mxu0 %v3870_v37 }
 0x89a   :  { %2316 = vmatpush.msra.mxu1 %v2279_v10 }
 0x89b   :  { %2236 = vmatpush.msra.mxu0 %v3868_v39 }
 0x89c   :  { %2317 = vmatpush.msra.mxu1 %v2278_v12 }
 0x89d   :  { %2237 = vmatpush.msra.mxu0 %v3866_v42 }
 0x89e   :  { %2318 = vmatpush.msra.mxu1 %v2277_v15 }
 0x89f   :  { %2238 = vmatpush.msra.mxu0 %v3864_v44 }
 0x8a0   :  { %2319 = vmatpush.msra.mxu1 %v2276_v18 }
 0x8a1   :  { %2239 = vmatpush.msra.mxu0 %v3862_v16 }
 0x8a2   :  { %2320 = vmatpush.msra.mxu1 %v2275_v19 }
 0x8a3   :  { %2240 = vmatpush.msra.mxu0 %v3860_v46 }
 0x8a4   :  { %2321 = vmatpush.msra.mxu1 %v2274_v20 }
 0x8a5   :  { %2241 = vmatpush.msra.mxu0 %v3858_v48 }
 0x8e2   :  { %v2032_v21 = vpop.f32.mrf.mxu1 }
 0x8e3   :  { %2084 = vmatmul.f32.vlgmr.msra.gmra.mxu2 %v2032_v21  ;;  %2104 = vmatmul.f32.vlgmr.msrb.gmra.mxu3 %v2032_v21  ;;  %v1975_v28 = vpop.f32.mrf.mxu0 }
 0x8e4   :  { %2124 = vmatmul.f32.vlgmr.msrb.gmra.mxu0 %v1975_v28  ;;  %2144 = vmatmul.f32.vlgmr.msrb.gmra.mxu1 %v1975_v28 }
 0x8e5   :  { %2326 = vmatpush.msra.mxu2 %v2305_v49  ;;  %2366 = vmatpush.msrb.mxu0 %v2305_v49 }
 0x8e6   :  { %2346 = vmatpush.msrb.mxu3 %v2289_v51 }
 0x8e7   :  { %2327 = vmatpush.msra.mxu2 %v2304_v50  ;;  %2367 = vmatpush.msrb.mxu0 %v2304_v50 }
 0x8e8   :  { %2347 = vmatpush.msrb.mxu3 %v2288_v52 }
 0x8e9   :  { %2328 = vmatpush.msra.mxu2 %v2303_v53  ;;  %2368 = vmatpush.msrb.mxu0 %v2303_v53 }
 0x8ea   :  { %2348 = vmatpush.msrb.mxu3 %v2287_v54  ;;  %v2418_v54 = vld [vmem:[%s5306_s25 + $0x70] sm:$0xff] }
 0x8eb   :  { %3856 = vmatmul.msk.f32.vlgmr.msrb.gmra.mxu2 %vm522_vm5, %v3855_v40  ;;  %2369 = vmatpush.msrb.mxu0 %v2302_v55 }
 0x8ec   :  { %2329 = vmatpush.msra.mxu2 %v2302_v55  ;;  %2349 = vmatpush.msrb.mxu3 %v2286_v56  ;;  %v2419_v55 = vld [vmem:[%s5306_s25 + $0x78] sm:$0xff]  ;;  %v2416_v56 = vld [vmem:[%s5306_s25 + $0x60] sm:$0xff] }
 0x8ed   :  { %2370 = vmatpush.msrb.mxu0 %v2301_v57  ;;  %2431 = vmatpush.msrb.mxu1 %v2418_v54 }
 0x8ee   :  { %2330 = vmatpush.msra.mxu2 %v2301_v57  ;;  %2350 = vmatpush.msrb.mxu3 %v2285_v58  ;;  %v2417_v57 = vld [vmem:[%s5306_s25 + $0x68] sm:$0xff]  ;;  %v2414_v58 = vld [vmem:[%s5306_s25 + $0x50] sm:$0xff] }
 0x8ef   :  { %2371 = vmatpush.msrb.mxu0 %v2300_v59  ;;  %2432 = vmatpush.msrb.mxu1 %v2416_v56 }
 0x8f0   :  { %2331 = vmatpush.msra.mxu2 %v2300_v59  ;;  %2351 = vmatpush.msrb.mxu3 %v2284_v0  ;;  %v2415_v59 = vld [vmem:[%s5306_s25 + $0x58] sm:$0xff]  ;;  %v2408_v0 = vld [vmem:[%s5306_s25 + $0x20] sm:$0xff] }
 0x8f1   :  { %2372 = vmatpush.msrb.mxu0 %v2299_v60  ;;  %2433 = vmatpush.msrb.mxu1 %v2414_v58 }
 0x8f2   :  { %2332 = vmatpush.msra.mxu2 %v2299_v60  ;;  %2352 = vmatpush.msrb.mxu3 %v2283_v2  ;;  %v2412_v60 = vld [vmem:[%s5306_s25 + $0x40] sm:$0xff]  ;;  %v2406_v2 = vld [vmem:[%s5306_s25 + $0x10] sm:$0xff] }
 0x8f3   :  { %2373 = vmatpush.msrb.mxu0 %v2298_v61  ;;  %2434 = vmatpush.msrb.mxu1 %v2412_v60 }
 0x8f4   :  { %2333 = vmatpush.msra.mxu2 %v2298_v61  ;;  %2353 = vmatpush.msrb.mxu3 %v2282_v4  ;;  %v2413_v61 = vld [vmem:[%s5306_s25 + $0x48] sm:$0xff]  ;;  %v2404_v4 = vld [vmem:[%s5306_s25] sm:$0xff] }
 0x8f5   :  { %2374 = vmatpush.msrb.mxu0 %v2297_v1 }
 0x8f6   :  { %2334 = vmatpush.msra.mxu2 %v2297_v1  ;;  %2354 = vmatpush.msrb.mxu3 %v2281_v6  ;;  %v2409_v1 = vld [vmem:[%s5306_s25 + $0x28] sm:$0xff] }
 0x8f7   :  { %2375 = vmatpush.msrb.mxu0 %v2296_v3 }
 0x8f8   :  { %2335 = vmatpush.msra.mxu2 %v2296_v3  ;;  %2355 = vmatpush.msrb.mxu3 %v2280_v8  ;;  %v2407_v3 = vld [vmem:[%s5306_s25 + $0x18] sm:$0xff] }
 0x8f9   :  { %2376 = vmatpush.msrb.mxu0 %v2295_v5 }
 0x8fa   :  { %2336 = vmatpush.msra.mxu2 %v2295_v5  ;;  %2356 = vmatpush.msrb.mxu3 %v2279_v10  ;;  %v2405_v5 = vld [vmem:[%s5306_s25 + $0x8] sm:$0xff] }
 0x8fb   :  { %2377 = vmatpush.msrb.mxu0 %v2294_v7 }
 0x8fc   :  { %2337 = vmatpush.msra.mxu2 %v2294_v7  ;;  %2357 = vmatpush.msrb.mxu3 %v2278_v12 }
 0x8fd   :  { %2378 = vmatpush.msrb.mxu0 %v2293_v9 }
 0x8fe   :  { %2338 = vmatpush.msra.mxu2 %v2293_v9  ;;  %2358 = vmatpush.msrb.mxu3 %v2277_v15 }
 0x8ff   :  { %2379 = vmatpush.msrb.mxu0 %v2292_v11 }
 0x900   :  { %2339 = vmatpush.msra.mxu2 %v2292_v11  ;;  %2359 = vmatpush.msrb.mxu3 %v2276_v18 }
 0x901   :  { %2380 = vmatpush.msrb.mxu0 %v2291_v13 }
 0x902   :  { %2340 = vmatpush.msra.mxu2 %v2291_v13  ;;  %2360 = vmatpush.msrb.mxu3 %v2275_v19 }
 0x903   :  { %2381 = vmatpush.msrb.mxu0 %v2290_v17 }
 0x904   :  { %2341 = vmatpush.msra.mxu2 %v2290_v17  ;;  %2361 = vmatpush.msrb.mxu3 %v2274_v20 }
 0x906   :  { %2451 = vmatpush.msrb.mxu2 %v2419_v55 }
 0x908   :  { %2452 = vmatpush.msrb.mxu2 %v2417_v57 }
 0x90a   :  { %2453 = vmatpush.msrb.mxu2 %v2415_v59 }
 0x90c   :  { %2454 = vmatpush.msrb.mxu2 %v2413_v61 }
 0x961   :  { %v2125_v22 = vpop.f32.mrf.mxu0  ;;  %v2145_v24 = vpop.f32.mrf.mxu1 }
 0x966   :  { %v4926_v62 = vpop.f32.mrf.mxu2  ;;  %v2105_v23 = vpop.f32.mrf.mxu3 }
 0x967   :  { %v2146_v25 = vadd.f32 %v2145_v24, %v2105_v23  ;;  %v2126_v31 = vadd.f32 %v2125_v22, %v4926_v62  ;;  %v2410_v62 = vld [vmem:[%s5306_s25 + $0x30] sm:$0xff]  ;;  %v2388_v23 = vld [vmem:[%s5307_s29] sm:$0x1] }
 0x968   :  { %2435 = vmatpush.msrb.mxu1 %v2410_v62 }
 0x96a   :  { %2436 = vmatpush.msrb.mxu1 %v2408_v0 }
 0x96c   :  { %2437 = vmatpush.msrb.mxu1 %v2406_v2 }
 0x96e   :  { %v2170_v63 = vpop.f32.mrf.mxu2  ;;  %2438 = vmatpush.msrb.mxu1 %v2404_v4 }
 0x96f   :  { %2222 = vmatmul.f32.vlgmr.msra.gmra.mxu3 %v2170_v63  ;;  %2242 = vmatmul.f32.vlgmr.msra.gmra.mxu0 %v2170_v63  ;;  %v2411_v63 = vld [vmem:[%s5306_s25 + $0x38] sm:$0xff] }
 0x970   :  { %2455 = vmatpush.msrb.mxu2 %v2411_v63 }
 0x972   :  { %2456 = vmatpush.msrb.mxu2 %v2409_v1 }
 0x974   :  { %2457 = vmatpush.msrb.mxu2 %v2407_v3 }
 0x976   :  { %2458 = vmatpush.msrb.mxu2 %v2405_v5 }
 0x9ec   :  { %v2243_v26 = vpop.f32.mrf.mxu0 }
 0x9ed   :  { %v4947_v27 = vadd.f32 %v2243_v26, %v2146_v25 }
 0x9ef   :  { %v2254_v29 = vrot.slane %v4947_v27, 4  ;;  %v2261_v30 = vmul.f32 %v4947_v27, %v4947_v27 }
 0x9f1   :  { %v2255_v32 = vadd.f32 %v2254_v29, %v4947_v27  ;;  %v2268_v33 = vrot.slane %v2261_v30, 4 }
 0x9f2   :  { %v2223_v34 = vpop.f32.mrf.mxu3 }
 0x9f3   :  { %v2256_v35 = vrot.slane %v2255_v32, 2  ;;  %v2269_v36 = vadd.f32 %v2268_v33, %v2261_v30  ;;  %v4954_v37 = vadd.f32 %v2223_v34, %v2126_v31  ;;  %v2401_v30 = vld [vmem:[%s5308_s3] sm:$0x1] }
 0x9f5   :  { %v2257_v38 = vadd.f32 %v2256_v35, %v2255_v32  ;;  %v2248_v39 = vrot.slane %v4954_v37, 4  ;;  %v2260_v21 = vmul.f32 %v4954_v37, %v4954_v37  ;;  %v2270_v28 = vrot.slane %v2269_v36, 2 }
 0x9f7   :  { %v2258_v40 = vrot.slane %v2257_v38, 1  ;;  %v2249_v41 = vadd.f32 %v2248_v39, %v4954_v37  ;;  %v2262_v42 = vrot.slane %v2260_v21, 4  ;;  %v2271_v43 = vadd.f32 %v2270_v28, %v2269_v36 }
 0x9f9   :  { %v2250_v44 = vrot.slane %v2249_v41, 2  ;;  %v2263_v14 = vadd.f32 %v2262_v42, %v2260_v21  ;;  %v2259_v16 = vadd.f32 %v2258_v40, %v2257_v38  ;;  %v2272_v45 = vrot.slane %v2271_v43, 1 }
 0x9fb   :  { %v2251_v46 = vadd.f32 %v2250_v44, %v2249_v41  ;;  %2342 = vmatmul.f32.vlgmr.msra.gmra.mxu2 %v2259_v16  ;;  %v2273_v47 = vadd.f32 %v2272_v45, %v2271_v43  ;;  %v2264_v48 = vrot.slane %v2263_v14, 2  ;;  %v2520_v44 = vld [vmem:[%s5309_s8] sm:$0xf]  ;;  %v3919_v16 = vld [vmem:[%s5310_s14 + $0x178] sm:$0xff] }
 0x9fc   :  { %2498 = vmatpush.msra.mxu2 %v2419_v55  ;;  %v2736_v55 = vld [vmem:[%s5310_s14 + $0xf8] sm:$0xff] }
 0x9fd   :  { %v2252_v49 = vrot.slane %v2251_v46, 1  ;;  %2382 = vmatmul.f32.vlgmr.msrb.gmra.mxu0 %v2273_v47  ;;  %v2265_v50 = vadd.f32 %v2264_v48, %v2263_v14  ;;  %v2720_v14 = vld [vmem:[%s5310_s14 + $0x78] sm:$0xff] }
 0x9fe   :  { %2499 = vmatpush.msra.mxu2 %v2417_v57  ;;  %v3933_v57 = vld [vmem:[%s5310_s14 + $0x1e8] sm:$0xff] }
 0x9ff   :  { %v2253_v51 = vadd.f32 %v2252_v49, %v2251_v46  ;;  %v2266_v52 = vrot.slane %v2265_v50, 1  ;;  %v2719_v46 = vld [vmem:[%s5310_s14 + $0x70] sm:$0xff]  ;;  %v3935_v49 = vld [vmem:[%s5310_s14 + $0x1f8] sm:$0xff] }
 0xa00   :  { %2500 = vmatpush.msra.mxu2 %v2415_v59  ;;  %v2735_v59 = vld [vmem:[%s5310_s14 + $0xf0] sm:$0xff] }
 0xa01   :  { %2322 = vmatmul.f32.vlgmr.msra.gmra.mxu1 %v2253_v51  ;;  %v2267_v53 = vadd.f32 %v2266_v52, %v2265_v50  ;;  %v2718_v50 = vld [vmem:[%s5310_s14 + $0x68] sm:$0xff]  ;;  %v3934_v52 = vld [vmem:[%s5310_s14 + $0x1f0] sm:$0xff] }
 0xa02   :  { %2478 = vmatpush.msra.mxu1 %v2418_v54  ;;  %2501 = vmatpush.msra.mxu2 %v2413_v61  ;;  %v3898_v51 = vld [vmem:[%s5309_s8 + $0x8] sm:$0xf]  ;;  %v3901_v54 = vld [vmem:[%s5309_s8 + $0xc] sm:$0xf]  ;;  %v2715_v61 = vld [vmem:[%s5310_s14 + $0x50] sm:$0xff] }
 0xa03   :  { %2362 = vmatmul.f32.vlgmr.msrb.gmra.mxu3 %v2267_v53  ;;  %v2717_v53 = vld [vmem:[%s5310_s14 + $0x60] sm:$0xff] }
 0xa04   :  { %2479 = vmatpush.msra.mxu1 %v2416_v56  ;;  %2502 = vmatpush.msra.mxu2 %v2411_v63  ;;  %v3917_v56 = vld [vmem:[%s5310_s14 + $0x168] sm:$0xff] }
 0xa05   :  { %v2734_v63 = vld [vmem:[%s5310_s14 + $0xe8] sm:$0xff] }
 0xa06   :  { %2480 = vmatpush.msra.mxu1 %v2414_v58  ;;  %2503 = vmatpush.msra.mxu2 %v2409_v1  ;;  %v2716_v58 = vld [vmem:[%s5310_s14 + $0x58] sm:$0xff] }
 0xa07   :  { %v3931_v1 = vld [vmem:[%s5310_s14 + $0x1d8] sm:$0xff] }
 0xa08   :  { %2481 = vmatpush.msra.mxu1 %v2412_v60  ;;  %2504 = vmatpush.msra.mxu2 %v2407_v3  ;;  %v3916_v60 = vld [vmem:[%s5310_s14 + $0x160] sm:$0xff] }
 0xa09   :  { %v2733_v3 = vld [vmem:[%s5310_s14 + $0xe0] sm:$0xff] }
 0xa0a   :  { %2482 = vmatpush.msra.mxu1 %v2410_v62  ;;  %2505 = vmatpush.msra.mxu2 %v2405_v5  ;;  %v3932_v62 = vld [vmem:[%s5310_s14 + $0x1e0] sm:$0xff]  ;;  %v3930_v5 = vld [vmem:[%s5310_s14 + $0x1d0] sm:$0xff] }
 0xa0c   :  { %2483 = vmatpush.msra.mxu1 %v2408_v0  ;;  %v2714_v0 = vld [vmem:[%s5310_s14 + $0x48] sm:$0xff] }
 0xa0e   :  { %2484 = vmatpush.msra.mxu1 %v2406_v2  ;;  %v3915_v2 = vld [vmem:[%s5310_s14 + $0x158] sm:$0xff] }
 0xa10   :  { %2485 = vmatpush.msra.mxu1 %v2404_v4  ;;  %v2713_v4 = vld [vmem:[%s5310_s14 + $0x40] sm:$0xff] }
 0xa7a   :  { %v2383_v9 = vpop.f32.mrf.mxu0 }
 0xa7e   :  { %v2323_v6 = vpop.f32.mrf.mxu1  ;;  %v2343_v7 = vpop.f32.mrf.mxu2 }
 0xa7f   :  { %v2344_v8 = vadd.f32 %v2343_v7, %v2323_v6  ;;  %v3914_v6 = vld [vmem:[%s5310_s14 + $0x150] sm:$0xff]  ;;  %v2732_v7 = vld [vmem:[%s5310_s14 + $0xd8] sm:$0xff] }
 0xa81   :  { %v2386_v11 = vmul.f32 %v2344_v8, %v2344_v8 }
 0xa86   :  { %v2363_v10 = vpop.f32.mrf.mxu3 }
 0xa87   :  { %v2384_v12 = vadd.f32 %v2383_v9, %v2363_v10  ;;  %v3929_v9 = vld [vmem:[%s5310_s14 + $0x1c8] sm:$0xff] }
 0xa88   :  { %v3913_v10 = vld [vmem:[%s5310_s14 + $0x148] sm:$0xff] }
 0xa89   :  { %v2387_v13 = vsub.f32 %v2384_v12, %v2386_v11  ;;  %v2731_v11 = vld [vmem:[%s5310_s14 + $0xd0] sm:$0xff] }
 0xa8a   :  { %v2711_v12 = vld [vmem:[%s5310_s14 + $0x30] sm:$0xff] }
 0xa8b   :  { %v2389_v15 = vadd.f32 1e-05, %v2387_v13  ;;  %v3928_v13 = vld [vmem:[%s5310_s14 + $0x1c0] sm:$0xff] }
 0xa8d   :  { %4105 = vrsqrt.f32 %v2389_v15  ;;  %vm2396_vm3 = vweird.f32 %v2389_v15 }
 0xa93   :  { %v4106_v17 = vpop.eup %4105 }
 0xa94   :  { %v2391_v18 = vmul.f32 %v4106_v17, %v2389_v15  ;;  %vm2397_vm1 = vweird.f32 %v4106_v17  ;;  %v3912_v15 = vld [vmem:[%s5310_s14 + $0x140] sm:$0xff] }
 0xa95   :  { %vm2398_vm4 = vmor %vm2396_vm3, %vm2397_vm1 }
 0xa96   :  { %v2392_v19 = vmul.f32 %v4106_v17, %v2391_v18  ;;  %v2710_v18 = vld [vmem:[%s5310_s14 + $0x28] sm:$0xff] }
 0xa98   :  { %v2393_v20 = vmul.f32 0.5, %v2392_v19  ;;  %v3927_v19 = vld [vmem:[%s5310_s14 + $0x1b8] sm:$0xff] }
 0xa9a   :  { %v2394_v22 = vsub.f32 1.5, %v2393_v20  ;;  %v3911_v20 = vld [vmem:[%s5310_s14 + $0x138] sm:$0xff] }
 0xa9c   :  { %v2395_v24 = vmul.f32 %v4106_v17, %v2394_v22  ;;  %v2729_v22 = vld [vmem:[%s5310_s14 + $0xc0] sm:$0xff] }
 0xa9e   :  { %v2399_v25 = vsel %vm2398_vm4, %v4106_v17, %v2395_v24  ;;  %v2730_v17 = vld [vmem:[%s5310_s14 + $0xc8] sm:$0xff]  ;;  %v3926_v24 = vld [vmem:[%s5310_s14 + $0x1b0] sm:$0xff] }
 0xa9f   :  { %v2400_v26 = vmul.f32 %v2399_v25, %v2388_v23  ;;  %v2709_v23 = vld [vmem:[%s5310_s14 + $0x20] sm:$0xff]  ;;  %v3910_v25 = vld [vmem:[%s5310_s14 + $0x130] sm:$0xff] }
 0xaa1   :  { %3889 = vmatmul.msk.f32.vlgmr.msrb.gmra.mxu1 %vm985_vm10, %v2400_v26  ;;  %3890 = vmatmul.msk.f32.vlgmr.msrb.gmra.mxu2 %vm985_vm10, %v2400_v26  ;;  %v2402_v29 = vmul.f32 %v2400_v26, %v2344_v8  ;;  %v2712_v8 = vld [vmem:[%s5310_s14 + $0x38] sm:$0xff] }
 0xaa2   :  { %v2728_v26 = vld [vmem:[%s5310_s14 + $0xb8] sm:$0xff] }
 0xaa3   :  { %v2403_v31 = vsub.f32 %v2401_v30, %v2402_v29  ;;  %v2708_v29 = vld [vmem:[%s5310_s14 + $0x18] sm:$0xff]  ;;  %v3925_v30 = vld [vmem:[%s5310_s14 + $0x1a8] sm:$0xff] }
 0xaa9   :  { %3891 = vmatmul.msk.f32.vlgmr.msra.gmra.mxu1 %vm985_vm10, %v2403_v31  ;;  %3892 = vmatmul.msk.f32.vlgmr.msra.gmra.mxu2 %vm985_vm10, %v2403_v31  ;;  %v3909_v31 = vld [vmem:[%s5310_s14 + $0x128] sm:$0xff] }
 0xb1e   :  { %v2440_v32 = vpop.f32.mrf.mxu1 }
 0xb1f   :  { %v2463_v33 = vperm.slane %v2440_v32, 0  ;;  %v2727_v32 = vld [vmem:[%s5310_s14 + $0xb0] sm:$0xff] }
 0xb21   :  { %v2465_v36 = vmul.f32 %v2463_v33, %v4954_v37  ;;  %v3895_v37 = vld [vmem:[%s5309_s8 + $0x4] sm:$0xf]  ;;  %v2707_v33 = vld [vmem:[%s5310_s14 + $0x10] sm:$0xff] }
 0xb24   :  { %v2460_v34 = vpop.f32.mrf.mxu2 }
 0xb25   :  { %v2464_v39 = vperm.slane %v2460_v34, 0  ;;  %v3924_v34 = vld [vmem:[%s5310_s14 + $0x1a0] sm:$0xff] }
 0xb26   :  { %v2487_v35 = vpop.f32.mrf.mxu1 }
 0xb27   :  { %v2510_v38 = vperm.slane %v2487_v35, 0  ;;  %v2466_v41 = vmul.f32 %v2464_v39, %v4947_v27  ;;  %v3918_v27 = vld [vmem:[%s5310_s14 + $0x170] sm:$0xff]  ;;  %v3908_v35 = vld [vmem:[%s5310_s14 + $0x120] sm:$0xff]  ;;  %v3923_v39 = vld [vmem:[%s5310_s14 + $0x198] sm:$0xff] }
 0xb29   :  { %v2512_v21 = vadd.f32 %v2510_v38, %v2465_v36  ;;  %v2726_v36 = vld [vmem:[%s5310_s14 + $0xa8] sm:$0xff] }
 0xb2a   :  { %v2706_v38 = vld [vmem:[%s5310_s14 + $0x8] sm:$0xff] }
 0xb2b   :  { %v2516_v28 = vmul.f32 0.01, %v2512_v21  ;;  %vm2514_vm6 = vcmp.ge.f32.partialorder %v2512_v21, 0.0 }
 0xb2c   :  { %v2507_v40 = vpop.f32.mrf.mxu2 }
 0xb2d   :  { %v2511_v42 = vperm.slane %v2507_v40, 0  ;;  %v2518_v43 = vsel %vm2514_vm6, %v2512_v21, %v2516_v28  ;;  %v3907_v21 = vld [vmem:[%s5310_s14 + $0x118] sm:$0xff]  ;;  %v2725_v28 = vld [vmem:[%s5310_s14 + $0xa0] sm:$0xff] }
 0xb2e   :  { %2539 = vmatpush.msra.mxu3 %v2518_v43  ;;  %2584 = vmatpush.msrb.mxu1 %v2518_v43  ;;  %v2705_v40 = vld [vmem:[%s5310_s14] sm:$0xff] }
 0xb2f   :  { %v2513_v45 = vadd.f32 %v2511_v42, %v2466_v41  ;;  %3893 = vmatmul.msk.f32.vlgmr.msra.gmra.mxu3 %vm522_vm5, %v2520_v44  ;;  %3896 = vmatmul.msk.f32.vlgmr.msrb.gmra.mxu1 %vm522_vm5, %v3895_v37  ;;  %v3922_v41 = vld [vmem:[%s5310_s14 + $0x190] sm:$0xff] }
 0xb30   :  { %2631 = vmatpush.msrb.mxu3 %v2518_v43  ;;  %2678 = vmatpush.msra.mxu1 %v2518_v43  ;;  %v3906_v42 = vld [vmem:[%s5310_s14 + $0x110] sm:$0xff]  ;;  %v2724_v43 = vld [vmem:[%s5310_s14 + $0x98] sm:$0xff] }
 0xb31   :  { %v2517_v47 = vmul.f32 0.01, %v2513_v45  ;;  %vm2515_vm7 = vcmp.ge.f32.partialorder %v2513_v45, 0.0 }
 0xb32   :  { %2737 = vmatpush.msra.mxu3 %v2720_v14  ;;  %2810 = vmatpush.msrb.mxu1 %v3919_v16  ;;  %v3921_v14 = vld [vmem:[%s5310_s14 + $0x188] sm:$0xff] }
 0xb33   :  { %v2519_v48 = vsel %vm2515_vm7, %v2513_v45, %v2517_v47  ;;  %v3905_v16 = vld [vmem:[%s5310_s14 + $0x108] sm:$0xff]  ;;  %v2723_v45 = vld [vmem:[%s5310_s14 + $0x90] sm:$0xff]  ;;  %v3999_v47 = vld [vmem:[%s5310_s14 + $0x3f8] sm:$0xff] }
 0xb34   :  { %2738 = vmatpush.msra.mxu3 %v2719_v46  ;;  %2811 = vmatpush.msrb.mxu1 %v3918_v27  ;;  %v3920_v46 = vld [vmem:[%s5310_s14 + $0x180] sm:$0xff] }
 0xb35   :  { %2559 = vmatpush.msra.mxu0 %v2519_v48  ;;  %2604 = vmatpush.msrb.mxu2 %v2519_v48  ;;  %v3904_v27 = vld [vmem:[%s5310_s14 + $0x100] sm:$0xff] }
 0xb36   :  { %3897 = vmatmul.msk.f32.vlgmr.msrb.gmra.mxu2 %vm522_vm5, %v3895_v37  ;;  %3894 = vmatmul.msk.f32.vlgmr.msra.gmra.mxu0 %vm522_vm5, %v2520_v44  ;;  %v3951_v44 = vld [vmem:[%s5310_s14 + $0x278] sm:$0xff]  ;;  %v3950_v37 = vld [vmem:[%s5310_s14 + $0x270] sm:$0xff] }
 0xb37   :  { %2651 = vmatpush.msrb.mxu0 %v2519_v48  ;;  %2698 = vmatpush.msra.mxu2 %v2519_v48  ;;  %v2722_v48 = vld [vmem:[%s5310_s14 + $0x88] sm:$0xff] }
 0xb38   :  { %2739 = vmatpush.msra.mxu3 %v2718_v50  ;;  %3902 = vmatmul.msk.f32.vlgmr.msra.gmra.mxu1 %vm522_vm5, %v3901_v54  ;;  %v3983_v50 = vld [vmem:[%s5310_s14 + $0x378] sm:$0xff] }
 0xb39   :  { %2830 = vmatpush.msrb.mxu2 %v3935_v49  ;;  %3899 = vmatmul.msk.f32.vlgmr.msrb.gmra.mxu3 %vm522_vm5, %v3898_v51  ;;  %v3949_v49 = vld [vmem:[%s5310_s14 + $0x268] sm:$0xff] }
 0xb3a   :  { %2740 = vmatpush.msra.mxu3 %v2717_v53  ;;  %2757 = vmatpush.msra.mxu0 %v2736_v55  ;;  %v3948_v53 = vld [vmem:[%s5310_s14 + $0x260] sm:$0xff]  ;;  %v3982_v55 = vld [vmem:[%s5310_s14 + $0x370] sm:$0xff] }
 0xb3b   :  { %2831 = vmatpush.msrb.mxu2 %v3934_v52  ;;  %2812 = vmatpush.msrb.mxu1 %v3917_v56  ;;  %v2721_v52 = vld [vmem:[%s5310_s14 + $0x80] sm:$0xff]  ;;  %v3997_v56 = vld [vmem:[%s5310_s14 + $0x3e8] sm:$0xff] }
 0xb3c   :  { %2741 = vmatpush.msra.mxu3 %v2716_v58  ;;  %2758 = vmatpush.msra.mxu0 %v2735_v59  ;;  %v3966_v58 = vld [vmem:[%s5310_s14 + $0x2f0] sm:$0xff]  ;;  %v3981_v59 = vld [vmem:[%s5310_s14 + $0x368] sm:$0xff] }
 0xb3d   :  { %2832 = vmatpush.msrb.mxu2 %v3933_v57  ;;  %2813 = vmatpush.msrb.mxu1 %v3916_v60  ;;  %v3947_v57 = vld [vmem:[%s5310_s14 + $0x258] sm:$0xff]  ;;  %v3996_v60 = vld [vmem:[%s5310_s14 + $0x3e0] sm:$0xff] }
 0xb3e   :  { %3903 = vmatmul.msk.f32.vlgmr.msra.gmra.mxu2 %vm522_vm5, %v3901_v54  ;;  %2742 = vmatpush.msra.mxu3 %v2715_v61  ;;  %v3967_v54 = vld [vmem:[%s5310_s14 + $0x2f8] sm:$0xff]  ;;  %v3980_v61 = vld [vmem:[%s5310_s14 + $0x360] sm:$0xff] }
 0xb3f   :  { %3900 = vmatmul.msk.f32.vlgmr.msrb.gmra.mxu0 %vm522_vm5, %v3898_v51  ;;  %2833 = vmatpush.msrb.mxu2 %v3932_v62  ;;  %v3998_v51 = vld [vmem:[%s5310_s14 + $0x3f0] sm:$0xff]  ;;  %v3965_v62 = vld [vmem:[%s5310_s14 + $0x2e8] sm:$0xff]  ;;  %vm3004_vm5 = vcmask 1043456  }
 0xb40   :  { %2759 = vmatpush.msra.mxu0 %v2734_v63  ;;  %2743 = vmatpush.msra.mxu3 %v2714_v0  ;;  %v3979_v63 = vld [vmem:[%s5310_s14 + $0x358] sm:$0xff]  ;;  %v3946_v0 = vld [vmem:[%s5310_s14 + $0x250] sm:$0xff] }
 0xb41   :  { %2834 = vmatpush.msrb.mxu2 %v3931_v1  ;;  %2814 = vmatpush.msrb.mxu1 %v3915_v2  ;;  %v3964_v1 = vld [vmem:[%s5310_s14 + $0x2e0] sm:$0xff]  ;;  %v3978_v2 = vld [vmem:[%s5310_s14 + $0x350] sm:$0xff] }
 0xb42   :  { %2760 = vmatpush.msra.mxu0 %v2733_v3  ;;  %2744 = vmatpush.msra.mxu3 %v2713_v4  ;;  %v3995_v3 = vld [vmem:[%s5310_s14 + $0x3d8] sm:$0xff]  ;;  %v3945_v4 = vld [vmem:[%s5310_s14 + $0x248] sm:$0xff] }
 0xb43   :  { %2835 = vmatpush.msrb.mxu2 %v3930_v5  ;;  %2815 = vmatpush.msrb.mxu1 %v3914_v6  ;;  %v3994_v5 = vld [vmem:[%s5310_s14 + $0x3d0] sm:$0xff]  ;;  %v3963_v6 = vld [vmem:[%s5310_s14 + $0x2d8] sm:$0xff] }
 0xb44   :  { %2761 = vmatpush.msra.mxu0 %v2732_v7  ;;  %2745 = vmatpush.msra.mxu3 %v2712_v8  ;;  %v3977_v7 = vld [vmem:[%s5310_s14 + $0x348] sm:$0xff]  ;;  %v3944_v8 = vld [vmem:[%s5310_s14 + $0x240] sm:$0xff] }
 0xb45   :  { %2836 = vmatpush.msrb.mxu2 %v3929_v9  ;;  %2816 = vmatpush.msrb.mxu1 %v3913_v10  ;;  %v3962_v9 = vld [vmem:[%s5310_s14 + $0x2d0] sm:$0xff]  ;;  %v3976_v10 = vld [vmem:[%s5310_s14 + $0x340] sm:$0xff] }
 0xb46   :  { %2762 = vmatpush.msra.mxu0 %v2731_v11  ;;  %2746 = vmatpush.msra.mxu3 %v2711_v12  ;;  %v3993_v11 = vld [vmem:[%s5310_s14 + $0x3c8] sm:$0xff]  ;;  %v3943_v12 = vld [vmem:[%s5310_s14 + $0x238] sm:$0xff] }
 0xb47   :  { %2837 = vmatpush.msrb.mxu2 %v3928_v13  ;;  %2817 = vmatpush.msrb.mxu1 %v3912_v15  ;;  %v3961_v13 = vld [vmem:[%s5310_s14 + $0x2c8] sm:$0xff]  ;;  %v3992_v15 = vld [vmem:[%s5310_s14 + $0x3c0] sm:$0xff] }
 0xb48   :  { %2763 = vmatpush.msra.mxu0 %v2730_v17  ;;  %2747 = vmatpush.msra.mxu3 %v2710_v18  ;;  %v3975_v17 = vld [vmem:[%s5310_s14 + $0x338] sm:$0xff]  ;;  %v3942_v18 = vld [vmem:[%s5310_s14 + $0x230] sm:$0xff] }
 0xb49   :  { %2838 = vmatpush.msrb.mxu2 %v3927_v19  ;;  %2818 = vmatpush.msrb.mxu1 %v3911_v20  ;;  %v3960_v19 = vld [vmem:[%s5310_s14 + $0x2c0] sm:$0xff]  ;;  %v3974_v20 = vld [vmem:[%s5310_s14 + $0x330] sm:$0xff] }
 0xb4a   :  { %2764 = vmatpush.msra.mxu0 %v2729_v22  ;;  %2748 = vmatpush.msra.mxu3 %v2709_v23  ;;  %v3991_v22 = vld [vmem:[%s5310_s14 + $0x3b8] sm:$0xff]  ;;  %v3941_v23 = vld [vmem:[%s5310_s14 + $0x228] sm:$0xff] }
 0xb4b   :  { %2839 = vmatpush.msrb.mxu2 %v3926_v24  ;;  %2819 = vmatpush.msrb.mxu1 %v3910_v25  ;;  %v3959_v24 = vld [vmem:[%s5310_s14 + $0x2b8] sm:$0xff]  ;;  %v3973_v25 = vld [vmem:[%s5310_s14 + $0x328] sm:$0xff] }
 0xb4c   :  { %2765 = vmatpush.msra.mxu0 %v2728_v26  ;;  %2749 = vmatpush.msra.mxu3 %v2708_v29  ;;  %v3990_v26 = vld [vmem:[%s5310_s14 + $0x3b0] sm:$0xff]  ;;  %v3940_v29 = vld [vmem:[%s5310_s14 + $0x220] sm:$0xff] }
 0xb4d   :  { %2840 = vmatpush.msrb.mxu2 %v3925_v30  ;;  %2820 = vmatpush.msrb.mxu1 %v3909_v31  ;;  %v3958_v30 = vld [vmem:[%s5310_s14 + $0x2b0] sm:$0xff]  ;;  %v3972_v31 = vld [vmem:[%s5310_s14 + $0x320] sm:$0xff] }
 0xb4e   :  { %2766 = vmatpush.msra.mxu0 %v2727_v32  ;;  %2750 = vmatpush.msra.mxu3 %v2707_v33  ;;  %v3989_v32 = vld [vmem:[%s5310_s14 + $0x3a8] sm:$0xff]  ;;  %v3939_v33 = vld [vmem:[%s5310_s14 + $0x218] sm:$0xff] }
 0xb4f   :  { %2841 = vmatpush.msrb.mxu2 %v3924_v34  ;;  %2821 = vmatpush.msrb.mxu1 %v3908_v35  ;;  %v3957_v34 = vld [vmem:[%s5310_s14 + $0x2a8] sm:$0xff]  ;;  %v3988_v35 = vld [vmem:[%s5310_s14 + $0x3a0] sm:$0xff] }
 0xb50   :  { %2767 = vmatpush.msra.mxu0 %v2726_v36  ;;  %2751 = vmatpush.msra.mxu3 %v2706_v38  ;;  %v3971_v36 = vld [vmem:[%s5310_s14 + $0x318] sm:$0xff]  ;;  %v3938_v38 = vld [vmem:[%s5310_s14 + $0x210] sm:$0xff] }
 0xb51   :  { %2842 = vmatpush.msrb.mxu2 %v3923_v39  ;;  %2822 = vmatpush.msrb.mxu1 %v3907_v21  ;;  %v3956_v39 = vld [vmem:[%s5310_s14 + $0x2a0] sm:$0xff]  ;;  %v3970_v21 = vld [vmem:[%s5310_s14 + $0x310] sm:$0xff] }
 0xb52   :  { %2768 = vmatpush.msra.mxu0 %v2725_v28  ;;  %2752 = vmatpush.msra.mxu3 %v2705_v40  ;;  %v3987_v28 = vld [vmem:[%s5310_s14 + $0x398] sm:$0xff]  ;;  %v3937_v40 = vld [vmem:[%s5310_s14 + $0x208] sm:$0xff] }
 0xb53   :  { %2843 = vmatpush.msrb.mxu2 %v3922_v41  ;;  %2823 = vmatpush.msrb.mxu1 %v3906_v42  ;;  %v3986_v41 = vld [vmem:[%s5310_s14 + $0x390] sm:$0xff]  ;;  %v3936_v42 = vld [vmem:[%s5310_s14 + $0x200] sm:$0xff] }
 0xb54   :  { %2769 = vmatpush.msra.mxu0 %v2724_v43  ;;  %2884 = vmatpush.msrb.mxu3 %v3951_v44  ;;  %v3955_v43 = vld [vmem:[%s5310_s14 + $0x298] sm:$0xff]  ;;  %v3969_v44 = vld [vmem:[%s5310_s14 + $0x308] sm:$0xff] }
 0xb55   :  { %2844 = vmatpush.msrb.mxu2 %v3921_v14  ;;  %2824 = vmatpush.msrb.mxu1 %v3905_v16  ;;  %v3985_v14 = vld [vmem:[%s5310_s14 + $0x388] sm:$0xff]  ;;  %v3954_v16 = vld [vmem:[%s5310_s14 + $0x290] sm:$0xff] }
 0xb56   :  { %2770 = vmatpush.msra.mxu0 %v2723_v45  ;;  %2885 = vmatpush.msrb.mxu3 %v3950_v37  ;;  %v3968_v45 = vld [vmem:[%s5310_s14 + $0x300] sm:$0xff] }
 0xb57   :  { %2845 = vmatpush.msrb.mxu2 %v3920_v46  ;;  %2825 = vmatpush.msrb.mxu1 %v3904_v27  ;;  %v3984_v37 = vld [vmem:[%s5310_s14 + $0x380] sm:$0xff]  ;;  %v3953_v46 = vld [vmem:[%s5310_s14 + $0x288] sm:$0xff] }
 0xb58   :  { %2771 = vmatpush.msra.mxu0 %v2722_v48  ;;  %2886 = vmatpush.msrb.mxu3 %v3949_v49  ;;  %v3952_v27 = vld [vmem:[%s5310_s14 + $0x280] sm:$0xff] }
 0xb59   :  { %2978 = vmatpush.msra.mxu2 %v3999_v47  ;;  %2958 = vmatpush.msra.mxu1 %v3983_v50 }
 0xb5a   :  { %2772 = vmatpush.msra.mxu0 %v2721_v52  ;;  %2887 = vmatpush.msrb.mxu3 %v3948_v53 }
 0xb5b   :  { %2979 = vmatpush.msra.mxu2 %v3998_v51  ;;  %2959 = vmatpush.msra.mxu1 %v3982_v55 }
 0xb5c   :  { %2904 = vmatpush.msrb.mxu0 %v3967_v54  ;;  %2888 = vmatpush.msrb.mxu3 %v3947_v57 }
 0xb5d   :  { %2980 = vmatpush.msra.mxu2 %v3997_v56  ;;  %2960 = vmatpush.msra.mxu1 %v3981_v59 }
 0xb5e   :  { %2905 = vmatpush.msrb.mxu0 %v3966_v58  ;;  %2889 = vmatpush.msrb.mxu3 %v3946_v0  ;;  %v3041_v0 = vld [vmem:[%s5311_s19 + $0x68] sm:$0xff] }
 0xb5f   :  { %2981 = vmatpush.msra.mxu2 %v3996_v60  ;;  %2961 = vmatpush.msra.mxu1 %v3980_v61  ;;  %v3043_v61 = vld [vmem:[%s5311_s19 + $0x78] sm:$0xff] }
 0xb60   :  { %2906 = vmatpush.msrb.mxu0 %v3965_v62  ;;  %2890 = vmatpush.msrb.mxu3 %v3945_v4  ;;  %v3042_v62 = vld [vmem:[%s5311_s19 + $0x70] sm:$0xff] }
 0xb61   :  { %2962 = vmatpush.msra.mxu1 %v3979_v63  ;;  %2982 = vmatpush.msra.mxu2 %v3995_v3  ;;  %v4020_v63 = vld [vmem:[%s5311_s19 + $0xf8] sm:$0xff]  ;;  %v3040_v3 = vld [vmem:[%s5311_s19 + $0x60] sm:$0xff] }
 0xb62   :  { %2907 = vmatpush.msrb.mxu0 %v3964_v1  ;;  %2891 = vmatpush.msrb.mxu3 %v3944_v8  ;;  %v4019_v1 = vld [vmem:[%s5311_s19 + $0xf0] sm:$0xff]  ;;  %v4016_v8 = vld [vmem:[%s5311_s19 + $0xd8] sm:$0xff] }
 0xb63   :  { %2963 = vmatpush.msra.mxu1 %v3978_v2  ;;  %2983 = vmatpush.msra.mxu2 %v3994_v5  ;;  %v4018_v2 = vld [vmem:[%s5311_s19 + $0xe8] sm:$0xff]  ;;  %v4017_v5 = vld [vmem:[%s5311_s19 + $0xe0] sm:$0xff] }
 0xb64   :  { %2908 = vmatpush.msrb.mxu0 %v3963_v6  ;;  %2892 = vmatpush.msrb.mxu3 %v3943_v12  ;;  %v3039_v6 = vld [vmem:[%s5311_s19 + $0x58] sm:$0xff] }
 0xb65   :  { %2964 = vmatpush.msra.mxu1 %v3977_v7  ;;  %2984 = vmatpush.msra.mxu2 %v3993_v11  ;;  %v4015_v11 = vld [vmem:[%s5311_s19 + $0xd0] sm:$0xff] }
 0xb66   :  { %2909 = vmatpush.msrb.mxu0 %v3962_v9  ;;  %2893 = vmatpush.msrb.mxu3 %v3942_v18 }
 0xb67   :  { %2965 = vmatpush.msra.mxu1 %v3976_v10  ;;  %2985 = vmatpush.msra.mxu2 %v3992_v15  ;;  %v3038_v10 = vld [vmem:[%s5311_s19 + $0x50] sm:$0xff]  ;;  %v4014_v15 = vld [vmem:[%s5311_s19 + $0xc8] sm:$0xff] }
 0xb68   :  { %2910 = vmatpush.msrb.mxu0 %v3961_v13  ;;  %2894 = vmatpush.msrb.mxu3 %v3941_v23  ;;  %v3037_v13 = vld [vmem:[%s5311_s19 + $0x48] sm:$0xff] }
 0xb69   :  { %2966 = vmatpush.msra.mxu1 %v3975_v17  ;;  %2986 = vmatpush.msra.mxu2 %v3991_v22  ;;  %v3036_v17 = vld [vmem:[%s5311_s19 + $0x40] sm:$0xff] }
 0xb6a   :  { %2911 = vmatpush.msrb.mxu0 %v3960_v19  ;;  %2895 = vmatpush.msrb.mxu3 %v3940_v29  ;;  %v4013_v19 = vld [vmem:[%s5311_s19 + $0xc0] sm:$0xff]  ;;  %v3034_v29 = vld [vmem:[%s5311_s19 + $0x30] sm:$0xff] }
 0xb6b   :  { %2967 = vmatpush.msra.mxu1 %v3974_v20  ;;  %2987 = vmatpush.msra.mxu2 %v3990_v26  ;;  %v3035_v20 = vld [vmem:[%s5311_s19 + $0x38] sm:$0xff] }
 0xb6c   :  { %2912 = vmatpush.msrb.mxu0 %v3959_v24  ;;  %2896 = vmatpush.msrb.mxu3 %v3939_v33 }
 0xb6d   :  { %2968 = vmatpush.msra.mxu1 %v3973_v25  ;;  %2988 = vmatpush.msra.mxu2 %v3989_v32  ;;  %v4012_v25 = vld [vmem:[%s5311_s19 + $0xb8] sm:$0xff] }
 0xb6e   :  { %2913 = vmatpush.msrb.mxu0 %v3958_v30  ;;  %2897 = vmatpush.msrb.mxu3 %v3938_v38  ;;  %v4010_v38 = vld [vmem:[%s5311_s19 + $0xa8] sm:$0xff] }
 0xb6f   :  { %2969 = vmatpush.msra.mxu1 %v3972_v31  ;;  %2989 = vmatpush.msra.mxu2 %v3988_v35  ;;  %v4011_v31 = vld [vmem:[%s5311_s19 + $0xb0] sm:$0xff] }
 0xb70   :  { %2914 = vmatpush.msrb.mxu0 %v3957_v34  ;;  %2898 = vmatpush.msrb.mxu3 %v3937_v40  ;;  %v3033_v34 = vld [vmem:[%s5311_s19 + $0x28] sm:$0xff]  ;;  %v4039_v40 = vld [vmem:[%s5311_s19 + $0x178] sm:$0xff] }
 0xb71   :  { %2970 = vmatpush.msra.mxu1 %v3971_v36  ;;  %2990 = vmatpush.msra.mxu2 %v3987_v28  ;;  %v4002_v28 = vld [vmem:[%s5312_s24 + $0x4] sm:$0xf] }
 0xb72   :  { %2915 = vmatpush.msrb.mxu0 %v3956_v39  ;;  %2899 = vmatpush.msrb.mxu3 %v3936_v42  ;;  %v4009_v42 = vld [vmem:[%s5311_s19 + $0xa0] sm:$0xff] }
 0xb73   :  { %2971 = vmatpush.msra.mxu1 %v3970_v21  ;;  %2991 = vmatpush.msra.mxu2 %v3986_v41  ;;  %v2999_v21 = vld [vmem:[%s5312_s24] sm:$0xf] }
 0xb74   :  { %2916 = vmatpush.msrb.mxu0 %v3955_v43  ;;  %v3032_v41 = vld [vmem:[%s5311_s19 + $0x20] sm:$0xff]  ;;  %v4038_v43 = vld [vmem:[%s5311_s19 + $0x170] sm:$0xff] }
 0xb75   :  { %2972 = vmatpush.msra.mxu1 %v3969_v44  ;;  %2992 = vmatpush.msra.mxu2 %v3985_v14  ;;  %v3031_v44 = vld [vmem:[%s5311_s19 + $0x18] sm:$0xff]  ;;  %v4037_v14 = vld [vmem:[%s5311_s19 + $0x168] sm:$0xff] }
 0xb76   :  { %2917 = vmatpush.msrb.mxu0 %v3954_v16  ;;  %v3030_v16 = vld [vmem:[%s5311_s19 + $0x10] sm:$0xff] }
 0xb77   :  { %2973 = vmatpush.msra.mxu1 %v3968_v45  ;;  %2993 = vmatpush.msra.mxu2 %v3984_v37  ;;  %v4036_v45 = vld [vmem:[%s5311_s19 + $0x160] sm:$0xff]  ;;  %v4021_v37 = vld [vmem:[%s5312_s24 + $0x8] sm:$0xf] }
 0xb78   :  { %2918 = vmatpush.msrb.mxu0 %v3953_v46  ;;  %v3029_v46 = vld [vmem:[%s5311_s19 + $0x8] sm:$0xff] }
 0xb7a   :  { %2919 = vmatpush.msrb.mxu0 %v3952_v27  ;;  %v4035_v27 = vld [vmem:[%s5311_s19 + $0x158] sm:$0xff] }
 0xbac   :  { %v2586_v47 = vpop.f32.mrf.mxu1 }
 0xbb2   :  { %v2541_v48 = vpop.f32.mrf.mxu3 }
 0xbb3   :  { %v2561_v49 = vpop.f32.mrf.mxu0  ;;  %v2609_v51 = vmax.f32 %v2541_v48, %v2586_v47  ;;  %v4034_v47 = vld [vmem:[%s5311_s19 + $0x150] sm:$0xff]  ;;  %v4033_v48 = vld [vmem:[%s5311_s19 + $0x148] sm:$0xff] }
 0xbb5   :  { %v2680_v54 = vpop.f32.mrf.mxu1 }
 0xbb9   :  { %v2606_v50 = vpop.f32.mrf.mxu2 }
 0xbba   :  { %v2610_v52 = vmax.f32 %v2561_v49, %v2606_v50  ;;  %v4032_v49 = vld [vmem:[%s5311_s19 + $0x140] sm:$0xff]  ;;  %v4031_v50 = vld [vmem:[%s5311_s19 + $0x138] sm:$0xff] }
 0xbbc   :  { %v2633_v53 = vpop.f32.mrf.mxu3  ;;  %v2653_v56 = vpop.f32.mrf.mxu0 }
 0xbbd   :  { %v2656_v55 = vmax.f32 %v2609_v51, %v2633_v53  ;;  %v2657_v58 = vmax.f32 %v2610_v52, %v2653_v56  ;;  %v4030_v51 = vld [vmem:[%s5311_s19 + $0x130] sm:$0xff]  ;;  %v4029_v52 = vld [vmem:[%s5311_s19 + $0x128] sm:$0xff]  ;;  %v4008_v53 = vld [vmem:[%s5311_s19 + $0x98] sm:$0xff] }
 0xbbe   :  { %v4007_v56 = vld [vmem:[%s5311_s19 + $0x90] sm:$0xff] }
 0xbbf   :  { %v2703_v57 = vmax.f32 %v2656_v55, %v2680_v54  ;;  %v3028_v54 = vld [vmem:[%s5311_s19] sm:$0xff] }
 0xbc0   :  { %v4028_v55 = vld [vmem:[%s5311_s19 + $0x120] sm:$0xff] }
 0xbc1   :  { %v2700_v59 = vpop.f32.mrf.mxu2  ;;  %2753 = vmatmul.f32.vlgmr.msra.gmra.mxu3 %v2703_v57  ;;  %2826 = vmatmul.f32.vlgmr.msrb.gmra.mxu1 %v2703_v57 }
 0xbc2   :  { %v2704_v60 = vmax.f32 %v2657_v58, %v2700_v59  ;;  %3086 = vmatpush.msrb.mxu1 %v4020_v63  ;;  %v4006_v58 = vld [vmem:[%s5311_s19 + $0x88] sm:$0xff]  ;;  %v4026_v59 = vld [vmem:[%s5311_s19 + $0x110] sm:$0xff]  ;;  %v3219_v63 = vld [vmem:[%s5313_s30 + $0x78] sm:$0xff] }
 0xbc4   :  { %2846 = vmatmul.f32.vlgmr.msrb.gmra.mxu2 %v2704_v60  ;;  %2773 = vmatmul.f32.vlgmr.msra.gmra.mxu0 %v2704_v60 }
 0xbc5   :  { %3106 = vmatpush.msrb.mxu2 %v3043_v61  ;;  %3087 = vmatpush.msrb.mxu1 %v4019_v1  ;;  %v4025_v61 = vld [vmem:[%s5311_s19 + $0x108] sm:$0xff] }
 0xbc6   :  { %v3217_v1 = vld [vmem:[%s5313_s30 + $0x68] sm:$0xff] }
 0xbc7   :  { %3107 = vmatpush.msrb.mxu2 %v3042_v62  ;;  %3088 = vmatpush.msrb.mxu1 %v4018_v2  ;;  %v4024_v62 = vld [vmem:[%s5311_s19 + $0x100] sm:$0xff] }
 0xbc8   :  { %v3216_v2 = vld [vmem:[%s5313_s30 + $0x60] sm:$0xff] }
 0xbc9   :  { %2900 = vmatmul.f32.vlgmr.msrb.gmra.mxu3 %v2703_v57  ;;  %2974 = vmatmul.f32.vlgmr.msra.gmra.mxu1 %v2703_v57  ;;  %v4027_v57 = vld [vmem:[%s5311_s19 + $0x118] sm:$0xff] }
 0xbca   :  { %3108 = vmatpush.msrb.mxu2 %v3041_v0  ;;  %3089 = vmatpush.msrb.mxu1 %v4017_v5  ;;  %v3218_v0 = vld [vmem:[%s5313_s30 + $0x70] sm:$0xff]  ;;  %v3213_v5 = vld [vmem:[%s5313_s30 + $0x48] sm:$0xff] }
 0xbcc   :  { %2994 = vmatmul.f32.vlgmr.msra.gmra.mxu2 %v2704_v60  ;;  %2920 = vmatmul.f32.vlgmr.msrb.gmra.mxu0 %v2704_v60  ;;  %v4005_v60 = vld [vmem:[%s5311_s19 + $0x80] sm:$0xff] }
 0xbcd   :  { %3109 = vmatpush.msrb.mxu2 %v3040_v3  ;;  %3090 = vmatpush.msrb.mxu1 %v4016_v8  ;;  %v3215_v3 = vld [vmem:[%s5313_s30 + $0x58] sm:$0xff] }
 0xbcf   :  { %3110 = vmatpush.msrb.mxu2 %v3039_v6  ;;  %3091 = vmatpush.msrb.mxu1 %v4015_v11  ;;  %v3210_v11 = vld [vmem:[%s5313_s30 + $0x30] sm:$0xff] }
 0xbd1   :  { %3111 = vmatpush.msrb.mxu2 %v3038_v10  ;;  %3092 = vmatpush.msrb.mxu1 %v4014_v15  ;;  %v3211_v10 = vld [vmem:[%s5313_s30 + $0x38] sm:$0xff] }
 0xbd2   :  { %v3207_v15 = vld [vmem:[%s5313_s30 + $0x18] sm:$0xff] }
 0xbd3   :  { %3112 = vmatpush.msrb.mxu2 %v3037_v13  ;;  %3093 = vmatpush.msrb.mxu1 %v4013_v19  ;;  %v3208_v13 = vld [vmem:[%s5313_s30 + $0x20] sm:$0xff] }
 0xbd4   :  { %v3204_v19 = vld [vmem:[%s5313_s30] sm:$0xff] }
 0xbd5   :  { %3113 = vmatpush.msrb.mxu2 %v3036_v17  ;;  %3094 = vmatpush.msrb.mxu1 %v4012_v25  ;;  %v3206_v17 = vld [vmem:[%s5313_s30 + $0x10] sm:$0xff] }
 0xbd7   :  { %3114 = vmatpush.msrb.mxu2 %v3035_v20  ;;  %3095 = vmatpush.msrb.mxu1 %v4011_v31 }
 0xbd9   :  { %3115 = vmatpush.msrb.mxu2 %v3034_v29  ;;  %3096 = vmatpush.msrb.mxu1 %v4010_v38 }
 0xbdb   :  { %3116 = vmatpush.msrb.mxu2 %v3033_v34  ;;  %3097 = vmatpush.msrb.mxu1 %v4009_v42  ;;  %v3285_v42 = vld [vmem:[%s5314_s6 + $0x38] sm:$0xff] }
 0xbdd   :  { %3117 = vmatpush.msrb.mxu2 %v3032_v41  ;;  %3098 = vmatpush.msrb.mxu1 %v4008_v53 }
 0xbdf   :  { %3118 = vmatpush.msrb.mxu2 %v3031_v44  ;;  %3099 = vmatpush.msrb.mxu1 %v4007_v56  ;;  %v3283_v44 = vld [vmem:[%s5314_s6 + $0x28] sm:$0xff]  ;;  %v3262_v56 = vld [vmem:[%s5315_s22] sm:$0x1] }
 0xbe1   :  { %3119 = vmatpush.msrb.mxu2 %v3030_v16  ;;  %3100 = vmatpush.msrb.mxu1 %v4006_v58  ;;  %v3281_v16 = vld [vmem:[%s5314_s6 + $0x18] sm:$0xff] }
 0xbe3   :  { %3120 = vmatpush.msrb.mxu2 %v3029_v46  ;;  %3101 = vmatpush.msrb.mxu1 %v4005_v60  ;;  %v3278_v46 = vld [vmem:[%s5314_s6] sm:$0xff] }
 0xbe4   :  { %v3275_v60 = vld [vmem:[%s5316_s23] sm:$0x1] }
 0xbe5   :  { %3121 = vmatpush.msrb.mxu2 %v3028_v54  ;;  %3240 = vmatpush.msra.mxu1 %v3219_v63 }
 0xbe7   :  { %3241 = vmatpush.msra.mxu1 %v3218_v0  ;;  %3297 = vmatpush.msra.mxu2 %v3285_v42 }
 0xbe9   :  { %3242 = vmatpush.msra.mxu1 %v3217_v1 }
 0xbeb   :  { %3243 = vmatpush.msra.mxu1 %v3216_v2 }
 0xbed   :  { %3244 = vmatpush.msra.mxu1 %v3215_v3 }
 0xc3e   :  { %v2827_v9 = vpop.f32.mrf.mxu1 }
 0xc41   :  { %v2774_v4 = vpop.f32.mrf.mxu0 }
 0xc44   :  { %v2754_v7 = vpop.f32.mrf.mxu3 }
 0xc45   :  { %v2775_v22 = vadd.f32 %v2774_v4, %v2754_v7  ;;  %v3214_v4 = vld [vmem:[%s5313_s30 + $0x50] sm:$0xff] }
 0xc46   :  { %v2975_v32 = vpop.f32.mrf.mxu1  ;;  %3245 = vmatpush.msra.mxu1 %v3214_v4 }
 0xc47   :  { %v2847_v12 = vpop.f32.mrf.mxu2 }
 0xc48   :  { %v2848_v18 = vadd.f32 %v2847_v12, %v2827_v9  ;;  %3246 = vmatpush.msra.mxu1 %v3213_v5  ;;  %v3212_v9 = vld [vmem:[%s5313_s30 + $0x40] sm:$0xff]  ;;  %v3209_v12 = vld [vmem:[%s5313_s30 + $0x28] sm:$0xff] }
 0xc49   :  { %v2921_v24 = vpop.f32.mrf.mxu0 }
 0xc4a   :  { %v2850_v30 = vmax.f32 %v2775_v22, %v2848_v18  ;;  %3247 = vmatpush.msra.mxu1 %v3212_v9  ;;  %v3205_v18 = vld [vmem:[%s5313_s30 + $0x8] sm:$0xff] }
 0xc4c   :  { %v2901_v23 = vpop.f32.mrf.mxu3  ;;  %3248 = vmatpush.msra.mxu1 %v3211_v10 }
 0xc4d   :  { %v2922_v26 = vadd.f32 %v2921_v24, %v2901_v23 }
 0xc4e   :  { %3249 = vmatpush.msra.mxu1 %v3210_v11 }
 0xc4f   :  { %v2995_v33 = vpop.f32.mrf.mxu2  ;;  %v2924_v35 = vmax.f32 %v2850_v30, %v2922_v26 }
 0xc50   :  { %v2996_v36 = vadd.f32 %v2995_v33, %v2975_v32  ;;  %3250 = vmatpush.msra.mxu1 %v3209_v12 }
 0xc52   :  { %v2998_v39 = vmax.f32 %v2924_v35, %v2996_v36  ;;  %3251 = vmatpush.msra.mxu1 %v3208_v13 }
 0xc54   :  { %4000 = vmatpush.msk.msra.mxu3 %vm3004_vm5, %v2998_v39  ;;  %4003 = vmatpush.msk.msra.mxu0 %vm3004_vm5, %v2998_v39 }
 0xc55   :  { %4001 = vmatmul.msk.f32.vlgmr.msra.gmra.mxu3 %vm3000_vm8, %v2999_v21  ;;  %4004 = vmatmul.msk.f32.vlgmr.msra.gmra.mxu0 %vm3000_vm8, %v4002_v28 }
 0xc56   :  { %4022 = vmatpush.msk.msrb.mxu3 %vm3004_vm5, %v2998_v39  ;;  %3168 = vmatpush.msrb.mxu0 %v4039_v40 }
 0xc57   :  { %3252 = vmatpush.msra.mxu1 %v3207_v15 }
 0xc58   :  { %3169 = vmatpush.msrb.mxu0 %v4038_v43  ;;  %3220 = vmatpush.msra.mxu3 %v3219_v63  ;;  %v3284_v43 = vld [vmem:[%s5314_s6 + $0x30] sm:$0xff]  ;;  %v4062_v63 = vld [vmem:[%s4341_s27 + $0xf8] sm:$0xff] }
 0xc59   :  { %3253 = vmatpush.msra.mxu1 %v3206_v17  ;;  %3298 = vmatpush.msra.mxu2 %v3284_v43 }
 0xc5a   :  { %3170 = vmatpush.msrb.mxu0 %v4037_v14  ;;  %3221 = vmatpush.msra.mxu3 %v3218_v0  ;;  %v3282_v14 = vld [vmem:[%s5314_s6 + $0x20] sm:$0xff]  ;;  %v4061_v0 = vld [vmem:[%s4341_s27 + $0xf0] sm:$0xff] }
 0xc5b   :  { %3254 = vmatpush.msra.mxu1 %v3205_v18  ;;  %3299 = vmatpush.msra.mxu2 %v3283_v44 }
 0xc5c   :  { %3171 = vmatpush.msrb.mxu0 %v4036_v45  ;;  %3222 = vmatpush.msra.mxu3 %v3217_v1  ;;  %v3280_v45 = vld [vmem:[%s5314_s6 + $0x10] sm:$0xff]  ;;  %v4060_v1 = vld [vmem:[%s4341_s27 + $0xe8] sm:$0xff] }
 0xc5d   :  { %4023 = vmatmul.msk.f32.vlgmr.msrb.gmra.mxu3 %vm3000_vm8, %v4021_v37  ;;  %3255 = vmatpush.msra.mxu1 %v3204_v19  ;;  %v3279_v37 = vld [vmem:[%s5314_s6 + $0x8] sm:$0xff] }
 0xc5e   :  { %3172 = vmatpush.msrb.mxu0 %v4035_v27  ;;  %3223 = vmatpush.msra.mxu3 %v3216_v2  ;;  %v4059_v2 = vld [vmem:[%s4341_s27 + $0xe0] sm:$0xff] }
 0xc5f   :  { %3300 = vmatpush.msra.mxu2 %v3282_v14 }
 0xc60   :  { %3173 = vmatpush.msrb.mxu0 %v4034_v47  ;;  %3224 = vmatpush.msra.mxu3 %v3215_v3  ;;  %v4058_v3 = vld [vmem:[%s4341_s27 + $0xd8] sm:$0xff] }
 0xc61   :  { %3301 = vmatpush.msra.mxu2 %v3281_v16 }
 0xc62   :  { %3174 = vmatpush.msrb.mxu0 %v4033_v48  ;;  %3225 = vmatpush.msra.mxu3 %v3214_v4  ;;  %v4057_v4 = vld [vmem:[%s4341_s27 + $0xd0] sm:$0xff] }
 0xc63   :  { %3302 = vmatpush.msra.mxu2 %v3280_v45 }
 0xc64   :  { %3175 = vmatpush.msrb.mxu0 %v4032_v49  ;;  %3226 = vmatpush.msra.mxu3 %v3213_v5  ;;  %v4056_v5 = vld [vmem:[%s4341_s27 + $0xc8] sm:$0xff] }
 0xc65   :  { %3303 = vmatpush.msra.mxu2 %v3279_v37 }
 0xc66   :  { %3176 = vmatpush.msrb.mxu0 %v4031_v50  ;;  %3227 = vmatpush.msra.mxu3 %v3212_v9 }
 0xc67   :  { %3304 = vmatpush.msra.mxu2 %v3278_v46 }
 0xc68   :  { %3177 = vmatpush.msrb.mxu0 %v4030_v51  ;;  %3228 = vmatpush.msra.mxu3 %v3211_v10  ;;  %v4054_v10 = vld [vmem:[%s4341_s27 + $0xb8] sm:$0xff] }
 0xc6a   :  { %3178 = vmatpush.msrb.mxu0 %v4029_v52  ;;  %3229 = vmatpush.msra.mxu3 %v3210_v11 }
 0xc6c   :  { %3179 = vmatpush.msrb.mxu0 %v4028_v55  ;;  %3230 = vmatpush.msra.mxu3 %v3209_v12 }
 0xc6e   :  { %3180 = vmatpush.msrb.mxu0 %v4027_v57  ;;  %3231 = vmatpush.msra.mxu3 %v3208_v13  ;;  %v4053_v13 = vld [vmem:[%s4341_s27 + $0xb0] sm:$0xff] }
 0xc70   :  { %3181 = vmatpush.msrb.mxu0 %v4026_v59  ;;  %3232 = vmatpush.msra.mxu3 %v3207_v15 }
 0xc72   :  { %3182 = vmatpush.msrb.mxu0 %v4025_v61  ;;  %3233 = vmatpush.msra.mxu3 %v3206_v17  ;;  %v4052_v17 = vld [vmem:[%s4341_s27 + $0xa8] sm:$0xff] }
 0xc74   :  { %3183 = vmatpush.msrb.mxu0 %v4024_v62  ;;  %3234 = vmatpush.msra.mxu3 %v3205_v18 }
 0xc76   :  { %3235 = vmatpush.msra.mxu3 %v3204_v19  ;;  %3322 = vmatpush.msra.mxu0 %v3285_v42  ;;  %v3339_v19 = vld [vmem:[%s5317_s26] sm:$0x3]  ;;  %v4048_v42 = vld [vmem:[%s4341_s27 + $0x88] sm:$0xff] }
 0xc78   :  { %3323 = vmatpush.msra.mxu0 %v3284_v43  ;;  %v3392_v43 = vld [vmem:[%s4341_s27] sm:$0xff] }
 0xc7a   :  { %3324 = vmatpush.msra.mxu0 %v3283_v44  ;;  %v4047_v44 = vld [vmem:[%s4341_s27 + $0x80] sm:$0xff] }
 0xc7c   :  { %3325 = vmatpush.msra.mxu0 %v3282_v14  ;;  %v3473_v14 = vld [vmem:[%s4346_s4 + $0x38] sm:$0xff] }
 0xc7e   :  { %3326 = vmatpush.msra.mxu0 %v3281_v16  ;;  %v3472_v16 = vld [vmem:[%s4346_s4 + $0x30] sm:$0xff] }
 0xc80   :  { %3327 = vmatpush.msra.mxu0 %v3280_v45  ;;  %v3471_v45 = vld [vmem:[%s4346_s4 + $0x28] sm:$0xff] }
 0xc82   :  { %3328 = vmatpush.msra.mxu0 %v3279_v37  ;;  %v3470_v37 = vld [vmem:[%s4346_s4 + $0x20] sm:$0xff] }
 0xc84   :  { %3329 = vmatpush.msra.mxu0 %v3278_v46  ;;  %v3469_v46 = vld [vmem:[%s4346_s4 + $0x18] sm:$0xff] }
 0xcd2   :  { %v3066_v6 = vpop.f32.mrf.mxu0 }
 0xcd3   :  { %3102 = vmatmul.f32.vlgmr.msrb.gmra.mxu1 %v3066_v6 }
 0xcd8   :  { %v3025_v7 = vpop.f32.mrf.mxu3 }
 0xcd9   :  { %3122 = vmatmul.f32.vlgmr.msrb.gmra.mxu2 %v3025_v7 }
 0xce0   :  { %v3148_v8 = vpop.f32.mrf.mxu3 }
 0xce1   :  { %3184 = vmatmul.f32.vlgmr.msrb.gmra.mxu0 %v3148_v8  ;;  %v4055_v8 = vld [vmem:[%s4341_s27 + $0xc0] sm:$0xff] }
 0xce2   :  { %3445 = vmatpush.msrb.mxu0 %v4062_v63 }
 0xce4   :  { %3446 = vmatpush.msrb.mxu0 %v4061_v0 }
 0xce6   :  { %3447 = vmatpush.msrb.mxu0 %v4060_v1 }
 0xce8   :  { %3448 = vmatpush.msrb.mxu0 %v4059_v2 }
 0xcea   :  { %3449 = vmatpush.msrb.mxu0 %v4058_v3 }
 0xcec   :  { %3450 = vmatpush.msrb.mxu0 %v4057_v4 }
 0xcee   :  { %3451 = vmatpush.msrb.mxu0 %v4056_v5 }
 0xcf0   :  { %3452 = vmatpush.msrb.mxu0 %v4055_v8 }
 0xcf2   :  { %3453 = vmatpush.msrb.mxu0 %v4054_v10 }
 0xcf4   :  { %3454 = vmatpush.msrb.mxu0 %v4053_v13 }
 0xcf6   :  { %3455 = vmatpush.msrb.mxu0 %v4052_v17 }
 0xd50   :  { %v3103_v20 = vpop.f32.mrf.mxu1 }
 0xd5c   :  { %v3123_v22 = vpop.f32.mrf.mxu2 }
 0xd5d   :  { %v3124_v23 = vadd.f32 %v3123_v22, %v3103_v20  ;;  %v4044_v20 = vld [vmem:[%s5317_s26 + $0x2] sm:$0x3] }
 0xd5e   :  { %v3185_v24 = vpop.f32.mrf.mxu0 }
 0xd5f   :  { %v5197_v25 = vadd.f32 %v3185_v24, %v3124_v23  ;;  %v3407_v23 = vld [vmem:[%s4341_s27 + $0x78] sm:$0xff]  ;;  %v3406_v24 = vld [vmem:[%s4341_s27 + $0x70] sm:$0xff] }
 0xd61   :  { %v3189_v26 = vsel %vm3004_vm5, %v5197_v25, 0.0  ;;  %v3196_v29 = vmul.f32 %v5197_v25, %v5197_v25 }
 0xd62   :  { %v3190_v30 = vrot.slane %v3189_v26, 4 }
 0xd63   :  { %v3197_v31 = vsel %vm3004_vm5, %v3196_v29, 0.0  ;;  %v3403_v29 = vld [vmem:[%s4341_s27 + $0x58] sm:$0xff] }
 0xd64   :  { %v3191_v32 = vadd.f32 %v3190_v30, %v3189_v26  ;;  %v3198_v33 = vrot.slane %v3197_v31, 4  ;;  %v3404_v26 = vld [vmem:[%s4341_s27 + $0x60] sm:$0xff]  ;;  %v3402_v30 = vld [vmem:[%s4341_s27 + $0x50] sm:$0xff] }
 0xd66   :  { %v3192_v34 = vrot.slane %v3191_v32, 2  ;;  %v3199_v35 = vadd.f32 %v3198_v33, %v3197_v31  ;;  %v3401_v31 = vld [vmem:[%s4341_s27 + $0x48] sm:$0xff]  ;;  %v3399_v33 = vld [vmem:[%s4341_s27 + $0x38] sm:$0xff] }
 0xd68   :  { %v3193_v36 = vadd.f32 %v3192_v34, %v3191_v32  ;;  %v3200_v38 = vrot.slane %v3199_v35, 2  ;;  %v3400_v32 = vld [vmem:[%s4341_s27 + $0x40] sm:$0xff]  ;;  %v3398_v34 = vld [vmem:[%s4341_s27 + $0x30] sm:$0xff] }
 0xd6a   :  { %v3194_v39 = vrot.slane %v3193_v36, 1  ;;  %v3201_v21 = vadd.f32 %v3200_v38, %v3199_v35  ;;  %v3397_v35 = vld [vmem:[%s4341_s27 + $0x28] sm:$0xff]  ;;  %v3395_v38 = vld [vmem:[%s4341_s27 + $0x18] sm:$0xff] }
 0xd6c   :  { %v3195_v28 = vadd.f32 %v3194_v39, %v3193_v36  ;;  %v3202_v40 = vrot.slane %v3201_v21, 1  ;;  %v3396_v36 = vld [vmem:[%s4341_s27 + $0x20] sm:$0xff]  ;;  %v3394_v39 = vld [vmem:[%s4341_s27 + $0x10] sm:$0xff] }
 0xd6e   :  { %3236 = vmatmul.f32.vlgmr.msra.gmra.mxu3 %v3195_v28  ;;  %v3203_v41 = vadd.f32 %v3202_v40, %v3201_v21  ;;  %v4051_v21 = vld [vmem:[%s4341_s27 + $0xa0] sm:$0xff]  ;;  %v4050_v28 = vld [vmem:[%s4341_s27 + $0x98] sm:$0xff]  ;;  %v4049_v40 = vld [vmem:[%s4341_s27 + $0x90] sm:$0xff] }
 0xd6f   :  { %3456 = vmatpush.msrb.mxu0 %v4051_v21 }
 0xd70   :  { %3256 = vmatmul.f32.vlgmr.msra.gmra.mxu1 %v3203_v41  ;;  %v3393_v41 = vld [vmem:[%s4341_s27 + $0x8] sm:$0xff] }
 0xd71   :  { %3457 = vmatpush.msrb.mxu0 %v4050_v28 }
 0xd73   :  { %3458 = vmatpush.msrb.mxu0 %v4049_v40 }
 0xd75   :  { %3459 = vmatpush.msrb.mxu0 %v4048_v42 }
 0xd77   :  { %3460 = vmatpush.msrb.mxu0 %v4047_v44 }
 0xded   :  { %v3257_v48 = vpop.f32.mrf.mxu1 }
 0xdf1   :  { %v3237_v27 = vpop.f32.mrf.mxu3 }
 0xdf2   :  { %v3260_v47 = vmul.f32 %v3237_v27, %v3237_v27 }
 0xdf4   :  { %v3261_v49 = vsub.f32 %v3257_v48, %v3260_v47 }
 0xdf6   :  { %v3263_v50 = vadd.f32 1e-05, %v3261_v49 }
 0xdf8   :  { %4107 = vrsqrt.f32 %v3263_v50  ;;  %vm3270_vm11 = vweird.f32 %v3263_v50 }
 0xdfe   :  { %v4108_v51 = vpop.eup %4107 }
 0xdff   :  { %v3265_v52 = vmul.f32 %v4108_v51, %v3263_v50  ;;  %vm3271_vm9 = vweird.f32 %v4108_v51  ;;  %v3467_v50 = vld [vmem:[%s4346_s4 + $0x8] sm:$0xff] }
 0xe00   :  { %vm3272_vm12 = vmor %vm3270_vm11, %vm3271_vm9 }
 0xe01   :  { %v3266_v53 = vmul.f32 %v4108_v51, %v3265_v52 }
 0xe03   :  { %v3267_v54 = vmul.f32 0.5, %v3266_v53 }
 0xe05   :  { %v3268_v55 = vsub.f32 1.5, %v3267_v54 }
 0xe07   :  { %v3269_v57 = vmul.f32 %v4108_v51, %v3268_v55  ;;  %v4100_v55 = vld [vmem:[%s4351_s12] ss:$0 sm:$0xff] }
 0xe09   :  { %v3273_v58 = vsel %vm3272_vm12, %v4108_v51, %v3269_v57  ;;  %v3466_v51 = vld [vmem:[%s4346_s4] sm:$0xff] }
 0xe0a   :  { %v3274_v59 = vmul.f32 %v3273_v58, %v3262_v56 }
 0xe0c   :  { %v3276_v61 = vmul.f32 %v3274_v59, %v3237_v27  ;;  %4040 = vmatmul.msk.f32.vlgmr.msra.gmra.mxu2 %vm985_vm10, %v3274_v59  ;;  %v3468_v27 = vld [vmem:[%s4346_s4 + $0x10] sm:$0xff]  ;;  %s4123_s4 = sshra.s32 %s3512_s1, 4  ;;  %s4124_s4 = int_to_ptr.hbm [resolvable:$true] %s4123_s4 }
 0xe0d   :  { %s4125_s2 = scalar_lea.hbm %s4124_s4, 2  ;;  %p4128_p1 = scmp.lt.s32.totalorder %s4124_s4, %s4356_s20 }
 0xe0e   :  { %v3277_v62 = vsub.f32 %v3275_v60, %v3276_v61  ;;  %p4126_p0 = scmp.ne.s32.totalorder %s4124_s4, %s4125_s2  ;;  %p4129_p2 = scmp.lt.s32.totalorder %s4127_s7, %s4125_s2 }
 0xe10   :  { %4041 = vmatmul.msk.f32.vlgmr.msra.gmra.mxu0 %vm985_vm10, %v3277_v62  ;;  %p4130_p3 = por %p4129_p2, %p4128_p1 }
 0xe12   :  { %p4131_p4 = pnand %p4130_p3, %p4126_p0 }
 0xe8d   :  { %v3331_v6 = vpop.f32.mrf.mxu0 }
 0xe8e   :  { %v3334_v11 = vperm.slane %v3331_v6, 0 }
 0xe8f   :  { %v3306_v7 = vpop.f32.mrf.mxu2 }
 0xe90   :  { %v3309_v9 = vperm.slane %v3306_v7, 0 }
 0xe92   :  { %v3310_v12 = vmul.f32 %v3309_v9, %v5197_v25  ;;  %v3405_v25 = vld [vmem:[%s4341_s27 + $0x68] sm:$0xff]  ;;  %s4172_s27 = smov [#allocation2]  }
 0xe93   :  { %s3509_s28 = sshll.u32 %s4172_s27, 4  ;;  %s3510_s28 = int_to_ptr.vmem [resolvable:$true] %s3509_s28 }
 0xe94   :  { %v3335_v15 = vadd.f32 %v3334_v11, %v3310_v12 }
 0xe96   :  { %v3337_v18 = vmul.f32 0.01, %v3335_v15  ;;  %vm3336_vm13 = vcmp.ge.f32.partialorder %v3335_v15, 0.0 }
 0xe98   :  { %v3338_v22 = vsel %vm3336_vm13, %v3335_v15, %v3337_v18 }
 0xe99   :  { %4042 = vmatpush.msk.msrb.mxu3 %vm3004_vm5, %v3338_v22  ;;  %4045 = vmatpush.msk.msrb.mxu2 %vm3004_vm5, %v3338_v22 }
 0xe9a   :  { %4043 = vmatmul.msk.f32.vlgmr.msrb.gmra.mxu3 %vm3000_vm8, %v3339_v19  ;;  %4046 = vmatmul.msk.f32.vlgmr.msrb.gmra.mxu2 %vm3000_vm8, %v4044_v20 }
 0xe9b   :  { %3408 = vmatpush.msra.mxu3 %v3407_v23  ;;  %3489 = vmatpush.msra.mxu2 %v3473_v14 }
 0xe9d   :  { %3409 = vmatpush.msra.mxu3 %v3406_v24  ;;  %3490 = vmatpush.msra.mxu2 %v3472_v16 }
 0xe9f   :  { %3410 = vmatpush.msra.mxu3 %v3405_v25  ;;  %3491 = vmatpush.msra.mxu2 %v3471_v45 }
 0xea1   :  { %3411 = vmatpush.msra.mxu3 %v3404_v26  ;;  %3492 = vmatpush.msra.mxu2 %v3470_v37 }
 0xea3   :  { %3412 = vmatpush.msra.mxu3 %v3403_v29  ;;  %3493 = vmatpush.msra.mxu2 %v3469_v46 }
 0xea5   :  { %3413 = vmatpush.msra.mxu3 %v3402_v30  ;;  %3494 = vmatpush.msra.mxu2 %v3468_v27 }
 0xea7   :  { %3414 = vmatpush.msra.mxu3 %v3401_v31  ;;  %3495 = vmatpush.msra.mxu2 %v3467_v50 }
 0xea9   :  { %3415 = vmatpush.msra.mxu3 %v3400_v32  ;;  %3496 = vmatpush.msra.mxu2 %v3466_v51 }
 0xeab   :  { %3416 = vmatpush.msra.mxu3 %v3399_v33 }
 0xead   :  { %3417 = vmatpush.msra.mxu3 %v3398_v34 }
 0xeaf   :  { %3418 = vmatpush.msra.mxu3 %v3397_v35 }
 0xeb1   :  { %3419 = vmatpush.msra.mxu3 %v3396_v36 }
 0xeb3   :  { %3420 = vmatpush.msra.mxu3 %v3395_v38 }
 0xeb5   :  { %3421 = vmatpush.msra.mxu3 %v3394_v39 }
 0xeb7   :  { %3422 = vmatpush.msra.mxu3 %v3393_v41 }
 0xeb9   :  { %3423 = vmatpush.msra.mxu3 %v3392_v43 }
 0xf1d   :  { %v3363_v47 = vpop.f32.mrf.mxu3  ;;  %v3388_v48 = vpop.f32.mrf.mxu2 }
 0xf1e   :  { %v3391_v49 = vmax.f32 %v3363_v47, %v3388_v48 }
 0xf20   :  { %3424 = vmatmul.f32.vlgmr.msra.gmra.mxu3 %v3391_v49  ;;  %3461 = vmatmul.f32.vlgmr.msrb.gmra.mxu0 %v3391_v49 }
 0xf9d   :  { %v3462_v53 = vpop.f32.mrf.mxu0 }
 0xfa3   :  { %v3425_v52 = vpop.f32.mrf.mxu3 }
 0xfa4   :  { %v3465_v54 = vmax.f32 %v3425_v52, %v3462_v53 }
 0xfa6   :  { %4063 = vmatmul.msk.f32.vlgmr.msra.gmra.mxu2 %vm985_vm10, %v3465_v54 }
0x1029   :  { %v3498_v56 = vpop.f32.mrf.mxu2 }
0x102a   :  { %v3499_v57 = vadd.f32 %v4100_v55, %v3498_v56 }
0x102c   :  { %4109 = vtanh.f32 %v3499_v57 }
0x1032   :  { %v4110_v58 = vpop.eup %4109 }
0x1033   :  { %3503 = vst.msk [vmem:[#allocation2] sm:$0x3] %vm3502_vm14, %v4110_v58 }
0x1034   :  { %4134 = shalt.err (!%p4131_p4)
}
0x1035   :  { %3514 = dma.vmem_to_hbm [thread:$0]  %s3510_s28, 32, %s3512_s1, [#allocation3]  }
0x1036   :  { %4135 = dma.done.wait [#allocation3], 32  }
0x1037   :  { %4136 = vsyncadd [#allocation3], 4294967264 }
0x1038   :  { %3519 = vsyncpa [#allocation3], 1 }

</bundles_post_ra>
